<compile_context>
chip_gen: v6e
topology: v6e:2x2x1
jax: 0.10.0
libtpu: 0.0.40
codegen_flags: <defaults>
</compile_context>

<pallas_src>
import functools
import math

import jax
import jax.numpy as jnp
from jax.experimental import pallas as pl
from jax.experimental.pallas import tpu as pltpu

# Use the single-matmul Toeplitz conv whenever its f32 weight matrix fits this
# budget (covers spatial maps up to ~26x26; larger maps use the banded path).
_TOEPLITZ_BYTES_BUDGET = 4 << 20


def _pick_channel_chunk(C, HW, budget_bytes=2 << 20):
    """Largest channel chunk whose f32 block fits the per-buffer VMEM budget."""
    if C * HW * 4 <= budget_bytes:
        return C
    cap = max(budget_bytes // (HW * 4), 1)
    fallback = 1
    for ct in range(min(C, cap), 0, -1):
        if C % ct == 0:
            if ct % 8 == 0:
                return ct          # sublane-aligned divisor of C
            if fallback == 1:
                fallback = ct      # best unaligned divisor (rarely needed)
    return fallback


def _sa_toeplitz_kernel(w_ref, x_ref, o_ref, sum_ref, max_ref):
    # w_ref  : (2*HW, HW) f32 Toeplitz conv matrix (constant block)
    # x_ref  : (1, Ct, HW) input chunk (lane-dense)
    # o_ref  : (1, 1, HW)  output (lane-dense), written on last chunk only
    # sum_ref/max_ref : (1, HW) f32 running channel sum / max
    c_idx = pl.program_id(1)
    last_c = pl.num_programs(1) - 1

    x = x_ref[0].astype(jnp.float32)                  # (Ct, HW)
    part_sum = jnp.sum(x, axis=0, keepdims=True)      # (1, HW)
    part_max = jnp.max(x, axis=0, keepdims=True)      # (1, HW)

    @pl.when(c_idx == 0)
    def _init():
        sum_ref[...] = part_sum
        max_ref[...] = part_max

    @pl.when(c_idx > 0)
    def _accumulate():
        sum_ref[...] = sum_ref[...] + part_sum
        max_ref[...] = jnp.maximum(max_ref[...], part_max)

    @pl.when(c_idx == last_c)
    def _finalize():
        # [sum | max] stays lane-dense; whole padded KxK conv is one matmul.
        cat = jnp.concatenate([sum_ref[...], max_ref[...]], axis=1)  # (1, 2*HW)
        y = jnp.dot(cat, w_ref[...],
                    preferred_element_type=jnp.float32,
                    precision=jax.lax.Precision.HIGHEST)             # (1, HW)
        o_ref[0] = jax.nn.sigmoid(y).astype(o_ref.dtype)


def _sa_banded_kernel(w_ref, x_ref, o_ref, sum_ref, max_ref, cat_ref,
                      *, H, W, K, p, Wp):
    # w_ref  : (K, 2*Wp, W) f32 banded conv weights (constant block)
    # x_ref  : (1, Ct, H*W) input chunk (lane-dense)
    # o_ref  : (1, 1, H*W)  output (lane-dense), written on last chunk only
    # sum_ref/max_ref : (1, H*W) f32 running channel sum / max
    # cat_ref: (Hp, 2*Wp) f32 zero-padded [sum | max] maps, built on last chunk
    c_idx = pl.program_id(1)
    last_c = pl.num_programs(1) - 1

    x = x_ref[0].astype(jnp.float32)                  # (Ct, HW)
    part_sum = jnp.sum(x, axis=0, keepdims=True)      # (1, HW)
    part_max = jnp.max(x, axis=0, keepdims=True)      # (1, HW)

    @pl.when(c_idx == 0)
    def _init():
        sum_ref[...] = part_sum
        max_ref[...] = part_max

    @pl.when(c_idx > 0)
    def _accumulate():
        sum_ref[...] = sum_ref[...] + part_sum
        max_ref[...] = jnp.maximum(max_ref[...], part_max)

    @pl.when(c_idx == last_c)
    def _finalize():
        # Zero the padded scratch (the conv's zero halo), then scatter the
        # reduced rows into the interior: [sum | max].
        cat_ref[...] = jnp.zeros_like(cat_ref)
        for h in range(H):
            cat_ref[p + h, p:p + W] = sum_ref[0, h * W:(h + 1) * W]
            cat_ref[p + h, Wp + p:Wp + p + W] = max_ref[0, h * W:(h + 1) * W]

        # K banded matmuls on the MXU (one per tap row); two independent
        # accumulators keep the (tiny) add chain off the critical path.
        acc0 = jnp.zeros((H, W), jnp.float32)
        acc1 = jnp.zeros((H, W), jnp.float32)
        for kh in range(K):
            part = jnp.dot(cat_ref[kh:kh + H, :], w_ref[kh],
                           preferred_element_type=jnp.float32,
                           precision=jax.lax.Precision.HIGHEST)
            if kh % 2 == 0:
                acc0 = acc0 + part
            else:
                acc1 = acc1 + part

        y = jax.nn.sigmoid(acc0 + acc1).astype(o_ref.dtype)   # (H, W)
        for h in range(H):                                     # lane-dense out
            o_ref[0, 0, h * W:(h + 1) * W] = y[h, :]


@jax.jit
def spatial_attention(x, weight):
    """x: (N, C, H, W); weight: (1, 2, K, K) (torch conv2d OIHW layout)."""
    N, C, H, W = x.shape
    K = weight.shape[-1]
    p = K // 2
    HW = H * W

    # ---- glue: fold 1/C into avg taps (kernel computes sum, not mean) ----
    w_f = weight.astype(jnp.float32)
    w_avg = w_f[0, 0] / jnp.float32(C)
    w_max = w_f[0, 1]

    ct = _pick_channel_chunk(C, HW)
    n_c = C // ct
    x_flat = x.reshape(N, C, HW)            # lane-dense view of the big input

    common = dict(
        out_shape=jax.ShapeDtypeStruct((N, 1, HW), x.dtype),
        grid=(N, n_c),
        out_specs=pl.BlockSpec((1, 1, HW), lambda n, c: (n, 0, 0)),
        compiler_params=pltpu.CompilerParams(
            dimension_semantics=("parallel", "arbitrary")),
    )

    if 2 * HW * HW * 4 <= _TOEPLITZ_BYTES_BUDGET:
        # Dense (2*HW, HW) Toeplitz matrix applying the zero-padded KxK conv
        # (both channels) in a single lane-dense MXU matmul.
        hw = jnp.arange(HW)
        hi, wi = (hw // W)[:, None], (hw % W)[:, None]   # input pixel  (HW, 1)
        ho, wo = (hw // W)[None, :], (hw % W)[None, :]   # output pixel (1, HW)
        dh = hi - ho + p
        dw = wi - wo + p
        valid = (dh >= 0) & (dh < K) & (dw >= 0) & (dw < K)
        dh_c = jnp.clip(dh, 0, K - 1)
        dw_c = jnp.clip(dw, 0, K - 1)
        m_avg = jnp.where(valid, w_avg[dh_c, dw_c], 0.0)          # (HW, HW)
        m_max = jnp.where(valid, w_max[dh_c, dw_c], 0.0)          # (HW, HW)
        toep = jnp.concatenate([m_avg, m_max], axis=0)            # (2*HW, HW)

        out_flat = pl.pallas_call(
            _sa_toeplitz_kernel,
            in_specs=[
                pl.BlockSpec((2 * HW, HW), lambda n, c: (0, 0)),   # conv matrix
                pl.BlockSpec((1, ct, HW), lambda n, c: (n, c, 0)),  # x chunk
            ],
            scratch_shapes=[
                pltpu.VMEM((1, HW), jnp.float32),        # running channel sum
                pltpu.VMEM((1, HW), jnp.float32),        # running channel max
            ],
            **common,
        )(toep, x_flat)
    else:
        # Large feature maps: banded (per-tap-row) Toeplitz matmuls over a
        # zero-padded VMEM scratch.
        Hp, Wp = H + 2 * p, W + 2 * p
        j = jnp.arange(Wp)[:, None]            # padded-column index
        wc = jnp.arange(W)[None, :]            # output-column index
        kw_off = j - wc                        # (Wp, W) tap offset
        valid = (kw_off >= 0) & (kw_off < K)
        kw_idx = jnp.clip(kw_off, 0, K - 1)
        bands = []
        for kh in range(K):
            b_avg = jnp.where(valid, w_avg[kh][kw_idx], 0.0)       # (Wp, W)
            b_max = jnp.where(valid, w_max[kh][kw_idx], 0.0)       # (Wp, W)
            bands.append(jnp.concatenate([b_avg, b_max], axis=0))  # (2*Wp, W)
        band_w = jnp.stack(bands, axis=0)                          # (K, 2*Wp, W)

        kernel = functools.partial(_sa_banded_kernel,
                                   H=H, W=W, K=K, p=p, Wp=Wp)
        out_flat = pl.pallas_call(
            kernel,
            in_specs=[
                pl.BlockSpec((K, 2 * Wp, W), lambda n, c: (0, 0, 0)),
                pl.BlockSpec((1, ct, HW), lambda n, c: (n, c, 0)),
            ],
            scratch_shapes=[
                pltpu.VMEM((1, HW), jnp.float32),        # running channel sum
                pltpu.VMEM((1, HW), jnp.float32),        # running channel max
                pltpu.VMEM((Hp, 2 * Wp), jnp.float32),   # padded [sum | max]
            ],
            **common,
        )(band_w, x_flat)

    return out_flat.reshape(N, 1, H, W)


def _reference(x, weight):
    # Pure-JAX reference matching the PyTorch forward exactly.
    avg = jnp.mean(x, axis=1, keepdims=True)
    mx = jnp.max(x, axis=1, keepdims=True)
    cat = jnp.concatenate([avg, mx], axis=1)
    y = jax.lax.conv_general_dilated(
        cat, weight, window_strides=(1, 1), padding="SAME",
        dimension_numbers=("NCHW", "OIHW", "NCHW"),
        precision=jax.lax.Precision.HIGHEST)
    return jax.nn.sigmoid(y)


if __name__ == "__main__":
    key = jax.random.PRNGKey(0)
    kx, kw = jax.random.split(key)

    N, C, H, W = 2, 4, 16, 16
    K = 7
    x = jax.random.normal(kx, (N, C, H, W), dtype=jnp.float32)

    # Conv weight (out=1, in=2, K, K), no bias, torch-style uniform init.
    fan_in = 2 * K * K
    bound = 1.0 / math.sqrt(fan_in)
    weight = jax.random.uniform(
        kw, (1, 2, K, K), dtype=jnp.float32, minval=-bound, maxval=bound)

    out = jax.block_until_ready(spatial_attention(x, weight))
    ref = jax.block_until_ready(_reference(x, weight))

    assert out.shape == (N, 1, H, W), out.shape
    # Tolerance covers summation reorder + MXU accumulation differences.
    assert jnp.allclose(out, ref, atol=1e-4, rtol=1e-4), (
        float(jnp.max(jnp.abs(out - ref))))

    print("KERNEL_OK")
</pallas_src>

<mosaic_0001>
module attributes {stable_mosaic.version = 11 : i64} {
  func.func @_sa_toeplitz_kernel(%arg0: i32, %arg1: i32, %arg2: memref<512x256xf32, #tpu.memory_space<vmem>>, %arg3: memref<1x4x256xf32, #tpu.memory_space<vmem>>, %arg4: memref<1x1x256xf32, #tpu.memory_space<vmem>>, %arg5: memref<1x256xf32, #tpu.memory_space<vmem>>, %arg6: memref<1x256xf32, #tpu.memory_space<vmem>>) attributes {dimension_semantics = [#tpu.dimension_semantics<parallel>, #tpu.dimension_semantics<arbitrary>], iteration_bounds = array<i64: 2, 1>, scalar_prefetch = 0 : i64, scratch_operands = 2 : i64, tpu.core_type = #tpu.core_type<tc>, window_params = [{pipeline_mode = #tpu.pipeline_mode<synchronous>, transform_indices = @transform_0, window_bounds = array<i64: 512, 256>}, {transform_indices = @transform_1, window_bounds = array<i64: 1, 4, 256>}, {transform_indices = @transform_2, window_bounds = array<i64: 1, 1, 256>}]} {
    %c0 = arith.constant 0 : index
    %c0_0 = arith.constant 0 : index
    %c0_1 = arith.constant 0 : index
    %0 = vector.load %arg3[%c0, %c0_0, %c0_1] : memref<1x4x256xf32, #tpu.memory_space<vmem>>, vector<1x4x256xf32>
    %1 = vector.shape_cast %0 : vector<1x4x256xf32> to vector<4x256xf32>
    %cst = arith.constant dense<0.000000e+00> : vector<256xf32>
    %2 = vector.multi_reduction <add>, %1, %cst [0] : vector<4x256xf32> to vector<256xf32>
    %3 = vector.shape_cast %2 : vector<256xf32> to vector<1x256xf32>
    %cst_2 = arith.constant dense<0xFF800000> : vector<256xf32>
    %4 = vector.multi_reduction <maximumf>, %1, %cst_2 [0] : vector<4x256xf32> to vector<256xf32>
    %5 = vector.shape_cast %4 : vector<256xf32> to vector<1x256xf32>
    %c0_i32 = arith.constant 0 : i32
    %6 = arith.cmpi eq, %arg1, %c0_i32 : i32
    %7 = arith.extui %6 : i1 to i32
    %c0_i32_3 = arith.constant 0 : i32
    %8 = arith.cmpi ne, %7, %c0_i32_3 : i32
    scf.if %8 {
      %c0_8 = arith.constant 0 : index
      %c0_9 = arith.constant 0 : index
      %15 = vector.load %arg5[%c0_8, %c0_9] : memref<1x256xf32, #tpu.memory_space<vmem>>, vector<1x256xf32>
      tpu.vector_store %arg5[%c0_8, %c0_9], %3 {strides = array<i32>} : memref<1x256xf32, #tpu.memory_space<vmem>>, vector<1x256xf32>,
      %c0_10 = arith.constant 0 : index
      %c0_11 = arith.constant 0 : index
      %16 = vector.load %arg6[%c0_10, %c0_11] : memref<1x256xf32, #tpu.memory_space<vmem>>, vector<1x256xf32>
      tpu.vector_store %arg6[%c0_10, %c0_11], %5 {strides = array<i32>} : memref<1x256xf32, #tpu.memory_space<vmem>>, vector<1x256xf32>,
    } else {
    }
    %c0_i32_4 = arith.constant 0 : i32
    %9 = arith.cmpi sgt, %arg1, %c0_i32_4 : i32
    %10 = arith.extui %9 : i1 to i32
    %c0_i32_5 = arith.constant 0 : i32
    %11 = arith.cmpi ne, %10, %c0_i32_5 : i32
    scf.if %11 {
      %c0_8 = arith.constant 0 : index
      %c0_9 = arith.constant 0 : index
      %15 = vector.load %arg5[%c0_8, %c0_9] : memref<1x256xf32, #tpu.memory_space<vmem>>, vector<1x256xf32>
      %16 = arith.addf %15, %3 : vector<1x256xf32>
      %c0_10 = arith.constant 0 : index
      %c0_11 = arith.constant 0 : index
      %17 = vector.load %arg5[%c0_10, %c0_11] : memref<1x256xf32, #tpu.memory_space<vmem>>, vector<1x256xf32>
      tpu.vector_store %arg5[%c0_10, %c0_11], %16 {strides = array<i32>} : memref<1x256xf32, #tpu.memory_space<vmem>>, vector<1x256xf32>,
      %c0_12 = arith.constant 0 : index
      %c0_13 = arith.constant 0 : index
      %18 = vector.load %arg6[%c0_12, %c0_13] : memref<1x256xf32, #tpu.memory_space<vmem>>, vector<1x256xf32>
      %19 = arith.maximumf %18, %5 : vector<1x256xf32>
      %c0_14 = arith.constant 0 : index
      %c0_15 = arith.constant 0 : index
      %20 = vector.load %arg6[%c0_14, %c0_15] : memref<1x256xf32, #tpu.memory_space<vmem>>, vector<1x256xf32>
      tpu.vector_store %arg6[%c0_14, %c0_15], %19 {strides = array<i32>} : memref<1x256xf32, #tpu.memory_space<vmem>>, vector<1x256xf32>,
    } else {
    }
    %c0_i32_6 = arith.constant 0 : i32
    %12 = arith.cmpi eq, %arg1, %c0_i32_6 : i32
    %13 = arith.extui %12 : i1 to i32
    %c0_i32_7 = arith.constant 0 : i32
    %14 = arith.cmpi ne, %13, %c0_i32_7 : i32
    scf.if %14 {
      %c0_8 = arith.constant 0 : index
      %c0_9 = arith.constant 0 : index
      %15 = vector.load %arg5[%c0_8, %c0_9] : memref<1x256xf32, #tpu.memory_space<vmem>>, vector<1x256xf32>
      %c0_10 = arith.constant 0 : index
      %c0_11 = arith.constant 0 : index
      %16 = vector.load %arg6[%c0_10, %c0_11] : memref<1x256xf32, #tpu.memory_space<vmem>>, vector<1x256xf32>
      %17 = tpu.concatenate %15, %16 in 1 : vector<1x256xf32>, vector<1x256xf32> -> vector<1x512xf32>
      %c0_12 = arith.constant 0 : index
      %c0_13 = arith.constant 0 : index
      %18 = vector.load %arg2[%c0_12, %c0_13] : memref<512x256xf32, #tpu.memory_space<vmem>>, vector<512x256xf32>
      %cst_14 = arith.constant dense<0.000000e+00> : vector<1x256xf32>
      %19 = tpu.matmul %17, %18, %cst_14 {dimension_numbers = #tpu.dot_dimension_numbers<[1], [0], [0], [1], [0, 0, 1, 1], [], []>, precision = #tpu.contract_precision<fp32>} : vector<1x512xf32>, vector<512x256xf32>, vector<1x256xf32> -> vector<1x256xf32>
      %20 = arith.negf %19 : vector<1x256xf32>
      %21 = math.exp %20 : vector<1x256xf32>
      %cst_15 = arith.constant 1.000000e+00 : f32
      %22 = vector.broadcast %cst_15 : f32 to vector<1x256xf32>
      %23 = arith.addf %22, %21 : vector<1x256xf32>
      %24 = arith.divf %22, %23 : vector<1x256xf32>
      %c0_16 = arith.constant 0 : index
      %c0_17 = arith.constant 0 : index
      %c0_18 = arith.constant 0 : index
      %25 = vector.load %arg4[%c0_16, %c0_17, %c0_18] : memref<1x1x256xf32, #tpu.memory_space<vmem>>, vector<1x1x256xf32>
      %26 = vector.shape_cast %25 : vector<1x1x256xf32> to vector<1x256xf32>
      %27 = vector.shape_cast %24 : vector<1x256xf32> to vector<1x1x256xf32>
      tpu.vector_store %arg4[%c0_16, %c0_17, %c0_18], %27 {strides = array<i32>} : memref<1x1x256xf32, #tpu.memory_space<vmem>>, vector<1x1x256xf32>,
    } else {
    }
    return
  }
  func.func @transform_0(%arg0: i32, %arg1: i32) -> (i32, i32) {
    %c0_i32 = arith.constant 0 : i32
    %c0_i32_0 = arith.constant 0 : i32
    %c0_i32_1 = arith.constant 0 : i32
    return %c0_i32, %c0_i32_0 : i32, i32
  }
  func.func @transform_1(%arg0: i32, %arg1: i32) -> (i32, i32, i32) {
    %c0_i32 = arith.constant 0 : i32
    %c0_i32_0 = arith.constant 0 : i32
    return %arg0, %arg1, %c0_i32 : i32, i32, i32
  }
  func.func @transform_2(%arg0: i32, %arg1: i32) -> (i32, i32, i32) {
    %c0_i32 = arith.constant 0 : i32
    %c0_i32_0 = arith.constant 0 : i32
    %c0_i32_1 = arith.constant 0 : i32
    return %arg0, %c0_i32, %c0_i32_0 : i32, i32, i32
  }
}

</mosaic_0001>

<bundles_post_ra>
// kernel: spatial_attention.1
= control target key start
LH: loop header
LB: loop body
LE: loop exit
PB: predicated region body
PF: predicated region fallthrough
CT: control target
= control target key end

     0   :  { %s3212_s9 = smov 0   ;;  %s3214_s10 = smov 0   ;;  %s6105_s0 = inlined_call_operand.vmem [shape: f32[512,256], index: 0, kind: input, shape index: {}]   ;;  %s6106_s1 = inlined_call_operand.vmem [shape: f32[2,4,256], index: 1, kind: input, shape index: {}]   ;;  %s6107_s2 = inlined_call_operand.vmem [shape: f32[2,1,256], index: 2, kind: output, shape index: {}]  }
   0x1   :  { %s3216_s11 = smov 0  }
   0x2 LB: > { %s24_s12 = sadd.s32 1, %s3190_s10  ;;  %p3129_p0 = scmp.ge.s32.totalorder %s3194_s11, 1  ;;  %s3194_s11 = sphi %s3216_s11, %s12_s11   ;;  %s3190_s10 = sphi %s3214_s10, %s7317_s10   ;;  %s3186_s9 = sphi %s3212_s9, %s7316_s9  }
   0x3   : > { %p26_p1 = scmp.ge.s32.totalorder %s24_s12, 2  ;;  %p130_p2 = scmp.lt.s32.totalorder %s3194_s11, 3 }
   0x5   : > { %s7319_s12 = smov (%p26_p1, %s24_s12), 0  ;;  %p131_p3 = pnand %p3129_p0, %p130_p2 }
   0x7   : > { %134 = sbr.rel (%p131_p3) target bundleno = 703 (0x2bf), region = 28 }
   0xc   : > { %v355_v0 = vld [vmem:[%s6105_s0 + $0xf8] sm:$0xff]  ;;  %v354_v1 = vld [vmem:[%s6105_s0 + $0xf0] sm:$0xff]  ;;  %v353_v2 = vld [vmem:[%s6105_s0 + $0xe8] sm:$0xff]  ;;  %p155_p4 = scmp.lt.s32.totalorder %s3186_s9, 1  ;;  %vm172_vm0 = vcmask 1043456  }
   0xd   : > { %v3241_v3 = vand.u32 4294901760, %v355_v0  ;;  %v3243_v4 = vand.u32 4294901760, %v354_v1  ;;  %v3245_v5 = vand.u32 4294901760, %v353_v2  ;;  %v352_v6 = vld [vmem:[%s6105_s0 + $0xe0] sm:$0xff]  ;;  %v351_v7 = vld [vmem:[%s6105_s0 + $0xd8] sm:$0xff]  ;;  %v350_v8 = vld [vmem:[%s6105_s0 + $0xd0] sm:$0xff] }
   0xe   : > { %v3256_v9 = vand.u32 4294901760, %v352_v6  ;;  %v3258_v10 = vand.u32 4294901760, %v351_v7  ;;  %v3260_v11 = vand.u32 4294901760, %v350_v8  ;;  %v349_v12 = vld [vmem:[%s6105_s0 + $0xc8] sm:$0xff]  ;;  %v348_v13 = vld [vmem:[%s6105_s0 + $0xc0] sm:$0xff]  ;;  %v3271_v14 = vld [vmem:[%s6105_s0 + $0xb8] sm:$0xff] }
   0xf   : > { %453 = vmatprep.subr.mxu0 %v3241_v3  ;;  %v3274_v16 = vand.u32 4294901760, %v349_v12  ;;  %v3276_v17 = vand.u32 4294901760, %v348_v13  ;;  %v3279_v18 = vand.u32 4294901760, %v3271_v14  ;;  %v3282_v19 = vsub.f32 %v355_v0, %v3241_v3  ;;  %v3287_v20 = vld [vmem:[%s6105_s0 + $0xb0] sm:$0xff]  ;;  %v3292_v21 = vld [vmem:[%s6105_s0 + $0xa8] sm:$0xff]  ;;  %v3297_v22 = vld [vmem:[%s6105_s0 + $0xa0] sm:$0xff] }
  0x10   : > { %455 = vmatpush1.msra.mxu0 %v3243_v4  ;;  %v3301_v23 = vand.u32 4294901760, %v3287_v20  ;;  %v3304_v24 = vsub.f32 %v354_v1, %v3243_v4  ;;  %v3307_v25 = vand.u32 4294901760, %v3292_v21  ;;  %v3310_v26 = vsub.f32 %v353_v2, %v3245_v5  ;;  %v3315_v27 = vld [vmem:[%s6105_s0 + $0x98] sm:$0xff]  ;;  %v3320_v28 = vld [vmem:[%s6105_s0 + $0x90] sm:$0xff]  ;;  %v3325_v29 = vld [vmem:[%s6105_s0 + $0x88] sm:$0xff]  ;;  %s7321_s9 = smov (!%p155_p4, %s3186_s9), 1 }
  0x11   : > { %6524 = vst [vmem:[#allocation4_spill] sm:$0xff] %v3282_v19  ;;  %457 = vmatprep.subr.mxu0 %v3245_v5  ;;  %v6121_v30 = vand.u32 4294901760, %v3282_v19  ;;  %v3330_v31 = vand.u32 4294901760, %v3297_v22  ;;  %v3333_v32 = vsub.f32 %v352_v6, %v3256_v9  ;;  %v3336_v33 = vand.u32 4294901760, %v3315_v27  ;;  %v3350_v38 = vld [vmem:[%s6105_s0 + $0x80] sm:$0xff]  ;;  %v3377_v47 = vld [vmem:[%s6105_s0 + $0x78] sm:$0xff] }
  0x12   : > { %459 = vmatpush1.msra.mxu0 %v3256_v9  ;;  %v6119_v34 = vand.u32 4294901760, %v3304_v24  ;;  %v6118_v35 = vand.u32 4294901760, %v3310_v26  ;;  %v3342_v36 = vsub.f32 %v351_v7, %v3258_v10  ;;  %v3345_v37 = vand.u32 4294901760, %v3320_v28  ;;  %v3390_v52 = vld [vmem:[%s6105_s0 + $0x70] sm:$0xff]  ;;  %v3400_v57 = vld [vmem:[%s6105_s0 + $0x68] sm:$0xff]  ;;  %v3415_v62 = vld [vmem:[%s6105_s0 + $0x60] sm:$0xff] }
  0x13   : > { %461 = vmatprep.subr.mxu0 %v3258_v10  ;;  %v600_v39 = vsub.f32 %v3282_v19, %v6121_v30  ;;  %v6116_v40 = vand.u32 4294901760, %v3333_v32  ;;  %v3358_v41 = vsub.f32 %v350_v8, %v3260_v11  ;;  %v3361_v42 = vand.u32 4294901760, %v3325_v29  ;;  %v3431_v6 = vld [vmem:[%s6105_s0 + $0x58] sm:$0xff]  ;;  %s3137_s15 = sshll.u32 %s7321_s9, 3  ;;  %s3132_s5 = sshll.u32 %s7321_s9, 1 }
  0x14   : > { %463 = vmatpush1.msra.mxu0 %v3260_v11  ;;  %v606_v43 = vsub.f32 %v3304_v24, %v6119_v34  ;;  %v612_v44 = vsub.f32 %v3310_v26, %v6118_v35  ;;  %v6114_v45 = vand.u32 4294901760, %v3342_v36  ;;  %v3372_v46 = vsub.f32 %v349_v12, %v3274_v16  ;;  %v3567_v30 = vld [vmem:[%s6105_s0 + $0x18] sm:$0xff]  ;;  %s163_s22 = scalar_lea.vmem %s6106_s1, %s3137_s15  ;;  %s167_s8 = scalar_lea.vmem %s6107_s2, %s3132_s5 }
  0x15   : > { %465 = vmatprep.subr.mxu0 %v3274_v16  ;;  %v601_v48 = vand.u32 4294901760, %v600_v39  ;;  %v618_v49 = vsub.f32 %v3333_v32, %v6116_v40  ;;  %v6113_v50 = vand.u32 4294901760, %v3358_v41  ;;  %v3385_v51 = vand.u32 4294901760, %v3350_v38  ;;  %v3540_v40 = vld [vmem:[%s6105_s0 + $0x28] sm:$0xff] }
  0x16   : > { %467 = vmatpush1.msra.mxu0 %v3276_v17  ;;  %v607_v53 = vand.u32 4294901760, %v606_v43  ;;  %v613_v54 = vand.u32 4294901760, %v612_v44  ;;  %v624_v55 = vsub.f32 %v3342_v36, %v6114_v45  ;;  %v6111_v56 = vand.u32 4294901760, %v3372_v46  ;;  %v3524_v45 = vld [vmem:[%s6105_s0 + $0x30] sm:$0xff] }
  0x17   : > { %6525 = vst [vmem:[#allocation5_spill] sm:$0xff] %v3385_v51  ;;  %469 = vmatprep.subr.mxu0 %v3279_v18  ;;  %602 = vmatprep.subr.mxu1 %v601_v48  ;;  %v619_v58 = vand.u32 4294901760, %v618_v49  ;;  %v630_v59 = vsub.f32 %v3358_v41, %v6113_v50  ;;  %v3407_v60 = vsub.f32 %v348_v13, %v3276_v17  ;;  %v3410_v61 = vand.u32 4294901760, %v3377_v47 }
  0x18   : > { %471 = vmatpush1.msra.mxu0 %v3301_v23  ;;  %608 = vmatpush1.msra.mxu1 %v607_v53  ;;  %v625_v63 = vand.u32 4294901760, %v624_v55  ;;  %v636_v0 = vsub.f32 %v3372_v46, %v6111_v56  ;;  %v3423_v1 = vsub.f32 %v3271_v14, %v3279_v18  ;;  %v3426_v2 = vand.u32 4294901760, %v3390_v52  ;;  %v3445_v14 = vld [vmem:[%s6105_s0 + $0x50] sm:$0xff] }
  0x19   : > { %6526 = vst [vmem:[#allocation6_spill] sm:$0xff] %v3410_v61  ;;  %473 = vmatprep.subr.mxu0 %v3307_v25  ;;  %614 = vmatprep.subr.mxu1 %v613_v54  ;;  %v631_v7 = vand.u32 4294901760, %v630_v59  ;;  %v6109_v8 = vand.u32 4294901760, %v3407_v60  ;;  %v3437_v12 = vsub.f32 %v3287_v20, %v3301_v23  ;;  %v3440_v13 = vand.u32 4294901760, %v3400_v57 }
  0x1a   : > { %6527 = vst [vmem:[#allocation7_spill] sm:$0xff] %v3423_v1  ;;  %6528 = vst [vmem:[#allocation8_spill] sm:$0xff] %v3426_v2  ;;  %475 = vmatpush1.msra.mxu0 %v3330_v31  ;;  %620 = vmatpush1.msra.mxu1 %v619_v58  ;;  %v637_v39 = vand.u32 4294901760, %v636_v0  ;;  %v6108_v43 = vand.u32 4294901760, %v3423_v1  ;;  %v3451_v44 = vsub.f32 %v3292_v21, %v3307_v25  ;;  %v3454_v20 = vand.u32 4294901760, %v3415_v62  ;;  %v3471_v21 = vld [vmem:[%s6105_s0 + $0x48] sm:$0xff] }
  0x1b   : > { %6529 = vst [vmem:[#allocation9_spill] sm:$0xff] %v3437_v12  ;;  %6530 = vst [vmem:[#allocation10_spill] sm:$0xff] %v3440_v13  ;;  %477 = vmatprep.subr.mxu0 %v3336_v33  ;;  %626 = vmatprep.subr.mxu1 %v625_v63  ;;  %v642_v48 = vsub.f32 %v3407_v60, %v6109_v8  ;;  %v6110_v49 = vand.u32 4294901760, %v3437_v12  ;;  %v3463_v53 = vsub.f32 %v3297_v22, %v3330_v31 }
  0x1c   : > { %6531 = vst [vmem:[#allocation11_spill] sm:$0xff] %v3451_v44  ;;  %6532 = vst [vmem:[#allocation12_spill] sm:$0xff] %v3454_v20  ;;  %v3466_v54 = vand.u32 4294901760, %v3431_v6  ;;  %479 = vmatpush1.msra.mxu0 %v3345_v37  ;;  %632 = vmatpush1.msra.mxu1 %v631_v7  ;;  %v648_v55 = vsub.f32 %v3423_v1, %v6108_v43  ;;  %v6112_v58 = vand.u32 4294901760, %v3451_v44  ;;  %v3483_v59 = vand.u32 4294901760, %v3445_v14 }
  0x1d   : > { %6533 = vst [vmem:[#allocation13_spill] sm:$0xff] %v3463_v53  ;;  %v3480_v22 = vsub.f32 %v3315_v27, %v3336_v33  ;;  %481 = vmatprep.subr.mxu0 %v3361_v42  ;;  %638 = vmatprep.subr.mxu1 %v637_v39  ;;  %v643_v63 = vand.u32 4294901760, %v642_v48  ;;  %v654_v0 = vsub.f32 %v3437_v12, %v6110_v49  ;;  %v6115_v7 = vand.u32 4294901760, %v3463_v53  ;;  %v3497_v27 = vld [vmem:[%s6105_s0 + $0x40] sm:$0xff] }
  0x1e   : > { %6534 = vst [vmem:[#allocation14_spill] sm:$0xff] %v3466_v54  ;;  %6536 = vst [vmem:[#allocation16_spill] sm:$0xff] %v3483_v59  ;;  %v3492_v43 = vsub.f32 %v3320_v28, %v3345_v37  ;;  %483 = vmatpush1.msra.mxu0 %v3385_v51  ;;  %v649_v8 = vand.u32 4294901760, %v648_v55  ;;  %v660_v39 = vsub.f32 %v3451_v44, %v6112_v58  ;;  %v3505_v49 = vand.u32 4294901760, %v3471_v21  ;;  %v3510_v28 = vld [vmem:[%s6105_s0 + $0x38] sm:$0xff] }
  0x1f   : > { %6535 = vst [vmem:[#allocation15_spill] sm:$0xff] %v3480_v22  ;;  %v6117_v48 = vand.u32 4294901760, %v3480_v22  ;;  %644 = vmatpush1.msra.mxu1 %v643_v63  ;;  %485 = vmatprep.subr.mxu0 %v3410_v61  ;;  %v655_v56 = vand.u32 4294901760, %v654_v0  ;;  %v666_v55 = vsub.f32 %v3463_v53, %v6115_v7  ;;  %v3519_v50 = vsub.f32 %v3325_v29, %v3361_v42  ;;  %v3662_v53 = vld [vmem:[%s6105_s0 + $0x1f0] sm:$0xff] }
  0x20   : > { %6537 = vst [vmem:[#allocation17_spill] sm:$0xff] %v3492_v43  ;;  %6538 = vst [vmem:[#allocation18_spill] sm:$0xff] %v3505_v49  ;;  %v6120_v58 = vand.u32 4294901760, %v3492_v43  ;;  %650 = vmatprep.subr.mxu1 %v649_v8  ;;  %487 = vmatpush1.msra.mxu0 %v3426_v2  ;;  %v661_v63 = vand.u32 4294901760, %v660_v39  ;;  %v3531_v7 = vand.u32 4294901760, %v3497_v27  ;;  %v3535_v29 = vsub.f32 %v3350_v38, %v3385_v51  ;;  %v3553_v38 = vld [vmem:[%s6105_s0 + $0x20] sm:$0xff] }
  0x21   : > { %6539 = vst [vmem:[#allocation19_spill] sm:$0xff] %v3519_v50  ;;  %v672_v0 = vsub.f32 %v3480_v22, %v6117_v48  ;;  %656 = vmatpush1.msra.mxu1 %v655_v56  ;;  %489 = vmatprep.subr.mxu0 %v3440_v13  ;;  %v667_v8 = vand.u32 4294901760, %v666_v55  ;;  %v6125_v48 = vand.u32 4294901760, %v3519_v50  ;;  %v3548_v35 = vand.u32 4294901760, %v3510_v28 }
  0x22   : > { %6540 = vst [vmem:[#allocation20_spill] sm:$0xff] %v3531_v7  ;;  %6541 = vst [vmem:[#allocation21_spill] sm:$0xff] %v3535_v29  ;;  %v678_v39 = vsub.f32 %v3492_v43, %v6120_v58  ;;  %662 = vmatprep.subr.mxu1 %v661_v63  ;;  %491 = vmatpush1.msra.mxu0 %v3454_v20  ;;  %v6126_v55 = vand.u32 4294901760, %v3535_v29  ;;  %v3559_v34 = vsub.f32 %v3377_v47, %v3410_v61  ;;  %v6649_v61 = vlaneseq }
  0x23   : > { %6542 = vst [vmem:[#allocation22_spill] sm:$0xff] %v3548_v35  ;;  %v673_v56 = vand.u32 4294901760, %v672_v0  ;;  %v3562_v58 = vand.u32 4294901760, %v3524_v45  ;;  %668 = vmatpush1.msra.mxu1 %v667_v8  ;;  %493 = vmatprep.subr.mxu0 %v3466_v54  ;;  %v684_v0 = vsub.f32 %v3519_v50, %v6125_v48  ;;  %v3575_v47 = vsub.f32 %v3390_v52, %v3426_v2  ;;  %v3595_v52 = vld [vmem:[%s6105_s0 + $0x10] sm:$0xff] }
  0x24   : > { %6543 = vst [vmem:[#allocation23_spill] sm:$0xff] %v3559_v34  ;;  %v679_v63 = vand.u32 4294901760, %v678_v39  ;;  %v3578_v15 = vand.u32 4294901760, %v3540_v40  ;;  %495 = vmatpush1.msra.mxu0 %v3483_v59  ;;  %v690_v8 = vsub.f32 %v3535_v29, %v6126_v55  ;;  %v3587_v43 = vsub.f32 %v3400_v57, %v3440_v13  ;;  %v3609_v29 = vld [vmem:[%s6105_s0 + $0x8] sm:$0xff] }
  0x25   : > { %6544 = vst [vmem:[#allocation24_spill] sm:$0xff] %v3562_v58  ;;  %6545 = vst [vmem:[#allocation25_spill] sm:$0xff] %v3575_v47  ;;  %674 = vmatprep.subr.mxu1 %v673_v56  ;;  %v3590_v48 = vand.u32 4294901760, %v3553_v38  ;;  %497 = vmatprep.subr.mxu0 %v3505_v49  ;;  %v685_v56 = vand.u32 4294901760, %v684_v0  ;;  %v3601_v39 = vsub.f32 %v3415_v62, %v3454_v20  ;;  %v3604_v57 = vand.u32 4294901760, %v3567_v30 }
  0x26   : > { %6546 = vst [vmem:[#allocation26_spill] sm:$0xff] %v3578_v15  ;;  %6547 = vst [vmem:[#allocation27_spill] sm:$0xff] %v3587_v43  ;;  %680 = vmatpush1.msra.mxu1 %v679_v63  ;;  %499 = vmatpush1.msra.mxu0 %v3531_v7  ;;  %v691_v63 = vand.u32 4294901760, %v690_v8  ;;  %v6551_v50 = vand.u32 4294901760, %v3559_v34  ;;  %v6143_v55 = vand.u32 4294901760, %v3587_v43  ;;  %v3618_v62 = vsub.f32 %v3431_v6, %v3466_v54  ;;  %v3635_v6 = vld [vmem:[%s6105_s0] sm:$0xff] }
  0x27   : > { %6548 = vst [vmem:[#allocation28_spill] sm:$0xff] %v3590_v48  ;;  %6549 = vst [vmem:[#allocation29_spill] sm:$0xff] %v3601_v39  ;;  %686 = vmatprep.subr.mxu1 %v685_v56  ;;  %501 = vmatprep.subr.mxu0 %v3548_v35  ;;  %v6553_v22 = vand.u32 4294901760, %v3575_v47  ;;  %v3626_v8 = vand.u32 4294901760, %v3595_v52  ;;  %v3196_v2 = vmov 1966171168  }
  0x28   : > { %6550 = vst [vmem:[#allocation30_spill] sm:$0xff] %v3604_v57  ;;  %v696_v0 = vsub.f32 %v3559_v34, %v6551_v50  ;;  %6552 = vst [vmem:[#allocation31_spill] sm:$0xff] %v3618_v62  ;;  %v3630_v50 = vsub.f32 %v3445_v14, %v3483_v59  ;;  %692 = vmatpush1.msra.mxu1 %v691_v63  ;;  %503 = vmatpush1.msra.mxu0 %v3562_v58  ;;  %v3648_v14 = vld [vmem:[%s6105_s0 + $0x1f8] sm:$0xff]  ;;  %v6557_v63 = vand.u32 4294901760, %v3601_v39  ;;  %v3678_v59 = vld [vmem:[%s6105_s0 + $0x1e8] sm:$0xff] }
  0x29   : > { %v702_v20 = vsub.f32 %v3575_v47, %v6553_v22  ;;  %6554 = vst [vmem:[#allocation32_spill] sm:$0xff] %v3626_v8  ;;  %v708_v22 = vsub.f32 %v3587_v43, %v6143_v55  ;;  %v3643_v47 = vand.u32 4294901760, %v3609_v29  ;;  %505 = vmatprep.subr.mxu0 %v3578_v15  ;;  %v3657_v55 = vsub.f32 %v3471_v21, %v3505_v49 }
  0x2a   : > { %6555 = vst [vmem:[#allocation33_spill] sm:$0xff] %v3630_v50  ;;  %v697_v56 = vand.u32 4294901760, %v696_v0  ;;  %v714_v0 = vsub.f32 %v3601_v39, %v6557_v63  ;;  %507 = vmatpush1.msra.mxu0 %v3590_v48  ;;  %v3669_v63 = vand.u32 4294901760, %v3635_v6  ;;  %v3673_v21 = vsub.f32 %v3497_v27, %v3531_v7  ;;  %v3691_v27 = vld [vmem:[%s6105_s0 + $0x1e0] sm:$0xff] }
  0x2b   : > { %6556 = vst [vmem:[#allocation34_spill] sm:$0xff] %v3643_v47  ;;  %v703_v34 = vand.u32 4294901760, %v702_v20  ;;  %6558 = vst [vmem:[#allocation35_spill] sm:$0xff] %v3657_v55  ;;  %v709_v43 = vand.u32 4294901760, %v708_v22  ;;  %v6559_v20 = vand.u32 4294901760, %v3618_v62  ;;  %509 = vmatprep.subr.mxu0 %v3604_v57  ;;  %v6562_v22 = vand.u32 4294901760, %v3630_v50 }
  0x2c   : > { %698 = vmatprep.subr.mxu1 %v697_v56  ;;  %6560 = vst [vmem:[#allocation36_spill] sm:$0xff] %v3669_v63  ;;  %6561 = vst [vmem:[#allocation37_spill] sm:$0xff] %v3673_v21  ;;  %v715_v56 = vand.u32 4294901760, %v714_v0  ;;  %v3686_v39 = vand.u32 4294901760, %v3648_v14  ;;  %511 = vmatpush1.msra.mxu0 %v3626_v8  ;;  %v3697_v0 = vsub.f32 %v3510_v28, %v3548_v35  ;;  %v6569_v35 = vand.u32 4294901760, %v3673_v21 }
  0x2d   : > { %v720_v54 = vsub.f32 %v3618_v62, %v6559_v20  ;;  %704 = vmatpush1.msra.mxu1 %v703_v34  ;;  %v726_v20 = vsub.f32 %v3630_v50, %v6562_v22  ;;  %v3700_v22 = vand.u32 4294901760, %v3662_v53  ;;  %v3705_v62 = vld [vmem:[%s6105_s0 + $0x1d8] sm:$0xff]  ;;  %513 = vmatprep.subr.mxu0 %v3643_v47  ;;  %v3713_v28 = vsub.f32 %v3524_v45, %v3562_v58  ;;  %v3733_v45 = vld [vmem:[%s6105_s0 + $0x1d0] sm:$0xff] }
  0x2e   : > { %6563 = vst [vmem:[#allocation38_spill] sm:$0xff] %v3686_v39  ;;  %710 = vmatprep.subr.mxu1 %v709_v43  ;;  %6564 = vst [vmem:[#allocation39_spill] sm:$0xff] %v3697_v0  ;;  %v6566_v43 = vand.u32 4294901760, %v3657_v55  ;;  %v3716_v34 = vand.u32 4294901760, %v3678_v59  ;;  %515 = vmatpush1.msra.mxu0 %v3669_v63  ;;  %v3725_v49 = vsub.f32 %v3540_v40, %v3578_v15  ;;  %v3742_v40 = vand.u32 4294901760, %v3705_v62 }
  0x2f   : > { %v721_v7 = vand.u32 4294901760, %v720_v54  ;;  %6565 = vst [vmem:[#allocation40_spill] sm:$0xff] %v3700_v22  ;;  %716 = vmatpush1.msra.mxu1 %v715_v56  ;;  %v727_v50 = vand.u32 4294901760, %v726_v20  ;;  %6567 = vst [vmem:[#allocation41_spill] sm:$0xff] %v3713_v28  ;;  %v738_v56 = vsub.f32 %v3673_v21, %v6569_v35  ;;  %517 = vmatprep.subr.mxu0 %v3686_v39  ;;  %v3747_v21 = vld [vmem:[%s6105_s0 + $0x1c8] sm:$0xff]  ;;  %v3764_v58 = vand.u32 4294901760, %v3733_v45 }
  0x30   : > { %v732_v54 = vsub.f32 %v3657_v55, %v6566_v43  ;;  %6568 = vst [vmem:[#allocation42_spill] sm:$0xff] %v3716_v34  ;;  %6570 = vst [vmem:[#allocation43_spill] sm:$0xff] %v3725_v49  ;;  %v3728_v43 = vand.u32 4294901760, %v3691_v27  ;;  %v3739_v20 = vsub.f32 %v3553_v38, %v3590_v48  ;;  %519 = vmatpush2.msra.mxu0 %v3700_v22  ;;  %v6174_v35 = vand.u32 4294901760, %v3725_v49 }
  0x31   : > { %722 = vmatprep.subr.mxu1 %v721_v7  ;;  %6573 = vst [vmem:[#allocation46_spill] sm:$0xff] %v3742_v40  ;;  %v739_v55 = vand.u32 4294901760, %v738_v56  ;;  %v3756_v38 = vsub.f32 %v3567_v30, %v3604_v57  ;;  %v6576_v48 = vand.u32 4294901760, %v3713_v28  ;;  %521 = vmatprep.subr.mxu0 %v3716_v34  ;;  %6577 = vst [vmem:[#allocation48_spill] sm:$0xff] %v3764_v58  ;;  %v3773_v30 = vld [vmem:[%s6105_s0 + $0x1c0] sm:$0xff]  ;;  %v209_v12 = vunpack.c.l.s4 %v3196_v2 }
  0x32   : > { %6571 = vst [vmem:[#allocation44_spill] sm:$0xff] %v3728_v43  ;;  %728 = vmatpush1.msra.mxu1 %v727_v50  ;;  %v733_v7 = vand.u32 4294901760, %v732_v54  ;;  %6572 = vst [vmem:[#allocation45_spill] sm:$0xff] %v3739_v20  ;;  %v6574_v50 = vand.u32 4294901760, %v3697_v0  ;;  %523 = vmatpush2.msra.mxu0 %v3728_v43  ;;  %v3795_v56 = vsub.f32 %v3609_v29, %v3643_v47  ;;  %v4240_v1 = vshrl.u32 %v6649_v61, 7 }
  0x33   : > { %6575 = vst [vmem:[#allocation47_spill] sm:$0xff] %v3756_v38  ;;  %v750_v15 = vsub.f32 %v3713_v28, %v6576_v48  ;;  %v756_v48 = vsub.f32 %v3725_v49, %v6174_v35  ;;  %v3781_v28 = vand.u32 4294901760, %v3747_v21  ;;  %525 = vmatprep.subr.mxu0 %v3742_v40  ;;  %v3800_v49 = vld [vmem:[%s6105_s0 + $0x1b0] sm:$0xff]  ;;  %v3811_v29 = vsub.f32 %v3635_v6, %v3669_v63  ;;  %v3816_v35 = vld [vmem:[%s6105_s0 + $0x1a8] sm:$0xff]  ;;  %v3829_v6 = vld [vmem:[%s6105_s0 + $0x1a0] sm:$0xff] }
  0x34   : > { %v744_v54 = vsub.f32 %v3697_v0, %v6574_v50  ;;  %734 = vmatprep.subr.mxu1 %v733_v7  ;;  %v3768_v50 = vsub.f32 %v3595_v52, %v3626_v8  ;;  %v3786_v52 = vld [vmem:[%s6105_s0 + $0x1b8] sm:$0xff]  ;;  %6581 = vst [vmem:[#allocation51_spill] sm:$0xff] %v3795_v56  ;;  %527 = vmatpush2.msra.mxu0 %v3764_v58  ;;  %6650 = vst [vmem:[#allocation96_spill] sm:$0xff] %v4240_v1  ;;  %v210_v51 = vunpack.c.0.s8 %v209_v12 }
  0x35   : > { %740 = vmatpush1.msra.mxu1 %v739_v55  ;;  %6579 = vst [vmem:[#allocation50_spill] sm:$0xff] %v3781_v28  ;;  %v751_v0 = vand.u32 4294901760, %v750_v15  ;;  %v6580_v55 = vand.u32 4294901760, %v3739_v20  ;;  %v757_v8 = vand.u32 4294901760, %v756_v48  ;;  %v6582_v15 = vand.u32 4294901760, %v3756_v38  ;;  %6584 = vst [vmem:[#allocation53_spill] sm:$0xff] %v3811_v29  ;;  %529 = vmatprep.subr.mxu0 %v3781_v28 }
  0x36   : > { %6578 = vst [vmem:[#allocation49_spill] sm:$0xff] %v3768_v50  ;;  %v745_v7 = vand.u32 4294901760, %v744_v54  ;;  %v6585_v48 = vand.u32 4294901760, %v3768_v50  ;;  %v4247_v2 = vsub.s32 %v210_v51, %v4240_v1  ;;  %vm4294_vm1 = vcmp.lt.s32.totalorder %v6649_v61, 256 }
  0x37   : > { %v762_v54 = vsub.f32 %v3739_v20, %v6580_v55  ;;  %v768_v57 = vsub.f32 %v3756_v38, %v6582_v15  ;;  %v3807_v55 = vand.u32 4294901760, %v3773_v30  ;;  %v3824_v20 = vand.u32 4294901760, %v3786_v52  ;;  %v3843_v38 = vld [vmem:[%s6105_s0 + $0x198] sm:$0xff] }
  0x38   : > { %746 = vmatprep.subr.mxu1 %v745_v7  ;;  %v774_v15 = vsub.f32 %v3768_v50, %v6585_v48  ;;  %v3838_v48 = vand.u32 4294901760, %v3800_v49  ;;  %6651 = vst [vmem:[#allocation97_spill] sm:$0xff] %v4247_v2 }
  0x39   : > { %6583 = vst [vmem:[#allocation52_spill] sm:$0xff] %v3807_v55  ;;  %752 = vmatpush1.msra.mxu1 %v751_v0  ;;  %v763_v7 = vand.u32 4294901760, %v762_v54  ;;  %6586 = vst [vmem:[#allocation54_spill] sm:$0xff] %v3824_v20  ;;  %v769_v63 = vand.u32 4294901760, %v768_v57  ;;  %531 = vmatpush2.msra.mxu0 %v3807_v55  ;;  %v3835_v54 = vsub.f32 %v3648_v14, %v3686_v39  ;;  %v6589_v57 = vand.u32 4294901760, %v3795_v56 }
  0x3a   : > { %758 = vmatprep.subr.mxu1 %v757_v8  ;;  %6588 = vst [vmem:[#allocation56_spill] sm:$0xff] %v3838_v48  ;;  %v775_v50 = vand.u32 4294901760, %v774_v15  ;;  %533 = vmatprep.subr.mxu0 %v3824_v20  ;;  %v3851_v14 = vsub.f32 %v3662_v53, %v3700_v22  ;;  %v3854_v0 = vand.u32 4294901760, %v3816_v35  ;;  %v6592_v39 = vand.u32 4294901760, %v3811_v29  ;;  %v3871_v53 = vld [vmem:[%s6105_s0 + $0x190] sm:$0xff] }
  0x3b   : > { %6587 = vst [vmem:[#allocation55_spill] sm:$0xff] %v3835_v54  ;;  %764 = vmatpush1.msra.mxu1 %v763_v7  ;;  %v780_v8 = vsub.f32 %v3795_v56, %v6589_v57  ;;  %535 = vmatpush2.msra.mxu0 %v3838_v48  ;;  %v3863_v15 = vsub.f32 %v3678_v59, %v3716_v34  ;;  %v3866_v57 = vand.u32 4294901760, %v3829_v6  ;;  %v3880_v59 = vand.u32 4294901760, %v3843_v38  ;;  %v3937_v22 = vld [vmem:[%s6105_s0 + $0x170] sm:$0xff] }
  0x3c   : > { %6590 = vst [vmem:[#allocation57_spill] sm:$0xff] %v3851_v14  ;;  %6591 = vst [vmem:[#allocation58_spill] sm:$0xff] %v3854_v0  ;;  %770 = vmatprep.subr.mxu1 %v769_v63  ;;  %v786_v47 = vsub.f32 %v3811_v29, %v6592_v39  ;;  %537 = vmatprep.subr.mxu0 %v3854_v0  ;;  %v3877_v7 = vsub.f32 %v3691_v27, %v3728_v43  ;;  %v3885_v29 = vld [vmem:[%s6105_s0 + $0x188] sm:$0xff]  ;;  %v6599_v43 = vand.u32 4294901760, %v3851_v14 }
  0x3d   : > { %6593 = vst [vmem:[#allocation59_spill] sm:$0xff] %v3863_v15  ;;  %6594 = vst [vmem:[#allocation60_spill] sm:$0xff] %v3866_v57  ;;  %776 = vmatpush1.msra.mxu1 %v775_v50  ;;  %v781_v63 = vand.u32 4294901760, %v780_v8  ;;  %v6597_v50 = vand.u32 4294901760, %v3835_v54  ;;  %v6209_v39 = vand.u32 4294901760, %v3863_v15  ;;  %539 = vmatpush2.msra.mxu0 %v3866_v57  ;;  %v3894_v27 = vsub.f32 %v3705_v62, %v3742_v40  ;;  %v3911_v62 = vld [vmem:[%s6105_s0 + $0x180] sm:$0xff] }
  0x3e   : > { %6595 = vst [vmem:[#allocation61_spill] sm:$0xff] %v3877_v7  ;;  %6596 = vst [vmem:[#allocation62_spill] sm:$0xff] %v3880_v59  ;;  %v787_v56 = vand.u32 4294901760, %v786_v47  ;;  %v798_v34 = vsub.f32 %v3851_v14, %v6599_v43  ;;  %541 = vmatprep.subr.mxu0 %v3880_v59  ;;  %v3902_v47 = vand.u32 4294901760, %v3871_v53  ;;  %v3918_v14 = vand.u32 4294901760, %v3885_v29 }
  0x3f   : > { %v792_v8 = vsub.f32 %v3835_v54, %v6597_v50  ;;  %6598 = vst [vmem:[#allocation63_spill] sm:$0xff] %v3894_v27  ;;  %782 = vmatprep.subr.mxu1 %v781_v63  ;;  %v3906_v50 = vsub.f32 %v3733_v45, %v3764_v58  ;;  %v804_v43 = vsub.f32 %v3863_v15, %v6209_v39  ;;  %v3923_v45 = vld [vmem:[%s6105_s0 + $0x178] sm:$0xff]  ;;  %v6603_v58 = vand.u32 4294901760, %v3877_v7 }
  0x40   : > { %6600 = vst [vmem:[#allocation64_spill] sm:$0xff] %v3902_v47  ;;  %788 = vmatpush1.msra.mxu1 %v787_v56  ;;  %6602 = vst [vmem:[#allocation66_spill] sm:$0xff] %v3918_v14  ;;  %v799_v54 = vand.u32 4294901760, %v798_v34  ;;  %543 = vmatpush2.msra.mxu0 %v3902_v47  ;;  %v3932_v39 = vsub.f32 %v3747_v21, %v3781_v28  ;;  %v6605_v34 = vand.u32 4294901760, %v3894_v27 }
  0x41   : > { %6601 = vst [vmem:[#allocation65_spill] sm:$0xff] %v3906_v50  ;;  %v793_v63 = vand.u32 4294901760, %v792_v8  ;;  %v810_v56 = vsub.f32 %v3877_v7, %v6603_v58  ;;  %v805_v15 = vand.u32 4294901760, %v804_v43  ;;  %545 = vmatprep.subr.mxu0 %v3918_v14  ;;  %v3944_v58 = vand.u32 4294901760, %v3911_v62  ;;  %v3953_v8 = vld [vmem:[%s6105_s0 + $0x168] sm:$0xff] }
  0x42   : > { %6604 = vst [vmem:[#allocation67_spill] sm:$0xff] %v3932_v39  ;;  %v816_v40 = vsub.f32 %v3894_v27, %v6605_v34  ;;  %v3948_v21 = vsub.f32 %v3773_v30, %v3807_v55  ;;  %v6608_v43 = vand.u32 4294901760, %v3906_v50  ;;  %v3960_v7 = vand.u32 4294901760, %v3923_v45  ;;  %v3965_v30 = vld [vmem:[%s6105_s0 + $0x160] sm:$0xff]  ;;  %v3979_v27 = vld [vmem:[%s6105_s0 + $0x158] sm:$0xff] }
  0x43   : > { %794 = vmatprep.subr.mxu1 %v793_v63  ;;  %6606 = vst [vmem:[#allocation68_spill] sm:$0xff] %v3944_v58  ;;  %v811_v63 = vand.u32 4294901760, %v810_v56  ;;  %547 = vmatpush2.msra.mxu0 %v3944_v58  ;;  %v3971_v56 = vsub.f32 %v3786_v52, %v3824_v20  ;;  %v3987_v52 = vsub.f32 %v3800_v49, %v3838_v48  ;;  %v4007_v49 = vld [vmem:[%s6105_s0 + $0x150] sm:$0xff] }
  0x44   : > { %6607 = vst [vmem:[#allocation69_spill] sm:$0xff] %v3948_v21  ;;  %800 = vmatpush2.msra.mxu1 %v799_v54  ;;  %v822_v34 = vsub.f32 %v3906_v50, %v6608_v43  ;;  %6609 = vst [vmem:[#allocation70_spill] sm:$0xff] %v3960_v7  ;;  %v817_v55 = vand.u32 4294901760, %v816_v40  ;;  %v3974_v43 = vand.u32 4294901760, %v3937_v22  ;;  %v6612_v40 = vand.u32 4294901760, %v3932_v39  ;;  %549 = vmatprep.subr.mxu0 %v3960_v7 }
  0x45   : > { %806 = vmatprep.subr.mxu1 %v805_v15  ;;  %6610 = vst [vmem:[#allocation71_spill] sm:$0xff] %v3971_v56  ;;  %6613 = vst [vmem:[#allocation73_spill] sm:$0xff] %v3987_v52  ;;  %v3990_v54 = vand.u32 4294901760, %v3953_v8  ;;  %v6615_v20 = vand.u32 4294901760, %v3948_v21 }
  0x46   : > { %6611 = vst [vmem:[#allocation72_spill] sm:$0xff] %v3974_v43  ;;  %812 = vmatpush2.msra.mxu1 %v811_v63  ;;  %v823_v15 = vand.u32 4294901760, %v822_v34  ;;  %v828_v50 = vsub.f32 %v3932_v39, %v6612_v40  ;;  %551 = vmatpush2.msra.mxu0 %v3974_v43  ;;  %v3999_v34 = vsub.f32 %v3816_v35, %v3854_v0  ;;  %v4002_v40 = vand.u32 4294901760, %v3965_v30 }
  0x47   : > { %6614 = vst [vmem:[#allocation74_spill] sm:$0xff] %v3990_v54  ;;  %818 = vmatprep.subr.mxu1 %v817_v55  ;;  %v834_v28 = vsub.f32 %v3948_v21, %v6615_v20  ;;  %553 = vmatprep.subr.mxu0 %v3990_v54  ;;  %v4014_v63 = vsub.f32 %v3829_v6, %v3866_v57  ;;  %v4017_v35 = vand.u32 4294901760, %v3979_v27  ;;  %v4022_v21 = vld [vmem:[%s6105_s0 + $0x148] sm:$0xff]  ;;  %v6622_v57 = vand.u32 4294901760, %v3987_v52 }
  0x48   : > { %6616 = vst [vmem:[#allocation75_spill] sm:$0xff] %v3999_v34  ;;  %6617 = vst [vmem:[#allocation76_spill] sm:$0xff] %v4002_v40  ;;  %824 = vmatpush2.msra.mxu1 %v823_v15  ;;  %v829_v55 = vand.u32 4294901760, %v828_v50  ;;  %v6620_v15 = vand.u32 4294901760, %v3971_v56  ;;  %555 = vmatpush2.msra.mxu0 %v4002_v40  ;;  %v4031_v6 = vsub.f32 %v3843_v38, %v3880_v59  ;;  %v4048_v38 = vld [vmem:[%s6105_s0 + $0x140] sm:$0xff] }
  0x49   : > { %6618 = vst [vmem:[#allocation77_spill] sm:$0xff] %v4014_v63  ;;  %6619 = vst [vmem:[#allocation78_spill] sm:$0xff] %v4017_v35  ;;  %v835_v39 = vand.u32 4294901760, %v834_v28  ;;  %v846_v0 = vsub.f32 %v3987_v52, %v6622_v57  ;;  %557 = vmatprep.subr.mxu0 %v4017_v35  ;;  %v4043_v20 = vsub.f32 %v3871_v53, %v3902_v47  ;;  %v6625_v57 = vand.u32 4294901760, %v3999_v34  ;;  %v4060_v53 = vld [vmem:[%s6105_s0 + $0x138] sm:$0xff] }
  0x4a   : > { %v840_v50 = vsub.f32 %v3971_v56, %v6620_v15  ;;  %6621 = vst [vmem:[#allocation79_spill] sm:$0xff] %v4031_v6  ;;  %830 = vmatprep.subr.mxu1 %v829_v55  ;;  %v4039_v15 = vand.u32 4294901760, %v4007_v49  ;;  %v4055_v56 = vand.u32 4294901760, %v4022_v21  ;;  %v4074_v52 = vsub.f32 %v3885_v29, %v3918_v14 }
  0x4b   : > { %6624 = vst [vmem:[#allocation81_spill] sm:$0xff] %v4043_v20  ;;  %836 = vmatpush2.msra.mxu1 %v835_v39  ;;  %v852_v28 = vsub.f32 %v3999_v34, %v6625_v57  ;;  %v847_v47 = vand.u32 4294901760, %v846_v0  ;;  %v6627_v39 = vand.u32 4294901760, %v4014_v63  ;;  %v4079_v34 = vld [vmem:[%s6105_s0 + $0x130] sm:$0xff]  ;;  %v6629_v0 = vand.u32 4294901760, %v4031_v6  ;;  %v4095_v57 = vld [vmem:[%s6105_s0 + $0x128] sm:$0xff] }
  0x4c   : > { %6623 = vst [vmem:[#allocation80_spill] sm:$0xff] %v4039_v15  ;;  %v841_v55 = vand.u32 4294901760, %v840_v50  ;;  %6626 = vst [vmem:[#allocation82_spill] sm:$0xff] %v4055_v56  ;;  %559 = vmatpush2.msra.mxu0 %v4039_v15  ;;  %v4090_v29 = vsub.f32 %v3911_v62, %v3944_v58  ;;  %v4107_v62 = vld [vmem:[%s6105_s0 + $0x120] sm:$0xff] }
  0x4d   : > { %v858_v50 = vsub.f32 %v4014_v63, %v6627_v39  ;;  %6628 = vst [vmem:[#allocation83_spill] sm:$0xff] %v4074_v52  ;;  %v853_v59 = vand.u32 4294901760, %v852_v28  ;;  %v864_v48 = vsub.f32 %v4031_v6, %v6629_v0  ;;  %561 = vmatprep.subr.mxu0 %v4055_v56  ;;  %v4086_v39 = vand.u32 4294901760, %v4048_v38  ;;  %v4121_v6 = vld [vmem:[%s6105_s0 + $0x118] sm:$0xff] }
  0x4e   : > { %842 = vmatprep.subr.mxu1 %v841_v55  ;;  %6631 = vst [vmem:[#allocation85_spill] sm:$0xff] %v4090_v29  ;;  %v6632_v55 = vand.u32 4294901760, %v4043_v20  ;;  %v4102_v63 = vand.u32 4294901760, %v4060_v53 }
  0x4f   : > { %6630 = vst [vmem:[#allocation84_spill] sm:$0xff] %v4086_v39  ;;  %848 = vmatpush2.msra.mxu1 %v847_v47  ;;  %v859_v28 = vand.u32 4294901760, %v858_v50  ;;  %v865_v58 = vand.u32 4294901760, %v864_v48  ;;  %563 = vmatpush2.msra.mxu0 %v4086_v39  ;;  %v4113_v50 = vsub.f32 %v3923_v45, %v3960_v7  ;;  %v6635_v48 = vand.u32 4294901760, %v4074_v52 }
  0x50   : > { %v870_v0 = vsub.f32 %v4043_v20, %v6632_v55  ;;  %6633 = vst [vmem:[#allocation86_spill] sm:$0xff] %v4102_v63  ;;  %854 = vmatprep.subr.mxu1 %v853_v59  ;;  %v4116_v55 = vand.u32 4294901760, %v4079_v34  ;;  %565 = vmatprep.subr.mxu0 %v4102_v63  ;;  %v4130_v45 = vsub.f32 %v3937_v22, %v3974_v43  ;;  %v4133_v47 = vand.u32 4294901760, %v4095_v57  ;;  %v4150_v22 = vld [vmem:[%s6105_s0 + $0x110] sm:$0xff] }
  0x51   : > { %6634 = vst [vmem:[#allocation87_spill] sm:$0xff] %v4113_v50  ;;  %860 = vmatpush2.msra.mxu1 %v859_v28  ;;  %v876_v20 = vsub.f32 %v4074_v52, %v6635_v48  ;;  %v6637_v7 = vand.u32 4294901760, %v4090_v29  ;;  %v4145_v48 = vand.u32 4294901760, %v4107_v62  ;;  %v4156_v28 = vsub.f32 %v3965_v30, %v4002_v40 }
  0x52   : > { %v871_v59 = vand.u32 4294901760, %v870_v0  ;;  %6636 = vst [vmem:[#allocation88_spill] sm:$0xff] %v4130_v45  ;;  %866 = vmatprep.subr.mxu1 %v865_v58  ;;  %567 = vmatpush2.msra.mxu0 %v4116_v55  ;;  %v4142_v0 = vsub.f32 %v3953_v8, %v3990_v54  ;;  %v4159_v8 = vand.u32 4294901760, %v4121_v6  ;;  %v4176_v52 = vsub.f32 %v3979_v27, %v4017_v35  ;;  %v4193_v27 = vld [vmem:[%s6105_s0 + $0x100] sm:$0xff] }
  0x53   : > { %v882_v14 = vsub.f32 %v4090_v29, %v6637_v7  ;;  %6639 = vst [vmem:[#allocation90_spill] sm:$0xff] %v4145_v48  ;;  %v877_v58 = vand.u32 4294901760, %v876_v20  ;;  %569 = vmatprep.subr.mxu0 %v4133_v47  ;;  %6640 = vst [vmem:[#allocation91_spill] sm:$0xff] %v4156_v28  ;;  %v4164_v29 = vld [vmem:[%s6105_s0 + $0x108] sm:$0xff]  ;;  %v6643_v40 = vand.u32 4294901760, %v4130_v45  ;;  %v4256_v12 = vsub.f32 %v4095_v57, %v4133_v47 }
  0x54   : > { %6638 = vst [vmem:[#allocation89_spill] sm:$0xff] %v4142_v0  ;;  %872 = vmatpush2.msra.mxu1 %v871_v59  ;;  %v6641_v59 = vand.u32 4294901760, %v4113_v50  ;;  %v6276_v30 = vand.u32 4294901760, %v4142_v0  ;;  %571 = vmatpush2.msra.mxu0 %v4145_v48  ;;  %6642 = vst [vmem:[#allocation92_spill] sm:$0xff] %v4176_v52  ;;  %v6281_v43 = vand.u32 4294901760, %v4176_v52  ;;  %v4263_v51 = vsub.f32 %v4107_v62, %v4145_v48 }
  0x55   : > { %v883_v20 = vand.u32 4294901760, %v882_v14  ;;  %878 = vmatprep.subr.mxu1 %v877_v58  ;;  %v894_v54 = vsub.f32 %v4130_v45, %v6643_v40  ;;  %573 = vmatprep.subr.mxu0 %v4159_v8  ;;  %v4184_v14 = vand.u32 4294901760, %v4150_v22  ;;  %v4200_v45 = vand.u32 4294901760, %v4164_v29 }
  0x56   : > { %v888_v7 = vsub.f32 %v4113_v50, %v6641_v59  ;;  %v4188_v59 = vsub.f32 %v4007_v49, %v4039_v15  ;;  %v900_v40 = vsub.f32 %v4142_v0, %v6276_v30  ;;  %v168_v50 = vld [vmem:[%s163_s22] sm:$0xff]  ;;  %v6645_v49 = vand.u32 4294901760, %v4156_v28 }
  0x57   : > { %884 = vmatpush2.msra.mxu1 %v883_v20  ;;  %v895_v35 = vand.u32 4294901760, %v894_v54  ;;  %575 = vmatpush2.msra.mxu0 %v4184_v14  ;;  %v912_v0 = vsub.f32 %v4176_v52, %v6281_v43  ;;  %v4216_v54 = vand.u32 4294901760, %v4193_v27 }
  0x58   : > { %6644 = vst [vmem:[#allocation93_spill] sm:$0xff] %v4188_v59  ;;  %v889_v58 = vand.u32 4294901760, %v888_v7  ;;  %v906_v15 = vsub.f32 %v4156_v28, %v6645_v49  ;;  %v4209_v7 = vsub.f32 %v4022_v21, %v4055_v56  ;;  %v901_v30 = vand.u32 4294901760, %v900_v40  ;;  %577 = vmatprep.subr.mxu0 %v4200_v45 }
  0x59   : > { %v4220_v49 = vsub.f32 %v4048_v38, %v4086_v39  ;;  %v6648_v21 = vand.u32 4294901760, %v4188_v59  ;;  %v170_v28 = vcombine.high %v168_v50, %v168_v50  ;;  %v913_v43 = vand.u32 4294901760, %v912_v0  ;;  %579 = vmatpush2.msra.mxu0 %v4216_v54 }
  0x5a   : > { %6646 = vst [vmem:[#allocation94_spill] sm:$0xff] %v4209_v7  ;;  %890 = vmatprep.subr.mxu1 %v889_v58  ;;  %v907_v20 = vand.u32 4294901760, %v906_v15  ;;  %v6294_v40 = vand.u32 4294901760, %v4209_v7  ;;  %v173_v56 = vsel %vm172_vm0, %v168_v50, 0.0  ;;  %v187_v38 = vsel %vm172_vm0, %v168_v50, -inf  ;;  %992 = vmatprep.subr.mxu0 %v3282_v19 }
  0x5b   : > { %6647 = vst [vmem:[#allocation95_spill] sm:$0xff] %v4220_v49  ;;  %896 = vmatpush2.msra.mxu1 %v895_v35  ;;  %v918_v58 = vsub.f32 %v4188_v59, %v6648_v21  ;;  %v6306_v52 = vand.u32 4294901760, %v4220_v49  ;;  %v174_v21 = vrot.slane %v173_v56, 4  ;;  %v180_v59 = vsel %vm172_vm0, %v170_v28, 0.0 }
  0x5c   : > { %902 = vmatprep.subr.mxu1 %v901_v30  ;;  %v924_v15 = vsub.f32 %v4209_v7, %v6294_v40  ;;  %v181_v30 = vrot.slane %v180_v59, 4  ;;  %v188_v39 = vrot.slane %v187_v38, 4  ;;  %v194_v50 = vsel %vm172_vm0, %v170_v28, -inf }
  0x5d   : > { %908 = vmatpush2.msra.mxu1 %v907_v20  ;;  %v919_v35 = vand.u32 4294901760, %v918_v58  ;;  %v930_v0 = vsub.f32 %v4220_v49, %v6306_v52  ;;  %v175_v58 = vadd.f32 %v174_v21, %v173_v56  ;;  %v195_v13 = vrot.slane %v194_v50, 4 }
  0x5e   : > { %914 = vmatprep.subr.mxu1 %v913_v43  ;;  %v925_v20 = vand.u32 4294901760, %v924_v15  ;;  %v182_v40 = vadd.f32 %v181_v30, %v180_v59  ;;  %v189_v7 = vmax.f32 %v187_v38, %v188_v39  ;;  %v4244_v28 = vsub.f32 %v4060_v53, %v4102_v63 }
  0x5f   : > { %920 = vmatpush2.msra.mxu1 %v919_v35  ;;  %v931_v44 = vand.u32 4294901760, %v930_v0  ;;  %v176_v19 = vrot.slane %v175_v58, 2  ;;  %v196_v43 = vmax.f32 %v194_v50, %v195_v13  ;;  %v6317_v30 = vand.u32 4294901760, %v4263_v51 }
  0x60   : > { %926 = vmatprep.subr.mxu1 %v925_v20  ;;  %v183_v52 = vrot.slane %v182_v40, 2  ;;  %v190_v49 = vrot.slane %v189_v7, 2  ;;  %v6320_v13 = vand.u32 4294901760, %v4244_v28 }
  0x61   : > { %932 = vmatpush2.msra.mxu1 %v931_v44  ;;  %v177_v56 = vadd.f32 %v176_v19, %v175_v58  ;;  %v197_v35 = vrot.slane %v196_v43, 2  ;;  %v4252_v44 = vsub.f32 %v4079_v34, %v4116_v55  ;;  %v6318_v34 = vand.u32 4294901760, %v4256_v12 }
  0x62   : > { %v184_v59 = vadd.f32 %v183_v52, %v182_v40  ;;  %v191_v39 = vmax.f32 %v189_v7, %v190_v49  ;;  %v936_v52 = vsub.f32 %v4244_v28, %v6320_v13  ;;  %v4276_v58 = vsub.f32 %v4121_v6, %v4159_v8  ;;  %v6674_v13 = vld [vmem:[#allocation23_spill] sm:$0xff] }
  0x63   : > { %v178_v38 = vrot.slane %v177_v56, 1  ;;  %v198_v15 = vmax.f32 %v196_v43, %v197_v35  ;;  %v6319_v40 = vand.u32 4294901760, %v4252_v44  ;;  %v948_v62 = vsub.f32 %v4256_v12, %v6318_v34  ;;  %v6672_v34 = vld [vmem:[#allocation21_spill] sm:$0xff] }
  0x64   : > { %v185_v53 = vrot.slane %v184_v59, 1  ;;  %v192_v19 = vrot.slane %v191_v39, 1  ;;  %v937_v57 = vand.u32 4294901760, %v936_v52  ;;  %v4283_v35 = vsub.f32 %v4150_v22, %v4184_v14 }
  0x65   : > { %v179_v7 = vadd.f32 %v178_v38, %v177_v56  ;;  %v199_v49 = vrot.slane %v198_v15, 1  ;;  %v942_v20 = vsub.f32 %v4252_v44, %v6319_v40  ;;  %v954_v56 = vsub.f32 %v4263_v51, %v6317_v30  ;;  %v6671_v30 = vld [vmem:[#allocation18_spill] sm:$0xff]  ;;  %v6673_v40 = vld [vmem:[#allocation20_spill] sm:$0xff] }
  0x66   : > { %v186_v21 = vadd.f32 %v185_v53, %v184_v59  ;;  %v193_v0 = vmax.f32 %v191_v39, %v192_v19  ;;  %938 = vmatprep.subr.mxu1 %v937_v57  ;;  %v4287_v59 = vsub.f32 %v4164_v29, %v4200_v45  ;;  %v6316_v6 = vand.u32 4294901760, %v4276_v58 }
  0x67   : > { %v200_v50 = vmax.f32 %v198_v15, %v199_v49  ;;  %v943_v38 = vand.u32 4294901760, %v942_v20  ;;  %v949_v15 = vand.u32 4294901760, %v948_v62  ;;  %v955_v19 = vand.u32 4294901760, %v954_v56 }
  0x68   : > { %v207_v43 = vcombine.low %v179_v7, %v186_v21  ;;  %v6315_v52 = vand.u32 4294901760, %v4283_v35  ;;  %v6314_v7 = vand.u32 4294901760, %v4287_v59  ;;  %v6652_v22 = vmov 0 }
  0x69   : > { %v230_v39 = vcombine.low %v193_v0, %v200_v50  ;;  %v6653_v22 = vsel %vm4294_vm1, 4294967295, %v6652_v22  ;;  %944 = vmatpush2.msra.mxu1 %v943_v38  ;;  %v960_v49 = vsub.f32 %v4276_v58, %v6316_v6  ;;  %v4304_v21 = vsub.f32 %v4193_v27, %v4216_v54  ;;  %v6670_v6 = vld [vmem:[#allocation19_spill] sm:$0xff] }
  0x6a   : > { %v214_v53 = vrot.slane %v207_v43, %v4247_v2  ;;  %6654 = vst [vmem:[#allocation98_spill] sm:$0xff] %v6653_v22  ;;  %950 = vmatprep.subr.mxu1 %v949_v15  ;;  %v966_v61 = vsub.f32 %v4283_v35, %v6315_v52  ;;  %v972_v57 = vsub.f32 %v4287_v59, %v6314_v7  ;;  %v6311_v38 = vsub.s32 0, %v4240_v1  ;;  %v6668_v7 = vld [vmem:[#allocation17_spill] sm:$0xff]  ;;  %v6669_v52 = vld [vmem:[#allocation16_spill] sm:$0xff] }
  0x6b   : > { %v237_v29 = vrot.slane %v230_v39, %v4247_v2  ;;  %956 = vmatpush2.msra.mxu1 %v955_v19  ;;  %v961_v20 = vand.u32 4294901760, %v960_v49  ;;  %v6313_v62 = vand.u32 4294901760, %v4304_v21  ;;  %v6312_v15 = vsub.s32 1, %v4240_v1  ;;  %v6676_v22 = vld [vmem:[#allocation25_spill] sm:$0xff]  ;;  %v6678_v1 = vld [vmem:[#allocation27_spill] sm:$0xff] }
  0x6c   : > { %v221_v0 = vrot.slane %v214_v53, %v4247_v2  ;;  %v967_v27 = vand.u32 4294901760, %v966_v61  ;;  %v973_v43 = vand.u32 4294901760, %v972_v57 }
  0x6d   : > { %v244_v50 = vrot.slane %v237_v29, %v4247_v2  ;;  %962 = vmatprep.subr.mxu1 %v961_v20  ;;  %v978_v56 = vsub.f32 %v4304_v21, %v6313_v62  ;;  %v6667_v62 = vld [vmem:[#allocation14_spill] sm:$0xff]  ;;  %v6677_v2 = vld [vmem:[#allocation24_spill] sm:$0xff] }
  0x6e   : > { %227 = vst.msk [vmem:[#allocation2] sm:$0x3] %vm4294_vm1, %v221_v0  ;;  %968 = vmatpush2.msra.mxu1 %v967_v27 }
  0x6f   : > { %246 = vst.msk [vmem:[#allocation3] sm:$0x3] %vm4294_vm1, %v244_v50  ;;  %974 = vmatprep.subr.mxu1 %v973_v43  ;;  %v979_v39 = vand.u32 4294901760, %v978_v56 }
  0x71   : > { %980 = vmatpush2.msra.mxu1 %v979_v39 }
  0x72   : > { %1194 = vmatprep.subr.mxu1 %v3241_v3 }
  0x75   : > { %v300_v53 = vld [vmem:[#allocation2] sm:$0x3] }
  0x76   : > { %v306_v19 = vrot.slane %v300_v53, %v6311_v38  ;;  %v310_v29 = vrot.slane %v300_v53, %v6312_v15  ;;  %v6657_v53 = vld [vmem:[#allocation5_spill] sm:$0xff]  ;;  %v6665_v38 = vld [vmem:[#allocation12_spill] sm:$0xff]  ;;  %v6666_v15 = vld [vmem:[#allocation15_spill] sm:$0xff] }
  0x78   : > { %v4329_v49 = vand.u32 4294901760, %v310_v29  ;;  %v4331_v0 = vand.u32 4294901760, %v306_v19 }
  0x7a   : > { %6655 = vst [vmem:[#allocation99_spill] sm:$0xff] %v4329_v49  ;;  %6656 = vst [vmem:[#allocation100_spill] sm:$0xff] %v4331_v0  ;;  %v4334_v61 = vsub.f32 %v310_v29, %v4329_v49  ;;  %v4337_v57 = vsub.f32 %v306_v19, %v4331_v0  ;;  %982 = vmatprep.mubr.f32.mxu1 %v4329_v49  ;;  %v6658_v19 = vld [vmem:[#allocation7_spill] sm:$0xff]  ;;  %v6659_v29 = vld [vmem:[#allocation6_spill] sm:$0xff] }
  0x7b   : > { %984 = vmatmul.mubr.f32.vlgmr.msra.gmra.mxu1 %v4331_v0  ;;  %v6679_v0 = vld [vmem:[#allocation26_spill] sm:$0xff]  ;;  %v6680_v49 = vld [vmem:[#allocation29_spill] sm:$0xff] }
  0x7c   : > { %v582_v50 = vand.u32 4294901760, %v4334_v61  ;;  %v6321_v20 = vand.u32 4294901760, %v4337_v57  ;;  %1196 = vmatpush1.msra.mxu1 %v3243_v4 }
  0x7d   : > { %1198 = vmatprep.subr.mxu1 %v3245_v5 }
  0x7e   : > { %v583_v27 = vsub.f32 %v4334_v61, %v582_v50  ;;  %v589_v43 = vsub.f32 %v4337_v57, %v6321_v20  ;;  %1200 = vmatpush1.msra.mxu1 %v3256_v9  ;;  %1324 = vmatprep.mubr.f32.mxu1 %v582_v50  ;;  %v6660_v50 = vld [vmem:[#allocation9_spill] sm:$0xff]  ;;  %v6675_v20 = vld [vmem:[#allocation22_spill] sm:$0xff] }
  0x7f   : > { %1202 = vmatprep.subr.mxu1 %v3258_v10 }
  0x80   : > { %v584_v56 = vand.u32 4294901760, %v583_v27  ;;  %v590_v39 = vand.u32 4294901760, %v589_v43  ;;  %1204 = vmatpush1.msra.mxu1 %v3260_v11  ;;  %v6661_v27 = vld [vmem:[#allocation8_spill] sm:$0xff]  ;;  %v6662_v43 = vld [vmem:[#allocation11_spill] sm:$0xff] }
  0x81   : > { %1206 = vmatprep.subr.mxu1 %v3274_v16 }
  0x82   : > { %585 = vmatprep.mubr.f32.mxu0 %v584_v56  ;;  %1208 = vmatpush1.msra.mxu1 %v3276_v17  ;;  %v6663_v56 = vld [vmem:[#allocation10_spill] sm:$0xff] }
  0x83   : > { %591 = vmatmul.mubr.f32.vlgmr.msra.gmra.mxu0 %v590_v39  ;;  %1210 = vmatprep.subr.mxu1 %v3279_v18  ;;  %v6664_v39 = vld [vmem:[#allocation13_spill] sm:$0xff] }
  0x84   : > { %995 = vmatpush1.msra.mxu0 %v3304_v24  ;;  %1212 = vmatpush1.msra.mxu1 %v3301_v23 }
  0x85   : > { %998 = vmatprep.subr.mxu0 %v3310_v26  ;;  %1214 = vmatprep.subr.mxu1 %v3307_v25 }
  0x86   : > { %1001 = vmatpush1.msra.mxu0 %v3333_v32  ;;  %1216 = vmatpush1.msra.mxu1 %v3330_v31 }
  0x87   : > { %1004 = vmatprep.subr.mxu0 %v3342_v36  ;;  %1218 = vmatprep.subr.mxu1 %v3336_v33 }
  0x88   : > { %1007 = vmatpush1.msra.mxu0 %v3358_v41  ;;  %1220 = vmatpush1.msra.mxu1 %v3345_v37 }
  0x89   : > { %1010 = vmatprep.subr.mxu0 %v3372_v46  ;;  %1222 = vmatprep.subr.mxu1 %v3361_v42 }
  0x8a   : > { %1013 = vmatpush1.msra.mxu0 %v3407_v60  ;;  %1224 = vmatpush1.msra.mxu1 %v6657_v53 }
  0x8b   : > { %1016 = vmatprep.subr.mxu0 %v6658_v19  ;;  %1226 = vmatprep.subr.mxu1 %v6659_v29 }
  0x8c   : > { %1019 = vmatpush1.msra.mxu0 %v6660_v50  ;;  %1228 = vmatpush1.msra.mxu1 %v6661_v27 }
  0x8d   : > { %1022 = vmatprep.subr.mxu0 %v6662_v43  ;;  %1230 = vmatprep.subr.mxu1 %v6663_v56 }
  0x8e   : > { %1025 = vmatpush1.msra.mxu0 %v6664_v39  ;;  %1232 = vmatpush1.msra.mxu1 %v6665_v38 }
  0x8f   : > { %1028 = vmatprep.subr.mxu0 %v6666_v15  ;;  %1234 = vmatprep.subr.mxu1 %v6667_v62  ;;  %v6683_v62 = vld [vmem:[#allocation30_spill] sm:$0xff] }
  0x90   : > { %1031 = vmatpush1.msra.mxu0 %v6668_v7  ;;  %1236 = vmatpush1.msra.mxu1 %v6669_v52  ;;  %v6681_v52 = vld [vmem:[#allocation28_spill] sm:$0xff] }
  0x91   : > { %1034 = vmatprep.subr.mxu0 %v6670_v6  ;;  %1238 = vmatprep.subr.mxu1 %v6671_v30  ;;  %v6682_v30 = vld [vmem:[#allocation31_spill] sm:$0xff] }
  0x92   : > { %1037 = vmatpush1.msra.mxu0 %v6672_v34  ;;  %1240 = vmatpush1.msra.mxu1 %v6673_v40  ;;  %v6684_v40 = vld [vmem:[#allocation33_spill] sm:$0xff] }
  0x93   : > { %1040 = vmatprep.subr.mxu0 %v6674_v13  ;;  %1242 = vmatprep.subr.mxu1 %v6675_v20  ;;  %v6685_v13 = vld [vmem:[#allocation32_spill] sm:$0xff]  ;;  %v6686_v20 = vld [vmem:[#allocation35_spill] sm:$0xff] }
  0x94   : > { %1043 = vmatpush1.msra.mxu0 %v6676_v22  ;;  %1244 = vmatpush1.msra.mxu1 %v6677_v2  ;;  %v6687_v22 = vld [vmem:[#allocation34_spill] sm:$0xff]  ;;  %v6688_v2 = vld [vmem:[#allocation37_spill] sm:$0xff] }
  0x95   : > { %1046 = vmatprep.subr.mxu0 %v6678_v1  ;;  %1246 = vmatprep.subr.mxu1 %v6679_v0  ;;  %v6689_v1 = vld [vmem:[#allocation36_spill] sm:$0xff]  ;;  %v6690_v0 = vld [vmem:[#allocation39_spill] sm:$0xff] }
  0x96   : > { %1049 = vmatpush1.msra.mxu0 %v6680_v49  ;;  %1248 = vmatpush1.msra.mxu1 %v6681_v52  ;;  %v6691_v49 = vld [vmem:[#allocation38_spill] sm:$0xff]  ;;  %v6692_v52 = vld [vmem:[#allocation41_spill] sm:$0xff] }
  0x97   : > { %1052 = vmatprep.subr.mxu0 %v6682_v30  ;;  %1250 = vmatprep.subr.mxu1 %v6683_v62  ;;  %v6693_v30 = vld [vmem:[#allocation40_spill] sm:$0xff]  ;;  %v6694_v62 = vld [vmem:[#allocation43_spill] sm:$0xff] }
  0x98   : > { %1055 = vmatpush1.msra.mxu0 %v6684_v40  ;;  %1252 = vmatpush1.msra.mxu1 %v6685_v13  ;;  %v6695_v40 = vld [vmem:[#allocation42_spill] sm:$0xff]  ;;  %v6696_v13 = vld [vmem:[#allocation45_spill] sm:$0xff] }
  0x99   : > { %1058 = vmatprep.subr.mxu0 %v6686_v20  ;;  %1254 = vmatprep.subr.mxu1 %v6687_v22  ;;  %v6697_v20 = vld [vmem:[#allocation44_spill] sm:$0xff]  ;;  %v6698_v22 = vld [vmem:[#allocation47_spill] sm:$0xff] }
  0x9a   : > { %1061 = vmatpush1.msra.mxu0 %v6688_v2  ;;  %1256 = vmatpush1.msra.mxu1 %v6689_v1  ;;  %v6699_v2 = vld [vmem:[#allocation46_spill] sm:$0xff]  ;;  %v6700_v1 = vld [vmem:[#allocation49_spill] sm:$0xff] }
  0x9b   : > { %1064 = vmatprep.subr.mxu0 %v6690_v0  ;;  %1258 = vmatprep.subr.mxu1 %v6691_v49  ;;  %v6701_v0 = vld [vmem:[#allocation48_spill] sm:$0xff]  ;;  %v6702_v49 = vld [vmem:[#allocation51_spill] sm:$0xff] }
  0x9c   : > { %1067 = vmatpush1.msra.mxu0 %v6692_v52  ;;  %1260 = vmatpush2.msra.mxu1 %v6693_v30  ;;  %v6703_v52 = vld [vmem:[#allocation50_spill] sm:$0xff]  ;;  %v6704_v30 = vld [vmem:[#allocation53_spill] sm:$0xff] }
  0x9d   : > { %1070 = vmatprep.subr.mxu0 %v6694_v62  ;;  %1262 = vmatprep.subr.mxu1 %v6695_v40  ;;  %v6705_v62 = vld [vmem:[#allocation52_spill] sm:$0xff]  ;;  %v6706_v40 = vld [vmem:[#allocation55_spill] sm:$0xff] }
  0x9e   : > { %1073 = vmatpush1.msra.mxu0 %v6696_v13  ;;  %1264 = vmatpush2.msra.mxu1 %v6697_v20  ;;  %v6707_v13 = vld [vmem:[#allocation54_spill] sm:$0xff]  ;;  %v6708_v20 = vld [vmem:[#allocation57_spill] sm:$0xff] }
  0x9f   : > { %1076 = vmatprep.subr.mxu0 %v6698_v22  ;;  %1266 = vmatprep.subr.mxu1 %v6699_v2  ;;  %v6709_v22 = vld [vmem:[#allocation56_spill] sm:$0xff]  ;;  %v6710_v2 = vld [vmem:[#allocation59_spill] sm:$0xff] }
  0xa0   : > { %1079 = vmatpush1.msra.mxu0 %v6700_v1  ;;  %1268 = vmatpush2.msra.mxu1 %v6701_v0  ;;  %v6711_v1 = vld [vmem:[#allocation58_spill] sm:$0xff]  ;;  %v6712_v0 = vld [vmem:[#allocation61_spill] sm:$0xff] }
  0xa1   : > { %1082 = vmatprep.subr.mxu0 %v6702_v49  ;;  %1270 = vmatprep.subr.mxu1 %v6703_v52  ;;  %v6713_v49 = vld [vmem:[#allocation60_spill] sm:$0xff]  ;;  %v6714_v52 = vld [vmem:[#allocation63_spill] sm:$0xff] }
  0xa2   : > { %1085 = vmatpush1.msra.mxu0 %v6704_v30  ;;  %1272 = vmatpush2.msra.mxu1 %v6705_v62  ;;  %v6715_v30 = vld [vmem:[#allocation62_spill] sm:$0xff]  ;;  %v6716_v62 = vld [vmem:[#allocation65_spill] sm:$0xff] }
  0xa3   : > { %1088 = vmatprep.subr.mxu0 %v6706_v40  ;;  %1274 = vmatprep.subr.mxu1 %v6707_v13  ;;  %v6717_v40 = vld [vmem:[#allocation64_spill] sm:$0xff]  ;;  %v6718_v13 = vld [vmem:[#allocation67_spill] sm:$0xff] }
  0xa4   : > { %1091 = vmatpush2.msra.mxu0 %v6708_v20  ;;  %1276 = vmatpush2.msra.mxu1 %v6709_v22  ;;  %v6719_v20 = vld [vmem:[#allocation66_spill] sm:$0xff]  ;;  %v6720_v22 = vld [vmem:[#allocation69_spill] sm:$0xff] }
  0xa5   : > { %1094 = vmatprep.subr.mxu0 %v6710_v2  ;;  %1278 = vmatprep.subr.mxu1 %v6711_v1  ;;  %v6721_v2 = vld [vmem:[#allocation68_spill] sm:$0xff]  ;;  %v6722_v1 = vld [vmem:[#allocation71_spill] sm:$0xff] }
  0xa6   : > { %1097 = vmatpush2.msra.mxu0 %v6712_v0  ;;  %1280 = vmatpush2.msra.mxu1 %v6713_v49  ;;  %v6723_v0 = vld [vmem:[#allocation70_spill] sm:$0xff]  ;;  %v6724_v49 = vld [vmem:[#allocation73_spill] sm:$0xff] }
  0xa7   : > { %1100 = vmatprep.subr.mxu0 %v6714_v52  ;;  %1282 = vmatprep.subr.mxu1 %v6715_v30  ;;  %v6725_v52 = vld [vmem:[#allocation72_spill] sm:$0xff]  ;;  %v6726_v30 = vld [vmem:[#allocation75_spill] sm:$0xff] }
  0xa8   : > { %1103 = vmatpush2.msra.mxu0 %v6716_v62  ;;  %1284 = vmatpush2.msra.mxu1 %v6717_v40  ;;  %v6727_v62 = vld [vmem:[#allocation74_spill] sm:$0xff]  ;;  %v6728_v40 = vld [vmem:[#allocation77_spill] sm:$0xff] }
  0xa9   : > { %1106 = vmatprep.subr.mxu0 %v6718_v13  ;;  %1286 = vmatprep.subr.mxu1 %v6719_v20  ;;  %v6729_v13 = vld [vmem:[#allocation76_spill] sm:$0xff]  ;;  %v6730_v20 = vld [vmem:[#allocation79_spill] sm:$0xff] }
  0xaa   : > { %1109 = vmatpush2.msra.mxu0 %v6720_v22  ;;  %1288 = vmatpush2.msra.mxu1 %v6721_v2  ;;  %v6731_v22 = vld [vmem:[#allocation78_spill] sm:$0xff]  ;;  %v6732_v2 = vld [vmem:[#allocation81_spill] sm:$0xff] }
  0xab   : > { %1112 = vmatprep.subr.mxu0 %v6722_v1  ;;  %1290 = vmatprep.subr.mxu1 %v6723_v0  ;;  %v6733_v1 = vld [vmem:[#allocation80_spill] sm:$0xff]  ;;  %v6734_v0 = vld [vmem:[#allocation83_spill] sm:$0xff] }
  0xac   : > { %1115 = vmatpush2.msra.mxu0 %v6724_v49  ;;  %1292 = vmatpush2.msra.mxu1 %v6725_v52  ;;  %v6735_v49 = vld [vmem:[#allocation82_spill] sm:$0xff]  ;;  %v6736_v52 = vld [vmem:[#allocation85_spill] sm:$0xff] }
  0xad   : > { %1118 = vmatprep.subr.mxu0 %v6726_v30  ;;  %1294 = vmatprep.subr.mxu1 %v6727_v62  ;;  %v6737_v62 = vld [vmem:[#allocation87_spill] sm:$0xff] }
  0xae   : > { %1121 = vmatpush2.msra.mxu0 %v6728_v40  ;;  %1296 = vmatpush2.msra.mxu1 %v6729_v13  ;;  %v6738_v40 = vld [vmem:[#allocation84_spill] sm:$0xff] }
  0xaf   : > { %1124 = vmatprep.subr.mxu0 %v6730_v20  ;;  %1298 = vmatprep.subr.mxu1 %v6731_v22  ;;  %v6739_v13 = vld [vmem:[#allocation88_spill] sm:$0xff]  ;;  %v6740_v22 = vld [vmem:[#allocation89_spill] sm:$0xff] }
  0xb0   : > { %1127 = vmatpush2.msra.mxu0 %v6732_v2  ;;  %1300 = vmatpush2.msra.mxu1 %v6733_v1  ;;  %v6741_v1 = vld [vmem:[#allocation91_spill] sm:$0xff] }
  0xb1   : > { %1130 = vmatprep.subr.mxu0 %v6734_v0  ;;  %1302 = vmatprep.subr.mxu1 %v6735_v49  ;;  %v6742_v49 = vld [vmem:[#allocation92_spill] sm:$0xff] }
  0xb2   : > { %1133 = vmatpush2.msra.mxu0 %v6736_v52  ;;  %1184 = vmatprep.mubr.f32.mxu0 %v4334_v61  ;;  %v6743_v61 = vld [vmem:[#allocation93_spill] sm:$0xff] }
  0xb3   : > { %1136 = vmatprep.subr.mxu0 %v6737_v62  ;;  %1304 = vmatpush2.msra.mxu1 %v6738_v40  ;;  %v6744_v40 = vld [vmem:[#allocation94_spill] sm:$0xff] }
  0xb4   : > { %1139 = vmatpush2.msra.mxu0 %v6739_v13  ;;  %1306 = vmatprep.subr.mxu1 %v4102_v63  ;;  %v6745_v63 = vld [vmem:[#allocation95_spill] sm:$0xff] }
  0xb5   : > { %1142 = vmatprep.subr.mxu0 %v6740_v22  ;;  %1308 = vmatpush2.msra.mxu1 %v4116_v55 }
  0xb6   : > { %1145 = vmatpush2.msra.mxu0 %v6741_v1  ;;  %1310 = vmatprep.subr.mxu1 %v4133_v47 }
  0xb7   : > { %1148 = vmatprep.subr.mxu0 %v6742_v49  ;;  %1312 = vmatpush2.msra.mxu1 %v4145_v48  ;;  %v6746_v48 = vand.u32 4294901760, %v4337_v57 }
  0xb8   : > { %1151 = vmatpush2.msra.mxu0 %v6743_v61  ;;  %1314 = vmatprep.subr.mxu1 %v4159_v8 }
  0xb9   : > { %1154 = vmatprep.subr.mxu0 %v6744_v40  ;;  %1316 = vmatpush2.msra.mxu1 %v4184_v14 }
  0xba   : > { %1157 = vmatpush2.msra.mxu0 %v6745_v63  ;;  %1318 = vmatprep.subr.mxu1 %v4200_v45 }
  0xbb   : > { %1160 = vmatprep.subr.mxu0 %v4244_v28  ;;  %1320 = vmatpush2.msra.mxu1 %v4216_v54 }
  0xbc   : > { %1163 = vmatpush2.msra.mxu0 %v4252_v44  ;;  %1328 = vmatmul.mubr.f32.vlgmr.msra.gmra.mxu1 %v6746_v48  ;;  %v6749_v48 = vand.u32 4294901760, %v3304_v24  ;;  %v6758_v24 = vand.u32 4294901760, %v6662_v43 }
  0xbd   : > { %1166 = vmatprep.subr.mxu0 %v4256_v12  ;;  %1600 = vmatprep.subr.mxu1 %v3241_v3  ;;  %v6747_v3 = vld [vmem:[#allocation4_spill] sm:$0xff] }
  0xbe   : > { %1169 = vmatpush2.msra.mxu0 %v4263_v51  ;;  %1602 = vmatpush1.msra.mxu1 %v3243_v4  ;;  %v6748_v4 = vand.u32 4294901760, %v6747_v3 }
  0xbf   : > { %1172 = vmatprep.subr.mxu0 %v4276_v58  ;;  %1604 = vmatprep.subr.mxu1 %v3245_v5  ;;  %v6750_v5 = vand.u32 4294901760, %v3310_v26  ;;  %v6760_v26 = vand.u32 4294901760, %v6666_v15  ;;  %v6771_v15 = vld [vmem:[#allocation27_spill] sm:$0xff] }
  0xc0   : > { %1175 = vmatpush2.msra.mxu0 %v4283_v35  ;;  %1606 = vmatpush1.msra.mxu1 %v3256_v9  ;;  %v6751_v9 = vand.u32 4294901760, %v3333_v32  ;;  %v6762_v32 = vand.u32 4294901760, %v6670_v6  ;;  %v6772_v6 = vand.u32 4294901760, %v6771_v15 }
  0xc1   : > { %1178 = vmatprep.subr.mxu0 %v4287_v59  ;;  %1608 = vmatprep.subr.mxu1 %v3258_v10  ;;  %v6752_v10 = vand.u32 4294901760, %v3342_v36  ;;  %v6764_v36 = vld [vmem:[#allocation14_spill] sm:$0xff] }
  0xc2   : > { %1181 = vmatpush2.msra.mxu0 %v4304_v21  ;;  %1610 = vmatpush1.msra.mxu1 %v3260_v11  ;;  %v6753_v11 = vand.u32 4294901760, %v3358_v41 }
  0xc3   : > { %1187 = vmatmul.mubr.f32.vlgmr.msra.gmra.mxu0 %v4337_v57  ;;  %1337 = vmatprep.subr.mxu0 %v6748_v4  ;;  %v6773_v57 = vld [vmem:[#allocation20_spill] sm:$0xff] }
  0xc4   : > { %1341 = vmatpush1.msra.mxu0 %v6749_v48  ;;  %1612 = vmatprep.subr.mxu1 %v3274_v16  ;;  %v6754_v16 = vand.u32 4294901760, %v3372_v46  ;;  %v6768_v46 = vld [vmem:[#allocation25_spill] sm:$0xff]  ;;  %v6785_v4 = vld [vmem:[#allocation28_spill] sm:$0xff] }
  0xc5   : > { %1345 = vmatprep.subr.mxu0 %v6750_v5  ;;  %1614 = vmatpush1.msra.mxu1 %v3276_v17  ;;  %v6755_v17 = vand.u32 4294901760, %v3407_v60  ;;  %v6769_v60 = vand.u32 4294901760, %v6768_v46  ;;  %v6786_v48 = vld [vmem:[#allocation37_spill] sm:$0xff]  ;;  %v6803_v46 = vld [vmem:[#allocation40_spill] sm:$0xff] }
  0xc6   : > { %1349 = vmatpush1.msra.mxu0 %v6751_v9  ;;  %1616 = vmatprep.subr.mxu1 %v3279_v18  ;;  %v6756_v18 = vand.u32 4294901760, %v6658_v19  ;;  %v6777_v19 = vld [vmem:[#allocation31_spill] sm:$0xff]  ;;  %v6787_v5 = vand.u32 4294901760, %v6786_v48  ;;  %v6788_v9 = vld [vmem:[#allocation30_spill] sm:$0xff] }
  0xc7   : > { %1353 = vmatprep.subr.mxu0 %v6752_v10  ;;  %1618 = vmatpush1.msra.mxu1 %v3301_v23  ;;  %v6757_v23 = vand.u32 4294901760, %v6660_v50  ;;  %v6779_v50 = vld [vmem:[#allocation24_spill] sm:$0xff]  ;;  %v6789_v10 = vld [vmem:[#allocation39_spill] sm:$0xff] }
  0xc8   : > { %1357 = vmatpush1.msra.mxu0 %v6753_v11  ;;  %1620 = vmatprep.subr.mxu1 %v3307_v25  ;;  %v6759_v25 = vand.u32 4294901760, %v6664_v39  ;;  %v6783_v39 = vld [vmem:[#allocation35_spill] sm:$0xff]  ;;  %v6790_v11 = vand.u32 4294901760, %v6789_v10  ;;  %v6819_v10 = vld [vmem:[#allocation57_spill] sm:$0xff] }
  0xc9   : > { %1361 = vmatprep.subr.mxu0 %v6754_v16  ;;  %1622 = vmatpush1.msra.mxu1 %v3330_v31  ;;  %v6761_v31 = vand.u32 4294901760, %v6668_v7  ;;  %v6770_v7 = vld [vmem:[#allocation18_spill] sm:$0xff]  ;;  %v6784_v3 = vand.u32 4294901760, %v6783_v39  ;;  %v6791_v16 = vld [vmem:[#allocation32_spill] sm:$0xff] }
  0xca   : > { %1365 = vmatpush1.msra.mxu0 %v6755_v17  ;;  %1624 = vmatprep.subr.mxu1 %v3336_v33  ;;  %v6763_v33 = vand.u32 4294901760, %v6672_v34  ;;  %v6792_v17 = vld [vmem:[#allocation41_spill] sm:$0xff]  ;;  %v415_v39 = vld [vmem:[%s6105_s0 + $0x2d8] sm:$0xff] }
  0xcb   : > { %1369 = vmatprep.subr.mxu0 %v6756_v18  ;;  %1626 = vmatpush1.msra.mxu1 %v3345_v37  ;;  %v6765_v37 = vld [vmem:[#allocation23_spill] sm:$0xff]  ;;  %v6793_v18 = vand.u32 4294901760, %v6792_v17 }
  0xcc   : > { %1373 = vmatpush1.msra.mxu0 %v6757_v23  ;;  %1628 = vmatprep.subr.mxu1 %v3361_v42  ;;  %v6766_v41 = vand.u32 4294901760, %v6765_v37  ;;  %v6767_v42 = vld [vmem:[#allocation16_spill] sm:$0xff]  ;;  %v6794_v23 = vld [vmem:[#allocation34_spill] sm:$0xff] }
  0xcd   : > { %1377 = vmatprep.subr.mxu0 %v6758_v24  ;;  %1630 = vmatpush1.msra.mxu1 %v6657_v53  ;;  %v6776_v53 = vld [vmem:[#allocation22_spill] sm:$0xff]  ;;  %v6795_v24 = vld [vmem:[#allocation43_spill] sm:$0xff] }
  0xce   : > { %1381 = vmatpush1.msra.mxu0 %v6759_v25  ;;  %1632 = vmatprep.subr.mxu1 %v6659_v29  ;;  %v6778_v29 = vand.u32 4294901760, %v6777_v19  ;;  %v6796_v25 = vand.u32 4294901760, %v6795_v24  ;;  %v6800_v37 = vld [vmem:[#allocation38_spill] sm:$0xff]  ;;  %v6824_v24 = vld [vmem:[#allocation59_spill] sm:$0xff] }
  0xcf   : > { %1385 = vmatprep.subr.mxu0 %v6760_v26  ;;  %1634 = vmatpush1.msra.mxu1 %v6661_v27  ;;  %v6780_v27 = vld [vmem:[#allocation33_spill] sm:$0xff]  ;;  %v6797_v26 = vld [vmem:[#allocation36_spill] sm:$0xff] }
  0xd0   : > { %1389 = vmatpush1.msra.mxu0 %v6761_v31  ;;  %1636 = vmatprep.subr.mxu1 %v6663_v56  ;;  %v6781_v43 = vand.u32 4294901760, %v6780_v27  ;;  %v6782_v56 = vld [vmem:[#allocation26_spill] sm:$0xff] }
  0xd1   : > { %1393 = vmatprep.subr.mxu0 %v6762_v32  ;;  %1638 = vmatpush1.msra.mxu1 %v6665_v38  ;;  %v6774_v38 = vld [vmem:[#allocation29_spill] sm:$0xff]  ;;  %v419_v31 = vld [vmem:[%s6105_s0 + $0x2f8] sm:$0xff] }
  0xd2   : > { %1397 = vmatpush1.msra.mxu0 %v6763_v33  ;;  %1640 = vmatprep.subr.mxu1 %v6764_v36  ;;  %v6775_v34 = vand.u32 4294901760, %v6774_v38  ;;  %v418_v32 = vld [vmem:[%s6105_s0 + $0x2f0] sm:$0xff] }
  0xd3   : > { %1401 = vmatprep.subr.mxu0 %v6766_v41  ;;  %1642 = vmatpush1.msra.mxu1 %v6767_v42  ;;  %v6798_v33 = vld [vmem:[#allocation45_spill] sm:$0xff]  ;;  %v6801_v41 = vld [vmem:[#allocation47_spill] sm:$0xff]  ;;  %v4583_v38 = vand.u32 4294901760, %v418_v32 }
  0xd4   : > { %1405 = vmatpush1.msra.mxu0 %v6769_v60  ;;  %1644 = vmatprep.subr.mxu1 %v6770_v7  ;;  %v6799_v36 = vand.u32 4294901760, %v6798_v33  ;;  %v6802_v42 = vand.u32 4294901760, %v6801_v41  ;;  %v417_v60 = vld [vmem:[%s6105_s0 + $0x2e8] sm:$0xff]  ;;  %v4622_v33 = vand.u32 4294901760, %v415_v39 }
  0xd5   : > { %1409 = vmatprep.subr.mxu0 %v6772_v6  ;;  %1646 = vmatpush1.msra.mxu1 %v6773_v57  ;;  %v6804_v7 = vld [vmem:[#allocation49_spill] sm:$0xff]  ;;  %v6806_v6 = vld [vmem:[#allocation42_spill] sm:$0xff]  ;;  %v4581_v57 = vand.u32 4294901760, %v419_v31  ;;  %6807 = vst [vmem:[#allocation5_spill] sm:$0xff] %v4583_v38  ;;  %v4611_v17 = vsub.f32 %v418_v32, %v4583_v38 }
  0xd6   : > { %1413 = vmatpush1.msra.mxu0 %v6775_v34  ;;  %1648 = vmatprep.subr.mxu1 %v6776_v53  ;;  %v6805_v15 = vand.u32 4294901760, %v6804_v7  ;;  %v416_v34 = vld [vmem:[%s6105_s0 + $0x2e0] sm:$0xff]  ;;  %6827 = vst [vmem:[#allocation11_spill] sm:$0xff] %v4622_v33  ;;  %v413_v32 = vld [vmem:[%s6105_s0 + $0x2c8] sm:$0xff] }
  0xd7   : > { %1417 = vmatprep.subr.mxu0 %v6778_v29  ;;  %1650 = vmatpush1.msra.mxu1 %v6779_v50  ;;  %v6808_v53 = vld [vmem:[#allocation51_spill] sm:$0xff]  ;;  %v6810_v29 = vld [vmem:[#allocation44_spill] sm:$0xff]  ;;  %v6811_v50 = vld [vmem:[#allocation53_spill] sm:$0xff]  ;;  %6822 = vst [vmem:[#allocation9_spill] sm:$0xff] %v4611_v17 }
  0xd8   : > { %1421 = vmatpush1.msra.mxu0 %v6781_v43  ;;  %1652 = vmatprep.subr.mxu1 %v6782_v56  ;;  %v6809_v19 = vand.u32 4294901760, %v6808_v53  ;;  %v6812_v27 = vand.u32 4294901760, %v6811_v50  ;;  %v6813_v43 = vld [vmem:[#allocation46_spill] sm:$0xff]  ;;  %v4594_v56 = vand.u32 4294901760, %v417_v60  ;;  %v6833_v7 = vld [vmem:[#allocation63_spill] sm:$0xff]  ;;  %v6838_v50 = vld [vmem:[#allocation65_spill] sm:$0xff] }
  0xd9   : > { %1425 = vmatprep.subr.mxu0 %v6784_v3  ;;  %1654 = vmatpush1.msra.mxu1 %v6785_v4  ;;  %v414_v3 = vld [vmem:[%s6105_s0 + $0x2d0] sm:$0xff]  ;;  %v6815_v4 = vld [vmem:[#allocation55_spill] sm:$0xff] }
  0xda   : > { %1429 = vmatpush1.msra.mxu0 %v6787_v5  ;;  %1656 = vmatprep.subr.mxu1 %v6788_v9  ;;  %6814 = vst [vmem:[#allocation7_spill] sm:$0xff] %v4594_v56  ;;  %v6816_v48 = vand.u32 4294901760, %v6815_v4  ;;  %v6817_v5 = vld [vmem:[#allocation48_spill] sm:$0xff]  ;;  %v4605_v9 = vand.u32 4294901760, %v416_v34 }
  0xdb   : > { %1433 = vmatprep.subr.mxu0 %v6790_v11  ;;  %1658 = vmatpush1.msra.mxu1 %v6791_v16  ;;  %v6820_v11 = vand.u32 4294901760, %v6819_v10  ;;  %v6821_v16 = vld [vmem:[#allocation50_spill] sm:$0xff] }
  0xdc   : > { %1437 = vmatpush1.msra.mxu0 %v6793_v18  ;;  %1660 = vmatprep.subr.mxu1 %v6794_v23  ;;  %6818 = vst [vmem:[#allocation6_spill] sm:$0xff] %v4605_v9  ;;  %v412_v18 = vld [vmem:[%s6105_s0 + $0x2c0] sm:$0xff]  ;;  %v4617_v23 = vsub.f32 %v419_v31, %v4581_v57  ;;  %v410_v31 = vld [vmem:[%s6105_s0 + $0x2b0] sm:$0xff]  ;;  %v4642_v53 = vsub.f32 %v416_v34, %v4605_v9  ;;  %v409_v34 = vld [vmem:[%s6105_s0 + $0x2a8] sm:$0xff] }
  0xdd   : > { %1441 = vmatprep.subr.mxu0 %v6796_v25  ;;  %1662 = vmatpush1.msra.mxu1 %v6797_v26  ;;  %v6825_v25 = vand.u32 4294901760, %v6824_v24  ;;  %v6826_v26 = vld [vmem:[#allocation52_spill] sm:$0xff]  ;;  %v4665_v24 = vand.u32 4294901760, %v410_v31 }
  0xde   : > { %1445 = vmatpush1.msra.mxu0 %v6799_v36  ;;  %1664 = vmatprep.subr.mxu1 %v6800_v37  ;;  %6823 = vst [vmem:[#allocation8_spill] sm:$0xff] %v4617_v23  ;;  %v4624_v36 = vand.u32 4294901760, %v414_v3  ;;  %v6829_v37 = vld [vmem:[#allocation61_spill] sm:$0xff]  ;;  %6836 = vst [vmem:[#allocation12_spill] sm:$0xff] %v4642_v53  ;;  %v6334_v4 = vand.u32 4294901760, %v4617_v23 }
  0xdf   : > { %1449 = vmatprep.subr.mxu0 %v6802_v42  ;;  %1666 = vmatpush2.msra.mxu1 %v6803_v46  ;;  %v6830_v41 = vand.u32 4294901760, %v6829_v37  ;;  %v6831_v42 = vld [vmem:[#allocation54_spill] sm:$0xff]  ;;  %v4636_v46 = vsub.f32 %v417_v60, %v4594_v56  ;;  %v4652_v60 = vand.u32 4294901760, %v413_v32  ;;  %6846 = vst [vmem:[#allocation21_spill] sm:$0xff] %v4665_v24  ;;  %v6848_v37 = vld [vmem:[#allocation69_spill] sm:$0xff] }
  0xe0   : > { %1453 = vmatpush1.msra.mxu0 %v6805_v15  ;;  %1668 = vmatprep.subr.mxu1 %v6806_v6  ;;  %6828 = vst [vmem:[#allocation10_spill] sm:$0xff] %v4624_v36  ;;  %v6834_v15 = vand.u32 4294901760, %v6833_v7  ;;  %v6835_v6 = vld [vmem:[#allocation56_spill] sm:$0xff] }
  0xe1   : > { %1457 = vmatprep.subr.mxu0 %v6809_v19  ;;  %1670 = vmatpush2.msra.mxu1 %v6810_v29  ;;  %6832 = vst [vmem:[#allocation13_spill] sm:$0xff] %v4636_v46  ;;  %v4644_v19 = vand.u32 4294901760, %v412_v18  ;;  %v411_v29 = vld [vmem:[%s6105_s0 + $0x2b8] sm:$0xff]  ;;  %6841 = vst [vmem:[#allocation17_spill] sm:$0xff] %v4652_v60 }
  0xe2   : > { %1461 = vmatpush1.msra.mxu0 %v6812_v27  ;;  %1672 = vmatprep.subr.mxu1 %v6813_v43  ;;  %v6839_v27 = vand.u32 4294901760, %v6838_v50  ;;  %v6840_v43 = vld [vmem:[#allocation58_spill] sm:$0xff]  ;;  %v4676_v7 = vand.u32 4294901760, %v411_v29  ;;  %v6854_v50 = vld [vmem:[#allocation64_spill] sm:$0xff] }
  0xe3   : > { %1465 = vmatprep.subr.mxu0 %v6816_v48  ;;  %1674 = vmatpush2.msra.mxu1 %v6817_v5  ;;  %6837 = vst [vmem:[#allocation15_spill] sm:$0xff] %v4644_v19  ;;  %v6333_v48 = vand.u32 4294901760, %v4611_v17  ;;  %v6842_v5 = vld [vmem:[#allocation67_spill] sm:$0xff] }
  0xe4   : > { %1469 = vmatpush2.msra.mxu0 %v6820_v11  ;;  %1676 = vmatprep.subr.mxu1 %v6821_v16  ;;  %v6843_v10 = vand.u32 4294901760, %v6842_v5  ;;  %v6844_v11 = vld [vmem:[#allocation60_spill] sm:$0xff]  ;;  %v4663_v16 = vsub.f32 %v414_v3, %v4624_v36  ;;  %6851 = vst [vmem:[#allocation79_spill] sm:$0xff] %v4676_v7  ;;  %v6852_v3 = vld [vmem:[#allocation71_spill] sm:$0xff]  ;;  %v406_v5 = vld [vmem:[%s6105_s0 + $0x290] sm:$0xff] }
  0xe5   : > { %1473 = vmatprep.subr.mxu0 %v6825_v25  ;;  %1678 = vmatpush2.msra.mxu1 %v6826_v26  ;;  %v408_v25 = vld [vmem:[%s6105_s0 + $0x2a0] sm:$0xff]  ;;  %v4671_v26 = vsub.f32 %v415_v39, %v4622_v33 }
  0xe6   : > { %1477 = vmatpush2.msra.mxu0 %v6830_v41  ;;  %1680 = vmatprep.subr.mxu1 %v6831_v42  ;;  %6845 = vst [vmem:[#allocation19_spill] sm:$0xff] %v4663_v16  ;;  %v6849_v41 = vand.u32 4294901760, %v6848_v37  ;;  %v6850_v42 = vld [vmem:[#allocation62_spill] sm:$0xff] }
  0xe7   : > { %1481 = vmatprep.subr.mxu0 %v6834_v15  ;;  %1682 = vmatpush2.msra.mxu1 %v6835_v6  ;;  %6847 = vst [vmem:[#allocation75_spill] sm:$0xff] %v4671_v26  ;;  %v6853_v6 = vand.u32 4294901760, %v6852_v3  ;;  %v6859_v37 = vld [vmem:[#allocation66_spill] sm:$0xff] }
  0xe8   : > { %1485 = vmatpush2.msra.mxu0 %v6839_v27  ;;  %1684 = vmatprep.subr.mxu1 %v6840_v43  ;;  %v4683_v27 = vsub.f32 %v412_v18, %v4644_v19  ;;  %v4685_v43 = vand.u32 4294901760, %v409_v34  ;;  %v4702_v18 = vsub.f32 %v4611_v17, %v6333_v48  ;;  %v407_v3 = vld [vmem:[%s6105_s0 + $0x298] sm:$0xff]  ;;  %v404_v48 = vld [vmem:[%s6105_s0 + $0x280] sm:$0xff] }
  0xe9   : > { %1489 = vmatprep.subr.mxu0 %v6843_v10  ;;  %1686 = vmatpush2.msra.mxu1 %v6844_v11  ;;  %v6857_v10 = vld [vmem:[#allocation73_spill] sm:$0xff]  ;;  %v6867_v15 = vld [vmem:[#allocation70_spill] sm:$0xff] }
  0xea   : > { %1493 = vmatpush2.msra.mxu0 %v6849_v41  ;;  %1688 = vmatprep.subr.mxu1 %v6850_v42  ;;  %6855 = vst [vmem:[#allocation81_spill] sm:$0xff] %v4683_v27  ;;  %6856 = vst [vmem:[#allocation83_spill] sm:$0xff] %v4685_v43  ;;  %v6858_v11 = vand.u32 4294901760, %v6857_v10  ;;  %v4697_v41 = vsub.f32 %v4617_v23, %v6334_v4  ;;  %v4704_v42 = vand.u32 4294901760, %v408_v25  ;;  %v6863_v10 = vld [vmem:[#allocation68_spill] sm:$0xff]  ;;  %v6865_v4 = vld [vmem:[#allocation77_spill] sm:$0xff] }
  0xeb   : > { %1497 = vmatprep.subr.mxu0 %v6853_v6  ;;  %1690 = vmatpush2.msra.mxu1 %v6854_v50  ;;  %v4710_v6 = vsub.f32 %v413_v32, %v4652_v60  ;;  %v6862_v50 = vand.u32 4294901760, %v6726_v30  ;;  %v6866_v39 = vand.u32 4294901760, %v6865_v4  ;;  %v6868_v32 = vand.u32 4294901760, %v4636_v46  ;;  %v6872_v4 = vld [vmem:[#allocation72_spill] sm:$0xff] }
  0xec   : > { %1501 = vmatpush2.msra.mxu0 %v6858_v11  ;;  %1692 = vmatprep.subr.mxu1 %v6859_v37  ;;  %6860 = vst [vmem:[#allocation85_spill] sm:$0xff] %v4704_v42  ;;  %v4716_v11 = vsub.f32 %v410_v31, %v4665_v24  ;;  %v4728_v30 = vand.u32 4294901760, %v406_v5  ;;  %v405_v31 = vld [vmem:[%s6105_s0 + $0x288] sm:$0xff]  ;;  %v6879_v23 = vand.u32 4294901760, %v6734_v0  ;;  %v402_v0 = vld [vmem:[%s6105_s0 + $0x270] sm:$0xff] }
  0xed   : > { %6861 = vst [vmem:[#allocation87_spill] sm:$0xff] %v4710_v6  ;;  %1505 = vmatprep.subr.mxu0 %v6862_v50  ;;  %1694 = vmatpush2.msra.mxu1 %v6863_v10  ;;  %v4726_v17 = vsub.f32 %v4636_v46, %v6868_v32  ;;  %v4734_v50 = vsub.f32 %v411_v29, %v4676_v7  ;;  %v6871_v10 = vand.u32 4294901760, %v6730_v20  ;;  %v4744_v32 = vand.u32 4294901760, %v407_v3  ;;  %v6880_v37 = vld [vmem:[#allocation76_spill] sm:$0xff] }
  0xee   : > { %6864 = vst [vmem:[#allocation88_spill] sm:$0xff] %v4716_v11  ;;  %1509 = vmatpush2.msra.mxu0 %v6866_v39  ;;  %1696 = vmatprep.subr.mxu1 %v6867_v15  ;;  %6869 = vst [vmem:[#allocation89_spill] sm:$0xff] %v4728_v30  ;;  %v6873_v15 = vand.u32 4294901760, %v4642_v53  ;;  %v4751_v29 = vsub.f32 %v409_v34, %v4685_v43  ;;  %v6876_v20 = vand.u32 4294901760, %v6732_v2  ;;  %v6881_v34 = vand.u32 4294901760, %v4671_v26 }
  0xef   : > { %6870 = vst [vmem:[#allocation91_spill] sm:$0xff] %v4734_v50  ;;  %1513 = vmatprep.subr.mxu0 %v6871_v10  ;;  %1698 = vmatpush2.msra.mxu1 %v6872_v4  ;;  %6874 = vst [vmem:[#allocation92_spill] sm:$0xff] %v4744_v32  ;;  %v6877_v10 = vld [vmem:[#allocation74_spill] sm:$0xff]  ;;  %v4789_v4 = vsub.f32 %v406_v5, %v4728_v30  ;;  %v4791_v46 = vand.u32 4294901760, %v404_v48  ;;  %v400_v5 = vld [vmem:[%s6105_s0 + $0x260] sm:$0xff] }
  0xf0   : > { %v4742_v39 = vsub.f32 %v4642_v53, %v6873_v15  ;;  %6875 = vst [vmem:[#allocation93_spill] sm:$0xff] %v4751_v29  ;;  %1517 = vmatpush2.msra.mxu0 %v6876_v20  ;;  %1700 = vmatprep.subr.mxu1 %v6877_v10  ;;  %v4759_v53 = vsub.f32 %v408_v25, %v4704_v42  ;;  %v6882_v20 = vand.u32 4294901760, %v4663_v16  ;;  %v4775_v15 = vand.u32 4294901760, %v405_v31  ;;  %v403_v25 = vld [vmem:[%s6105_s0 + $0x278] sm:$0xff]  ;;  %v6889_v42 = vld [vmem:[#allocation80_spill] sm:$0xff] }
  0xf1   : > { %1521 = vmatprep.subr.mxu0 %v6879_v23  ;;  %1702 = vmatpush2.msra.mxu1 %v6880_v37  ;;  %v4768_v2 = vsub.f32 %v4671_v26, %v6881_v34  ;;  %v6884_v37 = vand.u32 4294901760, %v6736_v52  ;;  %v6885_v34 = vld [vmem:[#allocation78_spill] sm:$0xff]  ;;  %6886 = vst [vmem:[#allocation4_spill] sm:$0xff] %v4789_v4  ;;  %6887 = vst [vmem:[#allocation14_spill] sm:$0xff] %v4791_v46  ;;  %v6888_v26 = vand.u32 4294901760, %v6737_v62  ;;  %v6890_v52 = vand.u32 4294901760, %v4683_v27 }
  0xf2   : > { %6878 = vst [vmem:[#allocation94_spill] sm:$0xff] %v4759_v53  ;;  %v4773_v10 = vsub.f32 %v4663_v16, %v6882_v20  ;;  %6883 = vst [vmem:[#allocation95_spill] sm:$0xff] %v4775_v15  ;;  %1704 = vmatprep.subr.mxu1 %v6885_v34  ;;  %v4808_v20 = vsub.f32 %v407_v3, %v4744_v32  ;;  %v6892_v62 = vand.u32 4294901760, %v6739_v13  ;;  %v4820_v34 = vand.u32 4294901760, %v402_v0  ;;  %v401_v16 = vld [vmem:[%s6105_s0 + $0x268] sm:$0xff] }
  0xf3   : > { %1525 = vmatpush2.msra.mxu0 %v6884_v37  ;;  %1706 = vmatpush2.msra.mxu1 %v6889_v42  ;;  %v4801_v37 = vsub.f32 %v4683_v27, %v6890_v52  ;;  %v6894_v42 = vand.u32 4294901760, %v4710_v6  ;;  %v4818_v52 = vand.u32 4294901760, %v403_v25  ;;  %v6897_v13 = vand.u32 4294901760, %v6740_v22  ;;  %v6902_v3 = vld [vmem:[#allocation84_spill] sm:$0xff] }
  0xf4   : > { %1529 = vmatprep.subr.mxu0 %v6888_v26  ;;  %6891 = vst [vmem:[#allocation23_spill] sm:$0xff] %v4808_v20  ;;  %v6893_v26 = vld [vmem:[#allocation82_spill] sm:$0xff]  ;;  %6896 = vst [vmem:[#allocation25_spill] sm:$0xff] %v4820_v34  ;;  %v6899_v27 = vand.u32 4294901760, %v4716_v11  ;;  %v4837_v30 = vsub.f32 %v405_v31, %v4775_v15  ;;  %v6901_v32 = vand.u32 4294901760, %v6741_v1  ;;  %v4843_v22 = vsub.f32 %v404_v48, %v4791_v46 }
  0xf5   : > { %1533 = vmatpush2.msra.mxu0 %v6892_v62  ;;  %1708 = vmatprep.subr.mxu1 %v6893_v26  ;;  %v4816_v23 = vsub.f32 %v4710_v6, %v6894_v42  ;;  %6895 = vst [vmem:[#allocation16_spill] sm:$0xff] %v4818_v52  ;;  %v6898_v62 = vld [vmem:[#allocation99_spill] sm:$0xff]  ;;  %v4850_v26 = vand.u32 4294901760, %v400_v5  ;;  %v398_v1 = vld [vmem:[%s6105_s0 + $0x250] sm:$0xff]  ;;  %v6906_v48 = vand.u32 4294901760, %v6742_v49  ;;  %v6910_v15 = vand.u32 4294901760, %v6743_v61 }
  0xf6   : > { %1537 = vmatprep.subr.mxu0 %v6897_v13  ;;  %1591 = vmatprep.mubr.f32.mxu0 %v6898_v62  ;;  %v4834_v6 = vsub.f32 %v4716_v11, %v6899_v27  ;;  %6900 = vst [vmem:[#allocation18_spill] sm:$0xff] %v4837_v30  ;;  %6903 = vst [vmem:[#allocation27_spill] sm:$0xff] %v4843_v22  ;;  %v6904_v13 = vand.u32 4294901760, %v4734_v50  ;;  %v399_v27 = vld [vmem:[%s6105_s0 + $0x258] sm:$0xff]  ;;  %v6909_v11 = vand.u32 4294901760, %v4751_v29  ;;  %v6914_v61 = vand.u32 4294901760, %v6744_v40 }
  0xf7   : > { %1541 = vmatpush2.msra.mxu0 %v6901_v32  ;;  %1710 = vmatpush2.msra.mxu1 %v6902_v3  ;;  %6905 = vst [vmem:[#allocation20_spill] sm:$0xff] %v4850_v26  ;;  %v6907_v32 = vld [vmem:[#allocation86_spill] sm:$0xff]  ;;  %v4887_v46 = vsub.f32 %v403_v25, %v4818_v52  ;;  %v6917_v25 = vand.u32 4294901760, %v6745_v63  ;;  %v6921_v63 = vand.u32 4294901760, %v4244_v28  ;;  %v6925_v28 = vand.u32 4294901760, %v4252_v44 }
  0xf8   : > { %v4848_v42 = vsub.f32 %v4734_v50, %v6904_v13  ;;  %1545 = vmatprep.subr.mxu0 %v6906_v48  ;;  %1712 = vmatprep.subr.mxu1 %v6907_v32  ;;  %v4863_v13 = vand.u32 4294901760, %v401_v16  ;;  %v4868_v50 = vsub.f32 %v4751_v29, %v6909_v11  ;;  %v4876_v48 = vsub.f32 %v402_v0, %v4820_v34  ;;  %v396_v11 = vld [vmem:[%s6105_s0 + $0x240] sm:$0xff]  ;;  %v6918_v31 = vld [vmem:[#allocation90_spill] sm:$0xff] }
  0xf9   : > { %1549 = vmatpush2.msra.mxu0 %v6910_v15  ;;  %1714 = vmatpush2.msra.mxu1 %v4116_v55  ;;  %v6912_v32 = vand.u32 4294901760, %v4759_v53  ;;  %6913 = vst [vmem:[#allocation31_spill] sm:$0xff] %v4887_v46  ;;  %v4893_v15 = vand.u32 4294901760, %v399_v27  ;;  %v4895_v0 = vand.u32 4294901760, %v398_v1  ;;  %v394_v49 = vld [vmem:[%s6105_s0 + $0x230] sm:$0xff]  ;;  %v395_v40 = vld [vmem:[%s6105_s0 + $0x238] sm:$0xff] }
  0xfa   : > { %6908 = vst [vmem:[#allocation29_spill] sm:$0xff] %v4863_v13  ;;  %6911 = vst [vmem:[#allocation22_spill] sm:$0xff] %v4876_v48  ;;  %1553 = vmatprep.subr.mxu0 %v6914_v61  ;;  %1716 = vmatprep.subr.mxu1 %v4133_v47  ;;  %v4906_v47 = vsub.f32 %v400_v5, %v4850_v26  ;;  %v6920_v61 = vand.u32 4294901760, %v4789_v4  ;;  %v6922_v5 = vand.u32 4294901760, %v4808_v20  ;;  %v6947_v29 = vand.u32 4294901760, %v4304_v21 }
  0xfb   : > { %v4881_v3 = vsub.f32 %v4759_v53, %v6912_v32  ;;  %6915 = vst [vmem:[#allocation24_spill] sm:$0xff] %v4893_v15  ;;  %6916 = vst [vmem:[#allocation33_spill] sm:$0xff] %v4895_v0  ;;  %v397_v32 = vld [vmem:[%s6105_s0 + $0x248] sm:$0xff]  ;;  %1557 = vmatpush2.msra.mxu0 %v6917_v25  ;;  %1718 = vmatpush2.msra.mxu1 %v6918_v31  ;;  %v4932_v53 = vsub.f32 %v401_v16, %v4863_v13  ;;  %v6927_v16 = vand.u32 4294901760, %v4256_v12 }
  0xfc   : > { %6919 = vst [vmem:[#allocation26_spill] sm:$0xff] %v4906_v47  ;;  %v4911_v55 = vsub.f32 %v4789_v4, %v6920_v61  ;;  %1561 = vmatprep.subr.mxu0 %v6921_v63  ;;  %1720 = vmatprep.subr.mxu1 %v4159_v8  ;;  %v4924_v25 = vsub.f32 %v4808_v20, %v6922_v5  ;;  %v4926_v61 = vand.u32 4294901760, %v396_v11  ;;  %v4938_v63 = vand.u32 4294901760, %v397_v32  ;;  %v392_v4 = vld [vmem:[%s6105_s0 + $0x220] sm:$0xff]  ;;  %v393_v31 = vld [vmem:[%s6105_s0 + $0x228] sm:$0xff] }
  0xfd   : > { %6924 = vst [vmem:[#allocation28_spill] sm:$0xff] %v4932_v53  ;;  %1565 = vmatpush2.msra.mxu0 %v6925_v28  ;;  %1722 = vmatpush2.msra.mxu1 %v4184_v14  ;;  %v4949_v44 = vsub.f32 %v398_v1, %v4895_v0  ;;  %v6929_v14 = vand.u32 4294901760, %v4837_v30  ;;  %v4956_v8 = vand.u32 4294901760, %v394_v49  ;;  %v4962_v5 = vsub.f32 %v399_v27, %v4893_v15 }
  0xfe   : > { %6923 = vst [vmem:[#allocation35_spill] sm:$0xff] %v4926_v61  ;;  %6926 = vst [vmem:[#allocation37_spill] sm:$0xff] %v4938_v63  ;;  %1569 = vmatprep.subr.mxu0 %v6927_v16  ;;  %1724 = vmatprep.subr.mxu1 %v4200_v45  ;;  %v6932_v12 = vand.u32 4294901760, %v4263_v51  ;;  %v6933_v1 = vand.u32 4294901760, %v4843_v22  ;;  %v6935_v20 = vand.u32 4294901760, %v4276_v58  ;;  %v6938_v45 = vand.u32 4294901760, %v4283_v35 }
  0xff   : > { %6928 = vst [vmem:[#allocation30_spill] sm:$0xff] %v4949_v44  ;;  %v4954_v28 = vsub.f32 %v4837_v30, %v6929_v14  ;;  %6930 = vst [vmem:[#allocation39_spill] sm:$0xff] %v4956_v8  ;;  %1726 = vmatpush2.msra.mxu1 %v4216_v54  ;;  %v4973_v14 = vand.u32 4294901760, %v395_v40  ;;  %1728 = vmatprep.mubr.f32.mxu1 %v6898_v62  ;;  %v4981_v54 = vsub.f32 %v396_v11, %v4926_v61  ;;  %v6939_v58 = vld [vmem:[#allocation100_spill] sm:$0xff]  ;;  %v391_v30 = vld [vmem:[%s6105_s0 + $0x218] sm:$0xff] }
 0x100   : > { %6931 = vst [vmem:[#allocation32_spill] sm:$0xff] %v4962_v5  ;;  %1573 = vmatpush2.msra.mxu0 %v6932_v12  ;;  %v4971_v16 = vsub.f32 %v4843_v22, %v6933_v1  ;;  %v4984_v12 = vand.u32 4294901760, %v392_v4  ;;  %v390_v1 = vld [vmem:[%s6105_s0 + $0x210] sm:$0xff]  ;;  %1730 = vmatmul.mubr.f32.vlgmr.msra.gmra.mxu1 %v6939_v58  ;;  %v6941_v11 = vand.u32 4294901760, %v4876_v48  ;;  %v5002_v27 = vand.u32 4294901760, %v393_v31 }
 0x101   : > { %6934 = vst [vmem:[#allocation41_spill] sm:$0xff] %v4973_v14  ;;  %1577 = vmatprep.subr.mxu0 %v6935_v20  ;;  %6936 = vst [vmem:[#allocation34_spill] sm:$0xff] %v4981_v54  ;;  %v6940_v20 = vand.u32 4294901760, %v4887_v46  ;;  %v5008_v35 = vsub.f32 %v397_v32, %v4938_v63  ;;  %v388_v32 = vld [vmem:[%s6105_s0 + $0x200] sm:$0xff]  ;;  %v5039_v22 = vsub.f32 %v395_v40, %v4973_v14  ;;  %v6952_v21 = vand.u32 4294901760, %v4932_v53 }
 0x102   : > { %6937 = vst [vmem:[#allocation43_spill] sm:$0xff] %v4984_v12  ;;  %1581 = vmatpush2.msra.mxu0 %v6938_v45  ;;  %v5000_v51 = vsub.f32 %v4876_v48, %v6941_v11  ;;  %6942 = vst [vmem:[#allocation36_spill] sm:$0xff] %v5002_v27  ;;  %v6944_v45 = vand.u32 4294901760, %v4287_v59  ;;  %v5016_v11 = vsub.f32 %v394_v49, %v4956_v8  ;;  %v6948_v59 = vand.u32 4294901760, %v4702_v18 }
 0x103   : > { %v4995_v62 = vsub.f32 %v4887_v46, %v6940_v20  ;;  %6943 = vst [vmem:[#allocation45_spill] sm:$0xff] %v5008_v35  ;;  %v6945_v20 = vand.u32 4294901760, %v4697_v41  ;;  %v389_v46 = vld [vmem:[%s6105_s0 + $0x208] sm:$0xff]  ;;  %6951 = vst [vmem:[#allocation40_spill] sm:$0xff] %v5039_v22  ;;  %v5046_v18 = vsub.f32 %v4932_v53, %v6952_v21  ;;  %v6955_v40 = vand.u32 4294901760, %v4726_v17 }
 0x104   : > { %1585 = vmatprep.subr.mxu0 %v6944_v45  ;;  %6946 = vst [vmem:[#allocation38_spill] sm:$0xff] %v5016_v11  ;;  %v6949_v45 = vand.u32 4294901760, %v4906_v47  ;;  %v5060_v21 = vand.u32 4294901760, %v388_v32  ;;  %v6958_v17 = vand.u32 4294901760, %v4962_v5  ;;  %v6959_v41 = vand.u32 4294901760, %v4949_v44 }
 0x105   : > { %1886 = vmatprep.subr.mxu1 %v6945_v20  ;;  %1589 = vmatpush2.msra.mxu0 %v6947_v29  ;;  %v5033_v20 = vand.u32 4294901760, %v390_v1  ;;  %v5049_v29 = vsub.f32 %v392_v4, %v4984_v12  ;;  %v450_v4 = vld [vmem:[%s6105_s0 + $0x3f0] sm:$0xff]  ;;  %v5078_v48 = vand.u32 4294901760, %v389_v46  ;;  %v5084_v53 = vsub.f32 %v393_v31, %v5002_v27 }
 0x106   : > { %1892 = vmatpush1.msra.mxu1 %v6948_v59  ;;  %v5031_v49 = vsub.f32 %v4906_v47, %v6949_v45  ;;  %1593 = vmatmul.mubr.f32.vlgmr.msra.gmra.mxu0 %v6939_v58  ;;  %v5051_v59 = vand.u32 4294901760, %v391_v30  ;;  %6956 = vst [vmem:[#allocation51_spill] sm:$0xff] %v5060_v21  ;;  %v6957_v45 = vand.u32 4294901760, %v4742_v39  ;;  %v5076_v58 = vsub.f32 %v4949_v44, %v6959_v41  ;;  %v451_v47 = vld [vmem:[%s6105_s0 + $0x3f8] sm:$0xff]  ;;  %v449_v44 = vld [vmem:[%s6105_s0 + $0x3e8] sm:$0xff] }
 0x107   : > { %6950 = vst [vmem:[#allocation47_spill] sm:$0xff] %v5033_v20  ;;  %1737 = vmatprep.subr.mxu0 %v4581_v57  ;;  %6953 = vst [vmem:[#allocation49_spill] sm:$0xff] %v5049_v29  ;;  %1898 = vmatprep.subr.mxu1 %v6955_v40  ;;  %v5071_v40 = vsub.f32 %v4962_v5, %v6958_v17  ;;  %v6962_v39 = vand.u32 4294901760, %v4768_v2  ;;  %v5091_v17 = vsub.f32 %v390_v1, %v5033_v20  ;;  %v448_v5 = vld [vmem:[%s6105_s0 + $0x3e0] sm:$0xff] }
 0x108   : > { %6954 = vst [vmem:[#allocation42_spill] sm:$0xff] %v5051_v59  ;;  %1739 = vmatpush1.msra.mxu0 %v4583_v38  ;;  %1904 = vmatpush1.msra.mxu1 %v6957_v45  ;;  %6960 = vst [vmem:[#allocation44_spill] sm:$0xff] %v5078_v48  ;;  %v6964_v31 = vand.u32 4294901760, %v4773_v10  ;;  %v5107_v45 = vand.u32 4294901760, %v450_v4  ;;  %v5113_v41 = vsub.f32 %v391_v30, %v5051_v59  ;;  %v6968_v10 = vand.u32 4294901760, %v4816_v23 }
 0x109   : > { %1741 = vmatprep.subr.mxu0 %v4594_v56  ;;  %6961 = vst [vmem:[#allocation53_spill] sm:$0xff] %v5084_v53  ;;  %1910 = vmatprep.subr.mxu1 %v6962_v39  ;;  %6963 = vst [vmem:[#allocation46_spill] sm:$0xff] %v5091_v17  ;;  %v6965_v39 = vand.u32 4294901760, %v4981_v54  ;;  %v6972_v30 = vand.u32 4294901760, %v4801_v37  ;;  %v6975_v37 = vand.u32 4294901760, %v5039_v22 }
 0x10a   : > { %1743 = vmatpush1.msra.mxu0 %v4605_v9  ;;  %1916 = vmatpush1.msra.mxu1 %v6964_v31  ;;  %6966 = vst [vmem:[#allocation55_spill] sm:$0xff] %v5107_v45  ;;  %6967 = vst [vmem:[#allocation48_spill] sm:$0xff] %v5113_v41  ;;  %v6969_v31 = vand.u32 4294901760, %v5008_v35  ;;  %v7013_v9 = vand.u32 4294901760, %v5046_v18 }
 0x10b   : > { %1745 = vmatprep.subr.mxu0 %v4622_v33  ;;  %v5105_v1 = vsub.f32 %v4981_v54, %v6965_v39  ;;  %1922 = vmatprep.subr.mxu1 %v6968_v10  ;;  %v5124_v39 = vsub.f32 %v388_v32, %v5060_v21  ;;  %v5126_v54 = vand.u32 4294901760, %v451_v47  ;;  %v446_v32 = vld [vmem:[%s6105_s0 + $0x3d0] sm:$0xff]  ;;  %v6974_v33 = vand.u32 4294901760, %v4848_v42 }
 0x10c   : > { %1747 = vmatpush1.msra.mxu0 %v4624_v36  ;;  %v5121_v2 = vsub.f32 %v5008_v35, %v6969_v31  ;;  %1928 = vmatpush1.msra.mxu1 %v6972_v30  ;;  %v5135_v31 = vand.u32 4294901760, %v448_v5  ;;  %v5146_v30 = vsub.f32 %v5039_v22, %v6975_v37  ;;  %v6976_v10 = vand.u32 4294901760, %v5016_v11  ;;  %v447_v35 = vld [vmem:[%s6105_s0 + $0x3d8] sm:$0xff]  ;;  %v444_v22 = vld [vmem:[%s6105_s0 + $0x3c0] sm:$0xff] }
 0x10d   : > { %6970 = vst [vmem:[#allocation57_spill] sm:$0xff] %v5124_v39  ;;  %6971 = vst [vmem:[#allocation50_spill] sm:$0xff] %v5126_v54  ;;  %1749 = vmatprep.subr.mxu0 %v4652_v60  ;;  %1934 = vmatprep.subr.mxu1 %v6974_v33  ;;  %v5153_v36 = vand.u32 4294901760, %v449_v44  ;;  %v6979_v33 = vand.u32 4294901760, %v4834_v6  ;;  %v5166_v37 = vsub.f32 %v450_v4, %v5107_v45  ;;  %v5182_v42 = vand.u32 4294901760, %v446_v32  ;;  %v440_v60 = vld [vmem:[%s6105_s0 + $0x3a0] sm:$0xff] }
 0x10e   : > { %6973 = vst [vmem:[#allocation59_spill] sm:$0xff] %v5135_v31  ;;  %1751 = vmatpush1.msra.mxu0 %v4644_v19  ;;  %v5151_v23 = vsub.f32 %v5016_v11, %v6976_v10  ;;  %v5159_v19 = vsub.f32 %v389_v46, %v5078_v48  ;;  %v6981_v46 = vand.u32 4294901760, %v4868_v50  ;;  %v445_v11 = vld [vmem:[%s6105_s0 + $0x3c8] sm:$0xff]  ;;  %v5188_v10 = vsub.f32 %v451_v47, %v5126_v54 }
 0x10f   : > { %6977 = vst [vmem:[#allocation52_spill] sm:$0xff] %v5153_v36  ;;  %1753 = vmatprep.subr.mxu0 %v4676_v7  ;;  %1940 = vmatpush1.msra.mxu1 %v6979_v33  ;;  %6980 = vst [vmem:[#allocation54_spill] sm:$0xff] %v5166_v37  ;;  %v6982_v33 = vand.u32 4294901760, %v5049_v29  ;;  %v6985_v50 = vand.u32 4294901760, %v4881_v3  ;;  %v6989_v7 = vld [vmem:[#allocation85_spill] sm:$0xff]  ;;  %v6990_v47 = vand.u32 4294901760, %v4924_v25 }
 0x110   : > { %6978 = vst [vmem:[#allocation61_spill] sm:$0xff] %v5159_v19  ;;  %1755 = vmatpush1.msra.mxu0 %v4665_v24  ;;  %1946 = vmatprep.subr.mxu1 %v6981_v46  ;;  %6983 = vst [vmem:[#allocation63_spill] sm:$0xff] %v5182_v42  ;;  %v6986_v46 = vand.u32 4294901760, %v5084_v53  ;;  %v6993_v24 = vand.u32 4294901760, %v4911_v55  ;;  %v6994_v25 = vand.u32 4294901760, %v5113_v41  ;;  %v6999_v55 = vand.u32 4294901760, %v4954_v28 }
 0x111   : > { %v5180_v4 = vsub.f32 %v5049_v29, %v6982_v33  ;;  %6984 = vst [vmem:[#allocation56_spill] sm:$0xff] %v5188_v10  ;;  %1757 = vmatprep.subr.mxu0 %v4685_v43  ;;  %1952 = vmatpush1.msra.mxu1 %v6985_v50  ;;  %v5199_v33 = vsub.f32 %v448_v5, %v5135_v31  ;;  %v5201_v29 = vand.u32 4294901760, %v447_v35  ;;  %v442_v5 = vld [vmem:[%s6105_s0 + $0x3b0] sm:$0xff]  ;;  %v6995_v50 = vand.u32 4294901760, %v5091_v17 }
 0x112   : > { %v5196_v6 = vsub.f32 %v5084_v53, %v6986_v46  ;;  %1759 = vmatpush1.msra.mxu0 %v6989_v7  ;;  %1958 = vmatprep.subr.mxu1 %v6990_v47  ;;  %v5210_v46 = vand.u32 4294901760, %v444_v22  ;;  %v6992_v53 = vld [vmem:[#allocation92_spill] sm:$0xff]  ;;  %v5221_v47 = vsub.f32 %v5113_v41, %v6994_v25  ;;  %v5228_v43 = vand.u32 4294901760, %v445_v11  ;;  %v443_v7 = vld [vmem:[%s6105_s0 + $0x3b8] sm:$0xff] }
 0x113   : > { %6987 = vst [vmem:[#allocation65_spill] sm:$0xff] %v5199_v33  ;;  %6988 = vst [vmem:[#allocation58_spill] sm:$0xff] %v5201_v29  ;;  %1761 = vmatprep.subr.mxu0 %v6992_v53  ;;  %1964 = vmatpush1.msra.mxu1 %v6993_v24  ;;  %v5226_v3 = vsub.f32 %v5091_v17, %v6995_v50  ;;  %v5234_v53 = vsub.f32 %v449_v44, %v5153_v36  ;;  %v6998_v24 = vld [vmem:[#allocation89_spill] sm:$0xff]  ;;  %v7001_v44 = vld [vmem:[#allocation95_spill] sm:$0xff]  ;;  %v5257_v25 = vand.u32 4294901760, %v442_v5 }
 0x114   : > { %6991 = vst [vmem:[#allocation67_spill] sm:$0xff] %v5210_v46  ;;  %6996 = vst [vmem:[#allocation60_spill] sm:$0xff] %v5228_v43  ;;  %1763 = vmatpush1.msra.mxu0 %v6998_v24  ;;  %1970 = vmatprep.subr.mxu1 %v6999_v55  ;;  %v5241_v41 = vsub.f32 %v446_v32, %v5182_v42  ;;  %v7002_v24 = vand.u32 4294901760, %v4971_v16  ;;  %v7003_v55 = vand.u32 4294901760, %v5124_v39  ;;  %v441_v17 = vld [vmem:[%s6105_s0 + $0x3a8] sm:$0xff]  ;;  %v7007_v16 = vand.u32 4294901760, %v4995_v62 }
 0x115   : > { %6997 = vst [vmem:[#allocation69_spill] sm:$0xff] %v5234_v53  ;;  %1765 = vmatprep.subr.mxu0 %v7001_v44  ;;  %7004 = vst [vmem:[#allocation71_spill] sm:$0xff] %v5257_v25  ;;  %v5263_v50 = vsub.f32 %v447_v35, %v5201_v29  ;;  %v7006_v44 = vld [vmem:[#allocation14_spill] sm:$0xff]  ;;  %v7011_v35 = vand.u32 4294901760, %v5000_v51  ;;  %v7014_v51 = vand.u32 4294901760, %v5188_v10 }
 0x116   : > { %7000 = vst [vmem:[#allocation62_spill] sm:$0xff] %v5241_v41  ;;  %1976 = vmatpush1.msra.mxu1 %v7002_v24  ;;  %v5255_v32 = vsub.f32 %v5124_v39, %v7003_v55  ;;  %1767 = vmatpush1.msra.mxu0 %v7006_v44  ;;  %v7008_v24 = vand.u32 4294901760, %v5159_v19  ;;  %v5274_v55 = vsub.f32 %v444_v22, %v5210_v46  ;;  %v5276_v39 = vand.u32 4294901760, %v443_v7  ;;  %v438_v22 = vld [vmem:[%s6105_s0 + $0x390] sm:$0xff] }
 0x117   : > { %7005 = vst [vmem:[#allocation64_spill] sm:$0xff] %v5263_v50  ;;  %1982 = vmatprep.subr.mxu1 %v7007_v16  ;;  %1769 = vmatprep.subr.mxu0 %v4818_v52  ;;  %v7015_v16 = vand.u32 4294901760, %v5166_v37  ;;  %v5303_v44 = vand.u32 4294901760, %v441_v17  ;;  %v5332_v18 = vand.u32 4294901760, %v438_v22 }
 0x118   : > { %v5271_v28 = vsub.f32 %v5159_v19, %v7008_v24  ;;  %7009 = vst [vmem:[#allocation73_spill] sm:$0xff] %v5274_v55  ;;  %7010 = vst [vmem:[#allocation66_spill] sm:$0xff] %v5276_v39  ;;  %1988 = vmatpush1.msra.mxu1 %v7011_v35  ;;  %v5285_v24 = vand.u32 4294901760, %v440_v60  ;;  %1771 = vmatpush1.msra.mxu0 %v4820_v34  ;;  %v5296_v35 = vsub.f32 %v5188_v10, %v7014_v51  ;;  %v439_v19 = vld [vmem:[%s6105_s0 + $0x398] sm:$0xff]  ;;  %v436_v10 = vld [vmem:[%s6105_s0 + $0x380] sm:$0xff] }
 0x119   : > { %1994 = vmatprep.subr.mxu1 %v7013_v9  ;;  %v5301_v62 = vsub.f32 %v5166_v37, %v7015_v16  ;;  %v5309_v34 = vsub.f32 %v445_v11, %v5228_v43  ;;  %1773 = vmatprep.subr.mxu0 %v4863_v13  ;;  %v7017_v9 = vand.u32 4294901760, %v5031_v49  ;;  %v5316_v51 = vsub.f32 %v442_v5, %v5257_v25  ;;  %v437_v37 = vld [vmem:[%s6105_s0 + $0x388] sm:$0xff] }
 0x11a   : > { %7012 = vst [vmem:[#allocation68_spill] sm:$0xff] %v5285_v24  ;;  %1775 = vmatpush1.msra.mxu0 %v4850_v26  ;;  %v7019_v11 = vand.u32 4294901760, %v5071_v40  ;;  %v5338_v16 = vsub.f32 %v443_v7, %v5276_v39  ;;  %v7022_v40 = vand.u32 4294901760, %v5076_v58  ;;  %v7026_v7 = vand.u32 4294901760, %v5121_v2 }
 0x11b   : > { %7016 = vst [vmem:[#allocation77_spill] sm:$0xff] %v5309_v34  ;;  %2000 = vmatpush1.msra.mxu1 %v7017_v9  ;;  %7018 = vst [vmem:[#allocation70_spill] sm:$0xff] %v5316_v51  ;;  %v7020_v9 = vand.u32 4294901760, %v5199_v33  ;;  %1777 = vmatprep.subr.mxu0 %v4893_v15  ;;  %v7027_v26 = vand.u32 4294901760, %v5105_v1  ;;  %v7028_v2 = vand.u32 4294901760, %v5263_v50  ;;  %v5378_v15 = vand.u32 4294901760, %v437_v37 }
 0x11c   : > { %2006 = vmatprep.subr.mxu1 %v7019_v11  ;;  %7021 = vst [vmem:[#allocation72_spill] sm:$0xff] %v5338_v16  ;;  %v7023_v11 = vand.u32 4294901760, %v5234_v53  ;;  %1779 = vmatpush1.msra.mxu0 %v4895_v0 }
 0x11d   : > { %v5330_v5 = vsub.f32 %v5199_v33, %v7020_v9  ;;  %2012 = vmatpush1.msra.mxu1 %v7022_v40  ;;  %v5349_v9 = vsub.f32 %v440_v60, %v5285_v24  ;;  %v5351_v33 = vand.u32 4294901760, %v439_v19  ;;  %v434_v60 = vld [vmem:[%s6105_s0 + $0x370] sm:$0xff]  ;;  %1781 = vmatprep.subr.mxu0 %v4938_v63  ;;  %v7029_v40 = vand.u32 4294901760, %v5241_v41 }
 0x11e   : > { %v5346_v49 = vsub.f32 %v5234_v53, %v7023_v11  ;;  %2018 = vmatprep.subr.mxu1 %v7026_v7  ;;  %v5360_v11 = vand.u32 4294901760, %v436_v10  ;;  %v5371_v7 = vsub.f32 %v5263_v50, %v7028_v2  ;;  %v435_v53 = vld [vmem:[%s6105_s0 + $0x378] sm:$0xff]  ;;  %v5384_v63 = vsub.f32 %v441_v17, %v5303_v44  ;;  %1783 = vmatpush1.msra.mxu0 %v4926_v61  ;;  %v432_v50 = vld [vmem:[%s6105_s0 + $0x360] sm:$0xff] }
 0x11f   : > { %7024 = vst [vmem:[#allocation74_spill] sm:$0xff] %v5349_v9  ;;  %7025 = vst [vmem:[#allocation76_spill] sm:$0xff] %v5351_v33  ;;  %2024 = vmatpush1.msra.mxu1 %v7027_v26  ;;  %v5376_v58 = vsub.f32 %v5241_v41, %v7029_v40  ;;  %v7031_v26 = vand.u32 4294901760, %v5146_v30  ;;  %v5391_v2 = vsub.f32 %v438_v22, %v5332_v18  ;;  %1785 = vmatprep.subr.mxu0 %v4973_v14  ;;  %v5412_v41 = vld [vmem:[%s6105_s0 + $0x368] sm:$0xff] }
 0x120   : > { %7030 = vst [vmem:[#allocation78_spill] sm:$0xff] %v5384_v63  ;;  %v7033_v17 = vand.u32 4294901760, %v5151_v23  ;;  %v2089_v30 = vand.u32 4294901760, %v5346_v49  ;;  %v5407_v1 = vand.u32 4294901760, %v434_v60  ;;  %v5415_v40 = vsub.f32 %v439_v19, %v5351_v33  ;;  %1787 = vmatpush1.msra.mxu0 %v4956_v8 }
 0x121   : > { %2030 = vmatprep.subr.mxu1 %v7031_v26  ;;  %7032 = vst [vmem:[#allocation80_spill] sm:$0xff] %v5391_v2  ;;  %v7034_v26 = vand.u32 4294901760, %v5274_v55  ;;  %v7036_v23 = vand.u32 4294901760, %v5196_v6  ;;  %v7037_v49 = vand.u32 4294901760, %v5309_v34  ;;  %1789 = vmatprep.subr.mxu0 %v5002_v27  ;;  %v7039_v19 = vand.u32 4294901760, %v5180_v4 }
 0x122   : > { %2036 = vmatpush1.msra.mxu1 %v7033_v17  ;;  %7035 = vst [vmem:[#allocation82_spill] sm:$0xff] %v5415_v40  ;;  %v2101_v6 = vand.u32 4294901760, %v5371_v7  ;;  %1791 = vmatpush1.msra.mxu0 %v4984_v12  ;;  %v7040_v14 = vand.u32 4294901760, %v5221_v47  ;;  %v7041_v4 = vand.u32 4294901760, %v5338_v16  ;;  %v7042_v7 = vand.u32 4294901760, %v5316_v51 }
 0x123   : > { %v5405_v22 = vsub.f32 %v5274_v55, %v7034_v26  ;;  %2042 = vmatprep.subr.mxu1 %v7036_v23  ;;  %v5423_v17 = vsub.f32 %v5309_v34, %v7037_v49  ;;  %v5426_v26 = vsub.f32 %v436_v10, %v5360_v11  ;;  %v5428_v55 = vand.u32 4294901760, %v435_v53  ;;  %v430_v10 = vld [vmem:[%s6105_s0 + $0x350] sm:$0xff]  ;;  %v5461_v12 = vld [vmem:[#allocation3] sm:$0x3]  ;;  %1793 = vmatprep.subr.mxu0 %v5051_v59  ;;  %v7051_v59 = vld [vmem:[#allocation96_spill] sm:$0xff] }
 0x124   : > { %2048 = vmatpush1.msra.mxu1 %v7039_v19  ;;  %v5437_v49 = vand.u32 4294901760, %v432_v50  ;;  %v5448_v19 = vsub.f32 %v5338_v16, %v7041_v4  ;;  %v5453_v23 = vsub.f32 %v5316_v51, %v7042_v7  ;;  %v5456_v8 = vand.u32 4294901760, %v5412_v41  ;;  %v431_v7 = vld [vmem:[%s6105_s0 + $0x358] sm:$0xff]  ;;  %1795 = vmatpush1.msra.mxu0 %v5033_v20  ;;  %v429_v51 = vld [vmem:[%s6105_s0 + $0x348] sm:$0xff]  ;;  %v426_v20 = vld [vmem:[%s6105_s0 + $0x330] sm:$0xff] }
 0x125   : > { %7038 = vst [vmem:[#allocation99_spill] sm:$0xff] %v5426_v26  ;;  %2054 = vmatprep.subr.mxu1 %v7040_v14  ;;  %v5459_v34 = vsub.f32 %v437_v37, %v5378_v15  ;;  %v7044_v14 = vand.u32 4294901760, %v5226_v3  ;;  %v5468_v4 = vsub.f32 %v434_v60, %v5407_v1  ;;  %v7046_v16 = vand.u32 4294901760, %v5271_v28  ;;  %v428_v37 = vld [vmem:[%s6105_s0 + $0x340] sm:$0xff]  ;;  %1797 = vmatprep.subr.mxu0 %v5078_v48 }
 0x126   : > { %v2113_v3 = vand.u32 4294901760, %v5423_v17  ;;  %v5484_v47 = vand.u32 4294901760, %v430_v10  ;;  %v5493_v28 = vsub.f32 %v435_v53, %v5428_v55  ;;  %v7050_v17 = vand.u32 4294901760, %v5384_v63  ;;  %1799 = vmatpush1.msra.mxu0 %v5060_v21 }
 0x127   : > { %7043 = vst [vmem:[#allocation84_spill] sm:$0xff] %v5459_v34  ;;  %2060 = vmatpush1.msra.mxu1 %v7044_v14  ;;  %7045 = vst [vmem:[#allocation86_spill] sm:$0xff] %v5468_v4  ;;  %v7047_v14 = vand.u32 4294901760, %v5349_v9  ;;  %v7052_v27 = vsub.s32 1, %v7051_v59  ;;  %v7053_v48 = vand.u32 4294901760, %v5296_v35  ;;  %1801 = vmatprep.subr.mxu0 %v5126_v54  ;;  %v7055_v35 = vand.u32 4294901760, %v5415_v40 }
 0x128   : > { %2066 = vmatprep.subr.mxu1 %v7046_v16  ;;  %7048 = vst [vmem:[#allocation90_spill] sm:$0xff] %v5493_v28  ;;  %v7049_v16 = vand.u32 4294901760, %v5255_v32  ;;  %v2125_v32 = vand.u32 4294901760, %v5448_v19  ;;  %v424_v54 = vld [vmem:[%s6105_s0 + $0x320] sm:$0xff]  ;;  %1803 = vmatpush2.msra.mxu0 %v5107_v45  ;;  %v5563_v45 = vand.u32 4294901760, %v426_v20 }
 0x129   : > { %v5482_v60 = vsub.f32 %v5349_v9, %v7047_v14  ;;  %v5501_v14 = vsub.f32 %v5384_v63, %v7050_v17  ;;  %v5504_v9 = vsub.f32 %v432_v50, %v5437_v49  ;;  %v321_v53 = vrot.slane %v5461_v12, %v7052_v27  ;;  %1805 = vmatprep.subr.mxu0 %v5153_v36 }
 0x12a   : > { %2072 = vmatpush1.msra.mxu1 %v7049_v16  ;;  %v2131_v16 = vand.u32 4294901760, %v5453_v23  ;;  %v5515_v17 = vand.u32 4294901760, %v431_v7  ;;  %v7054_v27 = vand.u32 4294901760, %v5301_v62  ;;  %v7056_v23 = vand.u32 4294901760, %v5391_v2  ;;  %7063 = vst [vmem:[#allocation103_spill] sm:$0xff] %v5563_v45  ;;  %1807 = vmatpush2.msra.mxu0 %v5135_v31 }
 0x12b   : > { %2078 = vmatprep.subr.mxu1 %v7053_v48  ;;  %v5527_v48 = vsub.f32 %v5415_v40, %v7055_v35  ;;  %v5534_v50 = vand.u32 4294901760, %v429_v51  ;;  %v5536_v63 = vand.u32 4294901760, %v428_v37  ;;  %v2143_v62 = vand.u32 4294901760, %v5482_v60  ;;  %v427_v35 = vld [vmem:[%s6105_s0 + $0x338] sm:$0xff]  ;;  %1809 = vmatprep.subr.mxu0 %v5201_v29 }
 0x12c   : > { %2084 = vmatpush2.msra.mxu1 %v7054_v27  ;;  %v5532_v19 = vsub.f32 %v5391_v2, %v7056_v23  ;;  %v5544_v27 = vsub.f32 %v430_v10, %v5484_v47  ;;  %v5552_v2 = vsub.f32 %v5412_v41, %v5456_v8  ;;  %v7061_v40 = vand.u32 4294901760, %v5330_v5  ;;  %v425_v23 = vld [vmem:[%s6105_s0 + $0x328] sm:$0xff]  ;;  %1811 = vmatpush2.msra.mxu0 %v5182_v42 }
 0x12d   : > { %7057 = vst [vmem:[#allocation100_spill] sm:$0xff] %v5534_v50  ;;  %7058 = vst [vmem:[#allocation96_spill] sm:$0xff] %v5536_v63  ;;  %2090 = vmatprep.subr.mxu1 %v2089_v30  ;;  %v2137_v30 = vand.u32 4294901760, %v5501_v14  ;;  %v7062_v10 = vand.u32 4294901760, %v5426_v26  ;;  %v5568_v41 = vand.u32 4294901760, %v321_v53  ;;  %v7065_v5 = vand.u32 4294901760, %v5459_v34  ;;  %1813 = vmatprep.subr.mxu0 %v5228_v43 }
 0x12e   : > { %7059 = vst [vmem:[#allocation101_spill] sm:$0xff] %v5544_v27  ;;  %7060 = vst [vmem:[#allocation102_spill] sm:$0xff] %v5552_v2  ;;  %2096 = vmatpush2.msra.mxu1 %v7061_v40  ;;  %v7068_v36 = vand.u32 4294901760, %v5376_v58  ;;  %v2149_v31 = vand.u32 4294901760, %v5527_v48  ;;  %v5588_v21 = vsub.f32 %v428_v37, %v5536_v63  ;;  %v423_v58 = vld [vmem:[%s6105_s0 + $0x318] sm:$0xff]  ;;  %v5605_v37 = vsub.f32 %v429_v51, %v5534_v50 }
 0x12f   : > { %v5561_v60 = vsub.f32 %v5426_v26, %v7062_v10  ;;  %7064 = vst [vmem:[#allocation104_spill] sm:$0xff] %v5568_v41  ;;  %2102 = vmatprep.subr.mxu1 %v2101_v6  ;;  %v5574_v40 = vsub.f32 %v5459_v34, %v7065_v5  ;;  %v5577_v10 = vand.u32 4294901760, %v424_v54  ;;  %v5580_v26 = vsub.f32 %v431_v7, %v5515_v17 }
 0x130   : > { %2108 = vmatpush2.msra.mxu1 %v7068_v36  ;;  %v2155_v6 = vand.u32 4294901760, %v5532_v19  ;;  %v5590_v5 = vand.u32 4294901760, %v427_v35  ;;  %v7069_v7 = vand.u32 4294901760, %v5493_v28  ;;  %v5598_v34 = vand.u32 4294901760, %v425_v23  ;;  %v422_v36 = vld [vmem:[%s6105_s0 + $0x310] sm:$0xff]  ;;  %1815 = vmatpush2.msra.mxu0 %v5210_v46 }
 0x131   : > { %7066 = vst [vmem:[#allocation105_spill] sm:$0xff] %v5577_v10  ;;  %7067 = vst [vmem:[#allocation106_spill] sm:$0xff] %v5580_v26  ;;  %2114 = vmatprep.subr.mxu1 %v2113_v3  ;;  %v7071_v3 = vand.u32 4294901760, %v5405_v22  ;;  %v2167_v48 = vand.u32 4294901760, %v5561_v60  ;;  %v5612_v19 = vsub.f32 %v426_v20, %v5563_v45  ;;  %v2161_v51 = vand.u32 4294901760, %v5574_v40  ;;  %1817 = vmatprep.subr.mxu0 %v5276_v39  ;;  %v420_v40 = vld [vmem:[%s6105_s0 + $0x300] sm:$0xff] }
 0x132   : > { %v5596_v14 = vsub.f32 %v5493_v28, %v7069_v7  ;;  %7070 = vst [vmem:[#allocation107_spill] sm:$0xff] %v5598_v34  ;;  %v5619_v28 = vsub.f32 %v321_v53, %v5568_v41  ;;  %v7072_v22 = vand.u32 4294901760, %v5468_v4  ;;  %v5627_v20 = vsub.f32 %v424_v54, %v5577_v10  ;;  %v421_v7 = vld [vmem:[%s6105_s0 + $0x308] sm:$0xff]  ;;  %1819 = vmatpush2.msra.mxu0 %v5257_v25 }
 0x133   : > { %2120 = vmatpush2.msra.mxu1 %v7071_v3  ;;  %v5634_v53 = vand.u32 4294901760, %v423_v58  ;;  %v7073_v54 = vsub.s32 0, %v7051_v59  ;;  %v5644_v3 = vsub.f32 %v427_v35, %v5590_v5  ;;  %v5651_v39 = vand.u32 4294901760, %v422_v36  ;;  %1821 = vmatprep.subr.mxu0 %v5303_v44 }
 0x134   : > { %2126 = vmatprep.subr.mxu1 %v2125_v32  ;;  %v2178_v60 = vsub.f32 %v5468_v4, %v7072_v22  ;;  %v7074_v4 = vand.u32 4294901760, %v5552_v2  ;;  %v5658_v35 = vand.u32 4294901760, %v421_v7  ;;  %1823 = vmatpush2.msra.mxu0 %v5285_v24 }
 0x135   : > { %2132 = vmatpush2.msra.mxu1 %v2131_v16  ;;  %v317_v22 = vrot.slane %v5461_v12, %v7073_v54  ;;  %v2173_v16 = vand.u32 4294901760, %v5596_v14  ;;  %v7075_v12 = vand.u32 4294901760, %v5504_v9  ;;  %v5662_v14 = vsub.f32 %v425_v23, %v5598_v34  ;;  %1825 = vmatprep.subr.mxu0 %v5351_v33 }
 0x136   : > { %2138 = vmatprep.subr.mxu1 %v2137_v30  ;;  %v2184_v32 = vsub.f32 %v5552_v2, %v7074_v4  ;;  %v2179_v4 = vand.u32 4294901760, %v2178_v60  ;;  %v7076_v54 = vand.u32 4294901760, %v5580_v26  ;;  %v5679_v60 = vsub.f32 %v423_v58, %v5634_v53  ;;  %1827 = vmatpush2.msra.mxu0 %v5332_v18 }
 0x137   : > { %2144 = vmatpush2.msra.mxu1 %v2143_v62  ;;  %v2190_v59 = vsub.f32 %v5504_v9, %v7075_v12  ;;  %v5668_v62 = vand.u32 4294901760, %v420_v40  ;;  %v7077_v12 = vand.u32 4294901760, %v5544_v27  ;;  %v5675_v30 = vand.u32 4294901760, %v317_v22  ;;  %1829 = vmatprep.subr.mxu0 %v5378_v15 }
 0x138   : > { %2150 = vmatprep.subr.mxu1 %v2149_v31  ;;  %v2196_v46 = vsub.f32 %v5580_v26, %v7076_v54  ;;  %v2185_v54 = vand.u32 4294901760, %v2184_v32  ;;  %v5683_v2 = vsub.f32 %v422_v36, %v5651_v39  ;;  %v7080_v58 = vand.u32 4294901760, %v5619_v28  ;;  %1831 = vmatpush2.msra.mxu0 %v5360_v11 }
 0x139   : > { %2156 = vmatpush2.msra.mxu1 %v2155_v6  ;;  %v2202_v23 = vsub.f32 %v5544_v27, %v7077_v12  ;;  %7078 = vst [vmem:[#allocation108_spill] sm:$0xff] %v5675_v30  ;;  %v7079_v6 = vand.u32 4294901760, %v5605_v37  ;;  %v2191_v31 = vand.u32 4294901760, %v2190_v59  ;;  %v5695_v32 = vsub.f32 %v421_v7, %v5658_v35  ;;  %1833 = vmatprep.subr.mxu0 %v5428_v55 }
 0x13a   : > { %2162 = vmatprep.subr.mxu1 %v2161_v51  ;;  %v1867_v27 = vsub.f32 %v5619_v28, %v7080_v58  ;;  %v2197_v36 = vand.u32 4294901760, %v2196_v46  ;;  %v7081_v12 = vand.u32 4294901760, %v5588_v21  ;;  %v5707_v7 = vsub.f32 %v317_v22, %v5675_v30  ;;  %1835 = vmatpush2.msra.mxu0 %v5407_v1 }
 0x13b   : > { %v2208_v26 = vsub.f32 %v5605_v37, %v7079_v6  ;;  %2168 = vmatpush2.msra.mxu1 %v2167_v48  ;;  %v5699_v6 = vsub.f32 %v420_v40, %v5668_v62  ;;  %v2203_v58 = vand.u32 4294901760, %v2202_v23  ;;  %v7082_v51 = vand.u32 4294901760, %v5644_v3  ;;  %1837 = vmatprep.subr.mxu0 %v5456_v8 }
 0x13c   : > { %2174 = vmatprep.subr.mxu1 %v2173_v16  ;;  %v2214_v48 = vsub.f32 %v5588_v21, %v7081_v12  ;;  %v7083_v12 = vand.u32 4294901760, %v5612_v19  ;;  %v1868_v22 = vand.u32 4294901760, %v1867_v27  ;;  %v7084_v23 = vand.u32 4294901760, %v5662_v14  ;;  %1839 = vmatpush2.msra.mxu0 %v5437_v49 }
 0x13d   : > { %2180 = vmatpush2.msra.mxu1 %v2179_v4  ;;  %v2220_v46 = vsub.f32 %v5644_v3, %v7082_v51  ;;  %v2209_v16 = vand.u32 4294901760, %v2208_v26  ;;  %1841 = vmatprep.subr.mxu0 %v5515_v17  ;;  %v7089_v27 = vand.u32 4294901760, %v5699_v6 }
 0x13e   : > { %2186 = vmatprep.subr.mxu1 %v2185_v54  ;;  %v2226_v59 = vsub.f32 %v5612_v19, %v7083_v12  ;;  %v2232_v51 = vsub.f32 %v5662_v14, %v7084_v23  ;;  %v2215_v26 = vand.u32 4294901760, %v2214_v48  ;;  %v7085_v54 = vand.u32 4294901760, %v5627_v20  ;;  %1843 = vmatpush2.msra.mxu0 %v5484_v47 }
 0x13f   : > { %2192 = vmatpush2.msra.mxu1 %v2191_v31  ;;  %v2221_v31 = vand.u32 4294901760, %v2220_v46  ;;  %v7086_v23 = vand.u32 4294901760, %v5679_v60  ;;  %v7087_v48 = vand.u32 4294901760, %v5683_v2  ;;  %1845 = vmatprep.subr.mxu0 %v5534_v50 }
 0x140   : > { %2198 = vmatprep.subr.mxu1 %v2197_v36  ;;  %v2238_v12 = vsub.f32 %v5627_v20, %v7085_v54  ;;  %v2227_v36 = vand.u32 4294901760, %v2226_v59  ;;  %1869 = vmatprep.mubr.f32.mxu0 %v1868_v22  ;;  %v2233_v4 = vand.u32 4294901760, %v2232_v51  ;;  %v2262_v59 = vsub.f32 %v5699_v6, %v7089_v27 }
 0x141   : > { %2204 = vmatpush2.msra.mxu1 %v2203_v58  ;;  %v2244_v40 = vsub.f32 %v5679_v60, %v7086_v23  ;;  %v2250_v54 = vsub.f32 %v5683_v2, %v7087_v48  ;;  %v7088_v58 = vand.u32 4294901760, %v5695_v32  ;;  %1847 = vmatpush2.msra.mxu0 %v5536_v63 }
 0x142   : > { %2210 = vmatprep.subr.mxu1 %v2209_v16  ;;  %v2239_v23 = vand.u32 4294901760, %v2238_v12  ;;  %1849 = vmatprep.subr.mxu0 %v5590_v5  ;;  %v7090_v16 = vand.u32 4294901760, %v5707_v7  ;;  %v2263_v12 = vand.u32 4294901760, %v2262_v59  ;;  %v7099_v59 = vld [vmem:[#allocation81_spill] sm:$0xff] }
 0x143   : > { %v2256_v46 = vsub.f32 %v5695_v32, %v7088_v58  ;;  %2216 = vmatpush2.msra.mxu1 %v2215_v26  ;;  %v2245_v22 = vand.u32 4294901760, %v2244_v40  ;;  %1851 = vmatpush2.msra.mxu0 %v5563_v45  ;;  %v2251_v51 = vand.u32 4294901760, %v2250_v54  ;;  %v7091_v40 = vld [vmem:[#allocation8_spill] sm:$0xff]  ;;  %v7095_v54 = vld [vmem:[#allocation75_spill] sm:$0xff] }
 0x144   : > { %v1873_v48 = vsub.f32 %v5707_v7, %v7090_v16  ;;  %2222 = vmatprep.subr.mxu1 %v2221_v31  ;;  %1853 = vmatprep.subr.mxu0 %v5598_v34  ;;  %v7093_v31 = vld [vmem:[#allocation13_spill] sm:$0xff]  ;;  %v7096_v58 = vld [vmem:[#allocation19_spill] sm:$0xff] }
 0x145   : > { %2228 = vmatpush2.msra.mxu1 %v2227_v36  ;;  %v2257_v26 = vand.u32 4294901760, %v2256_v46  ;;  %1855 = vmatpush2.msra.mxu0 %v5577_v10  ;;  %v7094_v36 = vld [vmem:[#allocation12_spill] sm:$0xff]  ;;  %v7097_v46 = vld [vmem:[#allocation87_spill] sm:$0xff] }
 0x146   : > { %2234 = vmatprep.subr.mxu1 %v2233_v4  ;;  %1857 = vmatprep.subr.mxu0 %v5634_v53  ;;  %v1874_v27 = vand.u32 4294901760, %v1873_v48  ;;  %v7092_v4 = vld [vmem:[#allocation9_spill] sm:$0xff]  ;;  %v7100_v16 = vld [vmem:[#allocation11_spill] sm:$0xff] }
 0x147   : > { %2240 = vmatpush2.msra.mxu1 %v2239_v23  ;;  %1859 = vmatpush2.msra.mxu0 %v5651_v39  ;;  %v7098_v23 = vld [vmem:[#allocation6_spill] sm:$0xff]  ;;  %v7101_v48 = vld [vmem:[#allocation91_spill] sm:$0xff] }
 0x148   : > { %2246 = vmatprep.subr.mxu1 %v2245_v22  ;;  %1861 = vmatprep.subr.mxu0 %v5658_v35  ;;  %v7102_v22 = vld [vmem:[#allocation10_spill] sm:$0xff] }
 0x149   : > { %2252 = vmatpush2.msra.mxu1 %v2251_v51  ;;  %1863 = vmatpush2.msra.mxu0 %v5668_v62  ;;  %v7103_v51 = vld [vmem:[#allocation88_spill] sm:$0xff] }
 0x14a   : > { %2258 = vmatprep.subr.mxu1 %v2257_v26  ;;  %1875 = vmatmul.mubr.f32.vlgmr.msra.gmra.mxu0 %v1874_v27  ;;  %v7104_v26 = vld [vmem:[#allocation17_spill] sm:$0xff]  ;;  %v7106_v27 = vld [vmem:[#allocation15_spill] sm:$0xff] }
 0x14b   : > { %2264 = vmatpush2.msra.mxu1 %v2263_v12  ;;  %2276 = vmatprep.subr.mxu0 %v7091_v40  ;;  %v7105_v12 = vld [vmem:[#allocation93_spill] sm:$0xff] }
 0x14c   : > { %2279 = vmatpush1.msra.mxu0 %v7092_v4  ;;  %2266 = vmatprep.mubr.f32.mxu1 %v5568_v41  ;;  %v7108_v41 = vld [vmem:[#allocation79_spill] sm:$0xff] }
 0x14d   : > { %2282 = vmatprep.subr.mxu0 %v7093_v31  ;;  %2268 = vmatmul.mubr.f32.vlgmr.msra.gmra.mxu1 %v5675_v30  ;;  %v7107_v30 = vld [vmem:[#allocation94_spill] sm:$0xff] }
 0x14e   : > { %2285 = vmatpush1.msra.mxu0 %v7094_v36  ;;  %2478 = vmatprep.subr.mxu1 %v4581_v57 }
 0x14f   : > { %2288 = vmatprep.subr.mxu0 %v7095_v54  ;;  %2480 = vmatpush1.msra.mxu1 %v4583_v38  ;;  %v7112_v38 = vld [vmem:[#allocation83_spill] sm:$0xff] }
 0x150   : > { %2291 = vmatpush1.msra.mxu0 %v7096_v58  ;;  %2482 = vmatprep.subr.mxu1 %v4594_v56  ;;  %v7110_v56 = vld [vmem:[#allocation21_spill] sm:$0xff] }
 0x151   : > { %2294 = vmatprep.subr.mxu0 %v7097_v46  ;;  %2484 = vmatpush1.msra.mxu1 %v7098_v23  ;;  %v7109_v23 = vld [vmem:[#allocation23_spill] sm:$0xff] }
 0x152   : > { %2297 = vmatpush1.msra.mxu0 %v7099_v59  ;;  %2486 = vmatprep.subr.mxu1 %v7100_v16  ;;  %v7111_v16 = vld [vmem:[#allocation4_spill] sm:$0xff] }
 0x153   : > { %2300 = vmatprep.subr.mxu0 %v7101_v48  ;;  %2488 = vmatpush1.msra.mxu1 %v7102_v22  ;;  %v7113_v22 = vld [vmem:[#allocation18_spill] sm:$0xff] }
 0x154   : > { %2303 = vmatpush1.msra.mxu0 %v7103_v51  ;;  %2490 = vmatprep.subr.mxu1 %v7104_v26  ;;  %v7114_v51 = vld [vmem:[#allocation85_spill] sm:$0xff]  ;;  %v7115_v26 = vld [vmem:[#allocation27_spill] sm:$0xff] }
 0x155   : > { %2306 = vmatprep.subr.mxu0 %v7105_v12  ;;  %2492 = vmatpush1.msra.mxu1 %v7106_v27  ;;  %v7116_v12 = vld [vmem:[#allocation92_spill] sm:$0xff]  ;;  %v7117_v27 = vld [vmem:[#allocation31_spill] sm:$0xff] }
 0x156   : > { %2309 = vmatpush1.msra.mxu0 %v7107_v30  ;;  %2494 = vmatprep.subr.mxu1 %v7108_v41  ;;  %v7118_v30 = vld [vmem:[#allocation89_spill] sm:$0xff]  ;;  %v7119_v41 = vld [vmem:[#allocation22_spill] sm:$0xff] }
 0x157   : > { %2312 = vmatprep.subr.mxu0 %v7109_v23  ;;  %2496 = vmatpush1.msra.mxu1 %v7110_v56  ;;  %v7120_v23 = vld [vmem:[#allocation95_spill] sm:$0xff]  ;;  %v7121_v56 = vld [vmem:[#allocation28_spill] sm:$0xff] }
 0x158   : > { %2315 = vmatpush1.msra.mxu0 %v7111_v16  ;;  %2498 = vmatprep.subr.mxu1 %v7112_v38  ;;  %v7122_v16 = vld [vmem:[#allocation14_spill] sm:$0xff] }
 0x159   : > { %2318 = vmatprep.subr.mxu0 %v7113_v22  ;;  %2500 = vmatpush1.msra.mxu1 %v7114_v51  ;;  %v7123_v38 = vld [vmem:[#allocation26_spill] sm:$0xff]  ;;  %v7124_v51 = vld [vmem:[#allocation32_spill] sm:$0xff] }
 0x15a   : > { %2321 = vmatpush1.msra.mxu0 %v7115_v26  ;;  %2502 = vmatprep.subr.mxu1 %v7116_v12  ;;  %v7125_v26 = vld [vmem:[#allocation25_spill] sm:$0xff]  ;;  %v7126_v12 = vld [vmem:[#allocation30_spill] sm:$0xff] }
 0x15b   : > { %2324 = vmatprep.subr.mxu0 %v7117_v27  ;;  %2504 = vmatpush1.msra.mxu1 %v7118_v30  ;;  %v7127_v30 = vld [vmem:[#allocation45_spill] sm:$0xff] }
 0x15c   : > { %2327 = vmatpush1.msra.mxu0 %v7119_v41  ;;  %2506 = vmatprep.subr.mxu1 %v7120_v23  ;;  %v7128_v41 = vld [vmem:[#allocation20_spill] sm:$0xff]  ;;  %v7129_v23 = vld [vmem:[#allocation34_spill] sm:$0xff] }
 0x15d   : > { %2330 = vmatprep.subr.mxu0 %v7121_v56  ;;  %2508 = vmatpush1.msra.mxu1 %v7122_v16  ;;  %v7130_v56 = vld [vmem:[#allocation24_spill] sm:$0xff] }
 0x15e   : > { %2333 = vmatpush1.msra.mxu0 %v7123_v38  ;;  %2510 = vmatprep.subr.mxu1 %v4818_v52  ;;  %v7131_v16 = vld [vmem:[#allocation40_spill] sm:$0xff]  ;;  %v7132_v52 = vld [vmem:[#allocation38_spill] sm:$0xff] }
 0x15f   : > { %2336 = vmatprep.subr.mxu0 %v7124_v51  ;;  %2512 = vmatpush1.msra.mxu1 %v7125_v26  ;;  %v7133_v51 = vld [vmem:[#allocation37_spill] sm:$0xff] }
 0x160   : > { %2339 = vmatpush1.msra.mxu0 %v7126_v12  ;;  %2514 = vmatprep.subr.mxu1 %v4863_v13  ;;  %v7134_v26 = vld [vmem:[#allocation53_spill] sm:$0xff] }
 0x161   : > { %2342 = vmatprep.subr.mxu0 %v7127_v30  ;;  %2516 = vmatpush1.msra.mxu1 %v7128_v41  ;;  %v7135_v13 = vld [vmem:[#allocation49_spill] sm:$0xff]  ;;  %v7137_v41 = vld [vmem:[#allocation48_spill] sm:$0xff] }
 0x162   : > { %2345 = vmatpush1.msra.mxu0 %v7129_v23  ;;  %2518 = vmatprep.subr.mxu1 %v7130_v56  ;;  %v7136_v30 = vld [vmem:[#allocation41_spill] sm:$0xff]  ;;  %v7138_v23 = vld [vmem:[#allocation39_spill] sm:$0xff]  ;;  %v7139_v56 = vld [vmem:[#allocation46_spill] sm:$0xff] }
 0x163   : > { %2348 = vmatprep.subr.mxu0 %v7131_v16  ;;  %2520 = vmatpush1.msra.mxu1 %v4895_v0  ;;  %v7140_v16 = vld [vmem:[#allocation36_spill] sm:$0xff]  ;;  %v7141_v0 = vld [vmem:[#allocation61_spill] sm:$0xff] }
 0x164   : > { %2351 = vmatpush1.msra.mxu0 %v7132_v52  ;;  %2522 = vmatprep.subr.mxu1 %v7133_v51  ;;  %v7142_v52 = vld [vmem:[#allocation43_spill] sm:$0xff]  ;;  %v7143_v51 = vld [vmem:[#allocation57_spill] sm:$0xff] }
 0x165   : > { %2354 = vmatprep.subr.mxu0 %v7134_v26  ;;  %2524 = vmatpush1.msra.mxu1 %v4926_v61  ;;  %v7144_v26 = vld [vmem:[#allocation42_spill] sm:$0xff]  ;;  %v7145_v61 = vld [vmem:[#allocation56_spill] sm:$0xff] }
 0x166   : > { %2357 = vmatpush1.msra.mxu0 %v7135_v13  ;;  %2526 = vmatprep.subr.mxu1 %v7136_v30  ;;  %v7146_v13 = vld [vmem:[#allocation47_spill] sm:$0xff]  ;;  %v7147_v30 = vld [vmem:[#allocation54_spill] sm:$0xff] }
 0x167   : > { %2360 = vmatprep.subr.mxu0 %v7137_v41  ;;  %2528 = vmatpush1.msra.mxu1 %v7138_v23  ;;  %v7148_v41 = vld [vmem:[#allocation44_spill] sm:$0xff]  ;;  %v7149_v23 = vld [vmem:[#allocation69_spill] sm:$0xff] }
 0x168   : > { %2363 = vmatpush1.msra.mxu0 %v7139_v56  ;;  %2530 = vmatprep.subr.mxu1 %v7140_v16  ;;  %v7150_v56 = vld [vmem:[#allocation51_spill] sm:$0xff]  ;;  %v7151_v16 = vld [vmem:[#allocation65_spill] sm:$0xff] }
 0x169   : > { %2366 = vmatprep.subr.mxu0 %v7141_v0  ;;  %2532 = vmatpush1.msra.mxu1 %v7142_v52  ;;  %v7152_v0 = vld [vmem:[#allocation50_spill] sm:$0xff]  ;;  %v7153_v52 = vld [vmem:[#allocation64_spill] sm:$0xff] }
 0x16a   : > { %2369 = vmatpush1.msra.mxu0 %v7143_v51  ;;  %2534 = vmatprep.subr.mxu1 %v7144_v26  ;;  %v7154_v51 = vld [vmem:[#allocation55_spill] sm:$0xff]  ;;  %v7155_v26 = vld [vmem:[#allocation62_spill] sm:$0xff] }
 0x16b   : > { %2372 = vmatprep.subr.mxu0 %v7145_v61  ;;  %2536 = vmatpush1.msra.mxu1 %v7146_v13  ;;  %v7156_v61 = vld [vmem:[#allocation52_spill] sm:$0xff]  ;;  %v7157_v13 = vld [vmem:[#allocation77_spill] sm:$0xff] }
 0x16c   : > { %2375 = vmatpush2.msra.mxu0 %v7147_v30  ;;  %2538 = vmatprep.subr.mxu1 %v7148_v41  ;;  %v7158_v30 = vld [vmem:[#allocation59_spill] sm:$0xff]  ;;  %v7159_v41 = vld [vmem:[#allocation73_spill] sm:$0xff] }
 0x16d   : > { %2378 = vmatprep.subr.mxu0 %v7149_v23  ;;  %2540 = vmatpush1.msra.mxu1 %v7150_v56  ;;  %v7160_v56 = vld [vmem:[#allocation72_spill] sm:$0xff] }
 0x16e   : > { %2381 = vmatpush2.msra.mxu0 %v7151_v16  ;;  %2542 = vmatprep.subr.mxu1 %v7152_v0  ;;  %v7161_v0 = vld [vmem:[#allocation70_spill] sm:$0xff] }
 0x16f   : > { %2384 = vmatprep.subr.mxu0 %v7153_v52  ;;  %2544 = vmatpush2.msra.mxu1 %v7154_v51  ;;  %v7162_v51 = vld [vmem:[#allocation78_spill] sm:$0xff] }
 0x170   : > { %2387 = vmatpush2.msra.mxu0 %v7155_v26  ;;  %2546 = vmatprep.subr.mxu1 %v7156_v61  ;;  %v7163_v26 = vld [vmem:[#allocation67_spill] sm:$0xff]  ;;  %v7164_v61 = vld [vmem:[#allocation74_spill] sm:$0xff] }
 0x171   : > { %2390 = vmatprep.subr.mxu0 %v7157_v13  ;;  %2548 = vmatpush2.msra.mxu1 %v7158_v30  ;;  %v7165_v13 = vld [vmem:[#allocation66_spill] sm:$0xff] }
 0x172   : > { %2393 = vmatpush2.msra.mxu0 %v7159_v41  ;;  %2550 = vmatprep.subr.mxu1 %v5201_v29  ;;  %v7166_v30 = vld [vmem:[#allocation82_spill] sm:$0xff]  ;;  %v7167_v29 = vld [vmem:[#allocation80_spill] sm:$0xff] }
 0x173   : > { %2396 = vmatprep.subr.mxu0 %v7160_v56  ;;  %2552 = vmatpush2.msra.mxu1 %v5182_v42  ;;  %v7168_v42 = vld [vmem:[#allocation84_spill] sm:$0xff] }
 0x174   : > { %2399 = vmatpush2.msra.mxu0 %v7161_v0  ;;  %2554 = vmatprep.subr.mxu1 %v5228_v43  ;;  %v7169_v43 = vld [vmem:[#allocation99_spill] sm:$0xff] }
 0x175   : > { %2402 = vmatprep.subr.mxu0 %v7162_v51  ;;  %2556 = vmatpush2.msra.mxu1 %v7163_v26  ;;  %v7170_v26 = vld [vmem:[#allocation90_spill] sm:$0xff] }
 0x176   : > { %2405 = vmatpush2.msra.mxu0 %v7164_v61  ;;  %2558 = vmatprep.subr.mxu1 %v7165_v13  ;;  %v7171_v13 = vld [vmem:[#allocation86_spill] sm:$0xff] }
 0x177   : > { %2408 = vmatprep.subr.mxu0 %v7166_v30  ;;  %2560 = vmatpush2.msra.mxu1 %v5257_v25  ;;  %v7172_v25 = vld [vmem:[#allocation102_spill] sm:$0xff] }
 0x178   : > { %2411 = vmatpush2.msra.mxu0 %v7167_v29  ;;  %2562 = vmatprep.subr.mxu1 %v5303_v44 }
 0x179   : > { %2414 = vmatprep.subr.mxu0 %v7168_v42  ;;  %2564 = vmatpush2.msra.mxu1 %v5285_v24  ;;  %v7173_v24 = vld [vmem:[#allocation106_spill] sm:$0xff] }
 0x17a   : > { %2417 = vmatpush2.msra.mxu0 %v7169_v43  ;;  %2566 = vmatprep.subr.mxu1 %v5351_v33  ;;  %v7174_v33 = vld [vmem:[#allocation101_spill] sm:$0xff] }
 0x17b   : > { %2420 = vmatprep.subr.mxu0 %v7170_v26  ;;  %2568 = vmatpush2.msra.mxu1 %v5332_v18 }
 0x17c   : > { %2423 = vmatpush2.msra.mxu0 %v7171_v13  ;;  %2570 = vmatprep.subr.mxu1 %v5378_v15 }
 0x17d   : > { %2426 = vmatprep.subr.mxu0 %v7172_v25  ;;  %2572 = vmatpush2.msra.mxu1 %v5360_v11 }
 0x17e   : > { %2429 = vmatpush2.msra.mxu0 %v5504_v9  ;;  %2574 = vmatprep.subr.mxu1 %v5428_v55 }
 0x17f   : > { %2432 = vmatprep.subr.mxu0 %v7173_v24  ;;  %2576 = vmatpush2.msra.mxu1 %v5407_v1 }
 0x180   : > { %2435 = vmatpush2.msra.mxu0 %v7174_v33  ;;  %2578 = vmatprep.subr.mxu1 %v5456_v8 }
 0x181   : > { %2438 = vmatprep.subr.mxu0 %v5605_v37  ;;  %2580 = vmatpush2.msra.mxu1 %v5437_v49 }
 0x182   : > { %2441 = vmatpush2.msra.mxu0 %v5588_v21  ;;  %2582 = vmatprep.subr.mxu1 %v5515_v17 }
 0x183   : > { %2444 = vmatprep.subr.mxu0 %v5644_v3  ;;  %2584 = vmatpush2.msra.mxu1 %v5484_v47 }
 0x184   : > { %2447 = vmatpush2.msra.mxu0 %v5612_v19  ;;  %2586 = vmatprep.subr.mxu1 %v5534_v50  ;;  %v7176_v50 = vand.u32 4294901760, %v7092_v4  ;;  %v7186_v4 = vld [vmem:[#allocation5_spill] sm:$0xff] }
 0x185   : > { %2450 = vmatprep.subr.mxu0 %v5662_v14  ;;  %2468 = vmatprep.mubr.f32.mxu0 %v5619_v28 }
 0x186   : > { %2453 = vmatpush2.msra.mxu0 %v5627_v20  ;;  %2588 = vmatpush2.msra.mxu1 %v5536_v63  ;;  %v7175_v63 = vand.u32 4294901760, %v7091_v40  ;;  %v7183_v40 = vand.u32 4294901760, %v5707_v7 }
 0x187   : > { %2456 = vmatprep.subr.mxu0 %v5679_v60  ;;  %2590 = vmatprep.subr.mxu1 %v5590_v5 }
 0x188   : > { %2459 = vmatpush2.msra.mxu0 %v5683_v2  ;;  %2592 = vmatpush2.msra.mxu1 %v5563_v45  ;;  %v7177_v45 = vand.u32 4294901760, %v7093_v31  ;;  %v7187_v31 = vld [vmem:[#allocation88_spill] sm:$0xff] }
 0x189   : > { %2462 = vmatprep.subr.mxu0 %v5695_v32  ;;  %2594 = vmatprep.subr.mxu1 %v5598_v34  ;;  %v7178_v34 = vand.u32 4294901760, %v7094_v36  ;;  %v7188_v36 = vand.u32 4294901760, %v7187_v31  ;;  %v7204_v31 = vld [vmem:[#allocation27_spill] sm:$0xff] }
 0x18a   : > { %2465 = vmatpush2.msra.mxu0 %v5699_v6  ;;  %2596 = vmatpush2.msra.mxu1 %v5577_v10  ;;  %v7179_v10 = vand.u32 4294901760, %v7095_v54  ;;  %v7190_v54 = vld [vmem:[#allocation93_spill] sm:$0xff] }
 0x18b   : > { %2471 = vmatmul.mubr.f32.vlgmr.msra.gmra.mxu0 %v5707_v7  ;;  %2621 = vmatprep.subr.mxu0 %v7175_v63  ;;  %v7180_v63 = vand.u32 4294901760, %v7096_v58  ;;  %v7191_v58 = vand.u32 4294901760, %v7190_v54  ;;  %v7192_v7 = vld [vmem:[#allocation6_spill] sm:$0xff]  ;;  %v7207_v54 = vand.u32 4294901760, %v7117_v27 }
 0x18c   : > { %2625 = vmatpush1.msra.mxu0 %v7176_v50  ;;  %2598 = vmatprep.subr.mxu1 %v5634_v53  ;;  %v7181_v50 = vand.u32 4294901760, %v5619_v28  ;;  %v7189_v28 = vld [vmem:[#allocation7_spill] sm:$0xff] }
 0x18d   : > { %2629 = vmatprep.subr.mxu0 %v7177_v45  ;;  %2600 = vmatpush2.msra.mxu1 %v5651_v39  ;;  %v7182_v45 = vand.u32 4294901760, %v7097_v46  ;;  %v7193_v46 = vld [vmem:[#allocation94_spill] sm:$0xff] }
 0x18e   : > { %2633 = vmatpush1.msra.mxu0 %v7178_v34  ;;  %2602 = vmatprep.subr.mxu1 %v5658_v35  ;;  %v7184_v34 = vand.u32 4294901760, %v7099_v59  ;;  %v7194_v59 = vand.u32 4294901760, %v7193_v46 }
 0x18f   : > { %2637 = vmatprep.subr.mxu0 %v7179_v10  ;;  %2604 = vmatpush2.msra.mxu1 %v5668_v62  ;;  %v7185_v10 = vand.u32 4294901760, %v7101_v48 }
 0x190   : > { %2641 = vmatpush1.msra.mxu0 %v7180_v63  ;;  %2608 = vmatprep.mubr.f32.mxu1 %v7181_v50  ;;  %v7195_v63 = vld [vmem:[#allocation11_spill] sm:$0xff]  ;;  %v7198_v50 = vld [vmem:[#allocation10_spill] sm:$0xff] }
 0x191   : > { %2645 = vmatprep.subr.mxu0 %v7182_v45  ;;  %2612 = vmatmul.mubr.f32.vlgmr.msra.gmra.mxu1 %v7183_v40  ;;  %v7199_v45 = vld [vmem:[#allocation4_spill] sm:$0xff] }
 0x192   : > { %2649 = vmatpush1.msra.mxu0 %v7184_v34  ;;  %2884 = vmatprep.subr.mxu1 %v4581_v57  ;;  %v7196_v57 = vld [vmem:[#allocation23_spill] sm:$0xff]  ;;  %v7200_v40 = vand.u32 4294901760, %v7199_v45  ;;  %v7201_v34 = vld [vmem:[#allocation17_spill] sm:$0xff]  ;;  %v7217_v45 = vld [vmem:[#allocation32_spill] sm:$0xff] }
 0x193   : > { %2653 = vmatprep.subr.mxu0 %v7185_v10  ;;  %2886 = vmatpush1.msra.mxu1 %v7186_v4  ;;  %v7197_v48 = vand.u32 4294901760, %v7196_v57  ;;  %v7202_v10 = vand.u32 4294901760, %v7113_v22  ;;  %v7203_v4 = vld [vmem:[#allocation15_spill] sm:$0xff]  ;;  %v7214_v57 = vld [vmem:[#allocation85_spill] sm:$0xff]  ;;  %v7218_v27 = vand.u32 4294901760, %v7217_v45 }
 0x194   : > { %2657 = vmatpush1.msra.mxu0 %v7188_v36  ;;  %2888 = vmatprep.subr.mxu1 %v7189_v28  ;;  %v7205_v36 = vand.u32 4294901760, %v7204_v31  ;;  %v7206_v28 = vld [vmem:[#allocation79_spill] sm:$0xff] }
 0x195   : > { %2661 = vmatprep.subr.mxu0 %v7191_v58  ;;  %2890 = vmatpush1.msra.mxu1 %v7192_v7  ;;  %v7208_v58 = vld [vmem:[#allocation21_spill] sm:$0xff]  ;;  %v7209_v7 = vld [vmem:[#allocation22_spill] sm:$0xff] }
 0x196   : > { %2665 = vmatpush1.msra.mxu0 %v7194_v59  ;;  %2892 = vmatprep.subr.mxu1 %v7195_v63  ;;  %v7210_v46 = vand.u32 4294901760, %v7209_v7  ;;  %v7211_v59 = vld [vmem:[#allocation83_spill] sm:$0xff]  ;;  %v7212_v63 = vld [vmem:[#allocation28_spill] sm:$0xff] }
 0x197   : > { %2669 = vmatprep.subr.mxu0 %v7197_v48  ;;  %2894 = vmatpush1.msra.mxu1 %v7198_v50  ;;  %v7213_v22 = vand.u32 4294901760, %v7212_v63  ;;  %v7215_v48 = vand.u32 4294901760, %v7123_v38  ;;  %v7216_v50 = vld [vmem:[#allocation92_spill] sm:$0xff]  ;;  %v7233_v63 = vld [vmem:[#allocation29_spill] sm:$0xff] }
 0x198   : > { %2673 = vmatpush1.msra.mxu0 %v7200_v40  ;;  %2896 = vmatprep.subr.mxu1 %v7201_v34  ;;  %v7219_v40 = vld [vmem:[#allocation89_spill] sm:$0xff]  ;;  %v7220_v34 = vand.u32 4294901760, %v7126_v12 }
 0x199   : > { %2677 = vmatprep.subr.mxu0 %v7202_v10  ;;  %2898 = vmatpush1.msra.mxu1 %v7203_v4  ;;  %v7221_v10 = vld [vmem:[#allocation95_spill] sm:$0xff]  ;;  %v7222_v4 = vld [vmem:[#allocation45_spill] sm:$0xff] }
 0x19a   : > { %2681 = vmatpush1.msra.mxu0 %v7205_v36  ;;  %2900 = vmatprep.subr.mxu1 %v7206_v28  ;;  %v7223_v31 = vand.u32 4294901760, %v7222_v4  ;;  %v7224_v36 = vld [vmem:[#allocation14_spill] sm:$0xff] }
 0x19b   : > { %2685 = vmatprep.subr.mxu0 %v7207_v54  ;;  %2902 = vmatpush1.msra.mxu1 %v7208_v58  ;;  %v7225_v28 = vld [vmem:[#allocation34_spill] sm:$0xff]  ;;  %v7227_v54 = vld [vmem:[#allocation16_spill] sm:$0xff] }
 0x19c   : > { %2689 = vmatpush1.msra.mxu0 %v7210_v46  ;;  %2904 = vmatprep.subr.mxu1 %v7211_v59  ;;  %v7226_v38 = vand.u32 4294901760, %v7225_v28  ;;  %v7228_v58 = vld [vmem:[#allocation40_spill] sm:$0xff]  ;;  %v7230_v46 = vld [vmem:[#allocation25_spill] sm:$0xff]  ;;  %v7231_v59 = vld [vmem:[#allocation38_spill] sm:$0xff] }
 0x19d   : > { %2693 = vmatprep.subr.mxu0 %v7213_v22  ;;  %2906 = vmatpush1.msra.mxu1 %v7214_v57  ;;  %v7229_v7 = vand.u32 4294901760, %v7228_v58  ;;  %v7232_v12 = vand.u32 4294901760, %v7231_v59  ;;  %v7234_v22 = vld [vmem:[#allocation53_spill] sm:$0xff]  ;;  %v7243_v4 = vld [vmem:[#allocation46_spill] sm:$0xff]  ;;  %v7252_v59 = vld [vmem:[#allocation56_spill] sm:$0xff] }
 0x19e   : > { %2697 = vmatpush1.msra.mxu0 %v7215_v48  ;;  %2908 = vmatprep.subr.mxu1 %v7216_v50  ;;  %v7235_v57 = vand.u32 4294901760, %v7234_v22  ;;  %v7236_v48 = vld [vmem:[#allocation20_spill] sm:$0xff]  ;;  %v7237_v50 = vld [vmem:[#allocation49_spill] sm:$0xff]  ;;  %v7255_v22 = vld [vmem:[#allocation54_spill] sm:$0xff] }
 0x19f   : > { %2701 = vmatprep.subr.mxu0 %v7218_v27  ;;  %2910 = vmatpush1.msra.mxu1 %v7219_v40  ;;  %v7238_v45 = vand.u32 4294901760, %v7237_v50  ;;  %v7239_v27 = vld [vmem:[#allocation24_spill] sm:$0xff]  ;;  %v7246_v28 = vld [vmem:[#allocation61_spill] sm:$0xff]  ;;  %v7258_v50 = vand.u32 4294901760, %v7149_v23 }
 0x1a0   : > { %2705 = vmatpush1.msra.mxu0 %v7220_v34  ;;  %2912 = vmatprep.subr.mxu1 %v7221_v10  ;;  %v7240_v40 = vld [vmem:[#allocation48_spill] sm:$0xff]  ;;  %v7242_v10 = vld [vmem:[#allocation33_spill] sm:$0xff] }
 0x1a1   : > { %2709 = vmatprep.subr.mxu0 %v7223_v31  ;;  %2914 = vmatpush1.msra.mxu1 %v7224_v36  ;;  %v7241_v34 = vand.u32 4294901760, %v7240_v40  ;;  %v7244_v31 = vand.u32 4294901760, %v7243_v4  ;;  %v7245_v36 = vld [vmem:[#allocation37_spill] sm:$0xff]  ;;  %v7261_v40 = vld [vmem:[#allocation42_spill] sm:$0xff] }
 0x1a2   : > { %2713 = vmatpush1.msra.mxu0 %v7226_v38  ;;  %2916 = vmatprep.subr.mxu1 %v7227_v54  ;;  %v7247_v38 = vand.u32 4294901760, %v7246_v28  ;;  %v7248_v54 = vld [vmem:[#allocation35_spill] sm:$0xff]  ;;  %v7249_v58 = vld [vmem:[#allocation57_spill] sm:$0xff]  ;;  %v7264_v4 = vld [vmem:[#allocation62_spill] sm:$0xff] }
 0x1a3   : > { %2717 = vmatprep.subr.mxu0 %v7229_v7  ;;  %2918 = vmatpush1.msra.mxu1 %v7230_v46  ;;  %v7250_v7 = vand.u32 4294901760, %v7249_v58  ;;  %v7251_v46 = vld [vmem:[#allocation41_spill] sm:$0xff]  ;;  %v7273_v58 = vld [vmem:[#allocation55_spill] sm:$0xff] }
 0x1a4   : > { %2721 = vmatpush1.msra.mxu0 %v7232_v12  ;;  %2920 = vmatprep.subr.mxu1 %v7233_v63  ;;  %v7253_v12 = vand.u32 4294901760, %v7252_v59  ;;  %v7254_v63 = vld [vmem:[#allocation39_spill] sm:$0xff]  ;;  %v7267_v28 = vld [vmem:[#allocation77_spill] sm:$0xff]  ;;  %v7276_v59 = vand.u32 4294901760, %v7162_v51  ;;  %v7284_v51 = vand.u32 4294901760, %v7168_v42  ;;  %v7291_v42 = vand.u32 4294901760, %v7172_v25 }
 0x1a5   : > { %2725 = vmatprep.subr.mxu0 %v7235_v57  ;;  %2922 = vmatpush1.msra.mxu1 %v7236_v48  ;;  %v7256_v57 = vand.u32 4294901760, %v7255_v22  ;;  %v7257_v48 = vld [vmem:[#allocation36_spill] sm:$0xff]  ;;  %v7268_v23 = vand.u32 4294901760, %v7267_v28  ;;  %v7281_v22 = vld [vmem:[#allocation63_spill] sm:$0xff]  ;;  %v7297_v25 = vand.u32 4294901760, %v5605_v37  ;;  %v7313_v37 = vld [vmem:[#allocation105_spill] sm:$0xff] }
 0x1a6   : > { %2729 = vmatpush1.msra.mxu0 %v7238_v45  ;;  %2924 = vmatprep.subr.mxu1 %v7239_v27  ;;  %v7259_v45 = vld [vmem:[#allocation43_spill] sm:$0xff]  ;;  %v7260_v27 = vand.u32 4294901760, %v7151_v16  ;;  %v7270_v16 = vand.u32 4294901760, %v7159_v41  ;;  %v7278_v41 = vand.u32 4294901760, %v7164_v61  ;;  %v7286_v61 = vand.u32 4294901760, %v7169_v43 }
 0x1a7   : > { %2733 = vmatprep.subr.mxu0 %v7241_v34  ;;  %2926 = vmatpush1.msra.mxu1 %v7242_v10  ;;  %v7262_v34 = vand.u32 4294901760, %v7153_v52  ;;  %v7263_v10 = vld [vmem:[#allocation47_spill] sm:$0xff]  ;;  %v7272_v52 = vand.u32 4294901760, %v7160_v56  ;;  %v7280_v56 = vand.u32 4294901760, %v7166_v30  ;;  %v7288_v30 = vand.u32 4294901760, %v7170_v26 }
 0x1a8   : > { %2737 = vmatpush1.msra.mxu0 %v7244_v31  ;;  %2928 = vmatprep.subr.mxu1 %v7245_v36  ;;  %v7265_v31 = vand.u32 4294901760, %v7264_v4  ;;  %v7266_v36 = vld [vmem:[#allocation44_spill] sm:$0xff]  ;;  %v7293_v43 = vand.u32 4294901760, %v5504_v9  ;;  %v7295_v26 = vand.u32 4294901760, %v7173_v24  ;;  %v7299_v24 = vand.u32 4294901760, %v5644_v3 }
 0x1a9   : > { %2741 = vmatprep.subr.mxu0 %v7247_v38  ;;  %2930 = vmatpush1.msra.mxu1 %v7248_v54  ;;  %v7269_v38 = vld [vmem:[#allocation51_spill] sm:$0xff]  ;;  %v7271_v54 = vld [vmem:[#allocation50_spill] sm:$0xff]  ;;  %v7305_v9 = vld [vmem:[#allocation100_spill] sm:$0xff] }
 0x1aa   : > { %2745 = vmatpush1.msra.mxu0 %v7250_v7  ;;  %2932 = vmatprep.subr.mxu1 %v7251_v46  ;;  %v7274_v7 = vand.u32 4294901760, %v7161_v0  ;;  %v7275_v46 = vld [vmem:[#allocation52_spill] sm:$0xff]  ;;  %v7282_v0 = vand.u32 4294901760, %v7167_v29  ;;  %v7290_v29 = vand.u32 4294901760, %v7171_v13  ;;  %v7296_v13 = vand.u32 4294901760, %v7174_v33 }
 0x1ab   : > { %2749 = vmatprep.subr.mxu0 %v7253_v12  ;;  %2934 = vmatpush1.msra.mxu1 %v7254_v63  ;;  %v7277_v12 = vld [vmem:[#allocation59_spill] sm:$0xff]  ;;  %v7279_v63 = vld [vmem:[#allocation58_spill] sm:$0xff]  ;;  %v7300_v33 = vand.u32 4294901760, %v5612_v19  ;;  %v592_v19 = vpop.f32.mrf.mxu0 }
 0x1ac   : > { %2753 = vmatpush2.msra.mxu0 %v7256_v57  ;;  %2936 = vmatprep.subr.mxu1 %v7257_v48  ;;  %v7283_v57 = vld [vmem:[#allocation60_spill] sm:$0xff]  ;;  %v7285_v48 = vld [vmem:[#allocation67_spill] sm:$0xff] }
 0x1ad   : > { %2757 = vmatprep.subr.mxu0 %v7258_v50  ;;  %2938 = vmatpush1.msra.mxu1 %v7259_v45  ;;  %v7287_v50 = vld [vmem:[#allocation66_spill] sm:$0xff]  ;;  %v7289_v45 = vld [vmem:[#allocation71_spill] sm:$0xff] }
 0x1ae   : > { %2761 = vmatpush2.msra.mxu0 %v7260_v27  ;;  %2940 = vmatprep.subr.mxu1 %v7261_v40  ;;  %v7292_v27 = vld [vmem:[#allocation68_spill] sm:$0xff] }
 0x1af   : > { %2765 = vmatprep.subr.mxu0 %v7262_v34  ;;  %2942 = vmatpush1.msra.mxu1 %v7263_v10  ;;  %v7294_v40 = vld [vmem:[#allocation76_spill] sm:$0xff] }
 0x1b0   : > { %2769 = vmatpush2.msra.mxu0 %v7265_v31  ;;  %2944 = vmatprep.subr.mxu1 %v7266_v36 }
 0x1b1   : > { %2773 = vmatprep.subr.mxu0 %v7268_v23  ;;  %2946 = vmatpush1.msra.mxu1 %v7269_v38 }
 0x1b2   : > { %2777 = vmatpush2.msra.mxu0 %v7270_v16  ;;  %2948 = vmatprep.subr.mxu1 %v7271_v54 }
 0x1b3   : > { %2781 = vmatprep.subr.mxu0 %v7272_v52  ;;  %2950 = vmatpush2.msra.mxu1 %v7273_v58 }
 0x1b4   : > { %2785 = vmatpush2.msra.mxu0 %v7274_v7  ;;  %2952 = vmatprep.subr.mxu1 %v7275_v46 }
 0x1b5   : > { %2789 = vmatprep.subr.mxu0 %v7276_v59  ;;  %2954 = vmatpush2.msra.mxu1 %v7277_v12 }
 0x1b6   : > { %2793 = vmatpush2.msra.mxu0 %v7278_v41  ;;  %2956 = vmatprep.subr.mxu1 %v7279_v63 }
 0x1b7   : > { %2797 = vmatprep.subr.mxu0 %v7280_v56  ;;  %2958 = vmatpush2.msra.mxu1 %v7281_v22 }
 0x1b8   : > { %2801 = vmatpush2.msra.mxu0 %v7282_v0  ;;  %2960 = vmatprep.subr.mxu1 %v7283_v57 }
 0x1b9   : > { %2805 = vmatprep.subr.mxu0 %v7284_v51  ;;  %2962 = vmatpush2.msra.mxu1 %v7285_v48 }
 0x1ba   : > { %2809 = vmatpush2.msra.mxu0 %v7286_v61  ;;  %2964 = vmatprep.subr.mxu1 %v7287_v50 }
 0x1bb   : > { %2813 = vmatprep.subr.mxu0 %v7288_v30  ;;  %2966 = vmatpush2.msra.mxu1 %v7289_v45 }
 0x1bc   : > { %2817 = vmatpush2.msra.mxu0 %v7290_v29  ;;  %2968 = vmatprep.subr.mxu1 %v5303_v44  ;;  %v7298_v44 = vand.u32 4294901760, %v5588_v21  ;;  %v7302_v21 = vand.u32 4294901760, %v5627_v20  ;;  %v985_v20 = vpop.f32.mrf.mxu1 }
 0x1bd   : > { %2821 = vmatprep.subr.mxu0 %v7291_v42  ;;  %2970 = vmatpush2.msra.mxu1 %v7292_v27 }
 0x1be   : > { %2825 = vmatpush2.msra.mxu0 %v7293_v43  ;;  %2972 = vmatprep.subr.mxu1 %v7294_v40 }
 0x1bf   : > { %2829 = vmatprep.subr.mxu0 %v7295_v26  ;;  %2974 = vmatpush2.msra.mxu1 %v5332_v18  ;;  %v7304_v18 = vand.u32 4294901760, %v5683_v2  ;;  %v7312_v2 = vld [vmem:[#allocation107_spill] sm:$0xff] }
 0x1c0   : > { %2833 = vmatpush2.msra.mxu0 %v7296_v13  ;;  %2976 = vmatprep.subr.mxu1 %v5378_v15  ;;  %v7301_v15 = vand.u32 4294901760, %v5662_v14  ;;  %v987_v14 = vpop.f32.mrf.mxu1 }
 0x1c1   : > { %2837 = vmatprep.subr.mxu0 %v7297_v25  ;;  %2978 = vmatpush2.msra.mxu1 %v5360_v11  ;;  %v7307_v11 = vld [vmem:[#allocation104_spill] sm:$0xff] }
 0x1c2   : > { %2841 = vmatpush2.msra.mxu0 %v7298_v44  ;;  %2980 = vmatprep.subr.mxu1 %v5428_v55  ;;  %v7303_v55 = vand.u32 4294901760, %v5679_v60 }
 0x1c3   : > { %2845 = vmatprep.subr.mxu0 %v7299_v24  ;;  %2982 = vmatpush2.msra.mxu1 %v5407_v1  ;;  %v7308_v1 = vand.u32 4294901760, %v5699_v6 }
 0x1c4   : > { %2849 = vmatpush2.msra.mxu0 %v7300_v33  ;;  %2984 = vmatprep.subr.mxu1 %v5456_v8  ;;  %v7306_v8 = vand.u32 4294901760, %v5695_v32  ;;  %v1329_v32 = vpop.f32.mrf.mxu1 }
 0x1c5   : > { %2853 = vmatprep.subr.mxu0 %v7301_v15  ;;  %2986 = vmatpush2.msra.mxu1 %v5437_v49  ;;  %v7309_v49 = vld [vmem:[#allocation96_spill] sm:$0xff] }
 0x1c6   : > { %2857 = vmatpush2.msra.mxu0 %v7302_v21  ;;  %2988 = vmatprep.subr.mxu1 %v5515_v17  ;;  %v7310_v17 = vld [vmem:[#allocation108_spill] sm:$0xff]  ;;  %v1331_v34 = vpop.f32.mrf.mxu1 }
 0x1c7   : > { %2861 = vmatprep.subr.mxu0 %v7303_v55  ;;  %2990 = vmatpush2.msra.mxu1 %v5484_v47  ;;  %v7311_v47 = vld [vmem:[#allocation103_spill] sm:$0xff] }
 0x1c8   : > { %2865 = vmatpush2.msra.mxu0 %v7304_v18  ;;  %2992 = vmatprep.subr.mxu1 %v7305_v9  ;;  %v1731_v4 = vpop.f32.mrf.mxu1  ;;  %v7314_v9 = vld [vmem:[#allocation97_spill] sm:$0xff] }
 0x1c9   : > { %2869 = vmatprep.subr.mxu0 %v7306_v8  ;;  %2875 = vmatprep.mubr.f32.mxu0 %v7307_v11 }
 0x1ca   : > { %2873 = vmatpush2.msra.mxu0 %v7308_v1  ;;  %2994 = vmatpush2.msra.mxu1 %v7309_v49 }
 0x1cb   : > { %2877 = vmatmul.mubr.f32.vlgmr.msra.gmra.mxu0 %v7310_v17  ;;  %2996 = vmatprep.subr.mxu1 %v5590_v5  ;;  %v594_v5 = vpop.f32.mrf.mxu0 }
 0x1cc   : > { %2998 = vmatpush2.msra.mxu1 %v7311_v47  ;;  %3012 = vmatprep.mubr.f32.mxu1 %v7307_v11 }
 0x1cd   : > { %3000 = vmatprep.subr.mxu1 %v7312_v2  ;;  %v1188_v3 = vpop.f32.mrf.mxu0 }
 0x1ce   : > { %3002 = vmatpush2.msra.mxu1 %v7313_v37 }
 0x1cf   : > { %3004 = vmatprep.subr.mxu1 %v5634_v53  ;;  %v1190_v60 = vpop.f32.mrf.mxu0  ;;  %v986_v53 = vadd.f32 %v985_v20, %v592_v19 }
 0x1d0   : > { %3006 = vmatpush2.msra.mxu1 %v5651_v39  ;;  %v988_v39 = vadd.f32 %v987_v14, %v594_v5 }
 0x1d1   : > { %3008 = vmatprep.subr.mxu1 %v5658_v35  ;;  %v1594_v6 = vpop.f32.mrf.mxu0  ;;  %v1189_v36 = vadd.f32 %v1188_v3, %v986_v53  ;;  %v1733_v35 = vpop.f32.mrf.mxu1 }
 0x1d2   : > { %3010 = vmatpush2.msra.mxu1 %v5668_v62  ;;  %v1191_v28 = vadd.f32 %v1190_v60, %v988_v39 }
 0x1d3   : > { %3014 = vmatmul.mubr.f32.vlgmr.msra.gmra.mxu1 %v7310_v17  ;;  %v1596_v10 = vpop.f32.mrf.mxu0  ;;  %v1330_v62 = vadd.f32 %v1329_v32, %v1189_v36 }
 0x1d4   : > { %v1332_v16 = vadd.f32 %v1331_v34, %v1191_v28 }
 0x1d5   : > { %v1595_v54 = vadd.f32 %v1594_v6, %v1330_v62 }
 0x1d6   : > { %v1597_v58 = vadd.f32 %v1596_v10, %v1332_v16 }
 0x1d7   : > { %v1732_v7 = vadd.f32 %v1731_v4, %v1595_v54 }
 0x1d8   : > { %v1734_v59 = vadd.f32 %v1733_v35, %v1597_v58 }
 0x20a   : > { %v1876_v31 = vpop.f32.mrf.mxu0 }
 0x20b   : > { %v1877_v12 = vadd.f32 %v1876_v31, %v1732_v7 }
 0x20c   : > { %v1878_v23 = vpop.f32.mrf.mxu0 }
 0x20d   : > { %v2269_v38 = vpop.f32.mrf.mxu1  ;;  %v1879_v56 = vadd.f32 %v1878_v23, %v1734_v59 }
 0x20e   : > { %v2270_v22 = vadd.f32 %v2269_v38, %v1877_v12 }
 0x20f   : > { %v2271_v46 = vpop.f32.mrf.mxu1 }
 0x210   : > { %v2272_v57 = vadd.f32 %v2271_v46, %v1879_v56 }
 0x24b   : > { %v2472_v52 = vpop.f32.mrf.mxu0 }
 0x24c   : > { %v2473_v51 = vadd.f32 %v2472_v52, %v2270_v22 }
 0x24d   : > { %v2474_v41 = vpop.f32.mrf.mxu0 }
 0x24e   : > { %v2475_v61 = vadd.f32 %v2474_v41, %v2272_v57 }
 0x251   : > { %v2613_v63 = vpop.f32.mrf.mxu1 }
 0x252   : > { %v2614_v50 = vadd.f32 %v2613_v63, %v2473_v51 }
 0x253   : > { %v2615_v48 = vpop.f32.mrf.mxu1 }
 0x254   : > { %v2616_v45 = vadd.f32 %v2615_v48, %v2475_v61 }
 0x28b   : > { %v2878_v0 = vpop.f32.mrf.mxu0 }
 0x28c   : > { %v2879_v29 = vadd.f32 %v2878_v0, %v2614_v50 }
 0x28d   : > { %v2880_v30 = vpop.f32.mrf.mxu0 }
 0x28e   : > { %v2881_v27 = vadd.f32 %v2880_v30, %v2616_v45 }
 0x293   : > { %v3015_v42 = vpop.f32.mrf.mxu1 }
 0x294   : > { %v3016_v43 = vadd.f32 %v3015_v42, %v2879_v29 }
 0x295   : > { %v3017_v40 = vpop.f32.mrf.mxu1 }
 0x296   : > { %v3133_v26 = vmul.f32 -1.442695, %v3016_v43  ;;  %v3018_v13 = vadd.f32 %v3017_v40, %v2881_v27 }
 0x298   : > { %3164 = vpow2.f32 %v3133_v26  ;;  %v3134_v25 = vmul.f32 -1.442695, %v3018_v13 }
 0x29a   : > { %3166 = vpow2.f32 %v3134_v25 }
 0x2a5   : > { %v3165_v44 = vpop.eup %3164 }
 0x2a6   : > { %v3026_v24 = vadd.f32 1.0, %v3165_v44 }
 0x2a7   : > { %v3167_v33 = vpop.eup %3166 }
 0x2a8   : > { %v3027_v15 = vadd.f32 1.0, %v3167_v33  ;;  %3168 = vrcp.f32 %v3026_v24 }
 0x2aa   : > { %3170 = vrcp.f32 %v3027_v15 }
 0x2b5   : > { %v3169_v21 = vpop.eup %3168 }
 0x2b7   : > { %v3171_v55 = vpop.eup %3170 }
 0x2b8   : > { %v3034_v18 = vcombine.low %v3169_v21, %v3171_v55 }
 0x2ba   : > { %v3041_v8 = vrot.slane %v3034_v18, %v7314_v9 }
 0x2bc   : > { %v3048_v11 = vrot.slane %v3041_v8, %v7314_v9 }
 0x2be   : > { %3054 = vst.msk [vmem:[%s167_s8] sm:$0x3] %vm4294_vm1, %v3048_v11 }
 0x2bf PF: > { %s12_s11 = sadd.s32 1, %s3194_s11   ;;  %s7316_s9 = smov %s3190_s10 }
 0x2c0   : > { %p9_p5 = scmp.ge.s32.totalorder %s12_s11, 4   ;;  %s7317_s10 = smov %s7319_s12 }
 0x2c2   :  { %11 = sbr.rel (!%p9_p5) target bundleno = 2 (0x2), region = 70 }

</bundles_post_ra>
